<compile_context>
chip_gen: v5e
topology: v5e:2x2
jax: 0.10.0
libtpu: 0.0.40
codegen_flags: <defaults>
</compile_context>

<pallas_src>
import math

import jax
import jax.numpy as jnp
from jax.experimental import pallas as pl
from jax.experimental.pallas import tpu as pltpu

_OFFSETS = [(dy, dx) for dy in (-1, 0, 1) for dx in (-1, 0, 1)]
_NONCENTER = [(dy, dx) for (dy, dx) in _OFFSETS if (dy, dx) != (0, 0)]


def _make_kernel(n_u, ny, nx, nlevel, iteration, omega, b):
    assert nx == ny, "kernel assumes a square grid (the reference implicitly does too)"
    f32 = jnp.float32
    H, W = ny, nx
    R = n_u * H                                     # target-stacked slab height (sublanes)

    def widx(k, i, dy, dx):                         # flat index into the stencil table
        return k * (n_u * 9) + i * 9 + (dy + 1) * 3 + (dx + 1)

    def kernel(diag_ref, w_ref, fields_ref, out_ref):
        # ---------- boundary masks for the (R, W) target-stacked slab -----------------
        rid = jax.lax.broadcasted_iota(jnp.int32, (R, W), 0)
        cid = jax.lax.broadcasted_iota(jnp.int32, (R, W), 1)
        top = rid == 0
        bot = rid == H - 1
        for p in range(1, n_u):                     # per-plane top / bottom rows
            top = top | (rid == p * H)
            bot = bot | (rid == p * H + H - 1)
        lef = cid == 0
        rig = cid == W - 1

        def shifted_edge(u, dy, dx):
            """u[plane, clamp(y+dy), clamp(x+dx)], zero where BOTH indices are out of
            range — exactly boundary_condition(): edge-replicated halo, zero corners.
            Operates on the whole (R, W) slab; rows that wrap across plane boundaries
            are overwritten by the clamp masks, so no cross-target bleed."""
            v = u
            if dy != 0:
                rolled = pltpu.roll(v, (-dy) % R, axis=0)          # XLU sublane rotate
                v = jnp.where(top if dy < 0 else bot, v, rolled)   # clamp at the edge
            if dx != 0:
                rolled = pltpu.roll(v, (-dx) % W, axis=1)          # XLU lane rotate
                v = jnp.where(lef if dx < 0 else rig, v, rolled)
            if dy != 0 and dx != 0:
                corner = (top if dy < 0 else bot) & (lef if dx < 0 else rig)
                v = jnp.where(corner, 0.0, v)                      # pad corners are zero
            return v

        def conv3x3_zero(e, w_off):
            """3x3 cross-correlation with a zero boundary (== smooth(F.pad(e, 0), w))
            for the coarse-grid correction; the centre weight is structurally zero."""
            h, w = e.shape
            r_i = jax.lax.broadcasted_iota(jnp.int32, (h, w), 0)
            c_i = jax.lax.broadcasted_iota(jnp.int32, (h, w), 1)
            acc = jnp.zeros((h, w), f32)
            for (dy, dx) in _NONCENTER:
                v = e
                oob = None
                if dy != 0:
                    v = pltpu.roll(v, (-dy) % h, axis=0)
                    m = (r_i == 0) if dy < 0 else (r_i == h - 1)
                    oob = m
                if dx != 0:
                    v = pltpu.roll(v, (-dx) % w, axis=1)
                    m = (c_i == 0) if dx < 0 else (c_i == w - 1)
                    oob = m if oob is None else (oob | m)
                v = jnp.where(oob, 0.0, v)
                acc = acc + w_off[(dy, dx)] * v
            return acc

        # ---------- restrict / prolong (<= once per target per level, off the hot path)
        # TODO(synk): kept as tiny 0/1 selector matmuls — the strided-value-slice /
        # lane-reshape alternatives are not guaranteed to lower in Mosaic, and these run
        # at most (nlevel-4) times per target per call.
        def restrict2(m):                           # 2x2 mean pool, stride 2 (self.res)
            h, w = m.shape
            ri = jax.lax.broadcasted_iota(jnp.int32, (h // 2, h), 0)
            ci = jax.lax.broadcasted_iota(jnp.int32, (h // 2, h), 1)
            Rh = ((ci == 2 * ri) | (ci == 2 * ri + 1)).astype(f32)
            rj = jax.lax.broadcasted_iota(jnp.int32, (w, w // 2), 0)
            cj = jax.lax.broadcasted_iota(jnp.int32, (w, w // 2), 1)
            Rw = ((rj == 2 * cj) | (rj == 2 * cj + 1)).astype(f32)
            return 0.25 * jnp.dot(Rh, jnp.dot(m, Rw, preferred_element_type=f32),
                                  preferred_element_type=f32)

        def prolong2(m):                            # nearest-neighbour 2x upsample
            h, w = m.shape
            ri = jax.lax.broadcasted_iota(jnp.int32, (2 * h, h), 0)
            ci = jax.lax.broadcasted_iota(jnp.int32, (2 * h, h), 1)
            Ph = ((ri == 2 * ci) | (ri == 2 * ci + 1)).astype(f32)
            rj = jax.lax.broadcasted_iota(jnp.int32, (w, 2 * w), 0)
            cj = jax.lax.broadcasted_iota(jnp.int32, (w, 2 * w), 1)
            Pw = ((cj == 2 * rj) | (cj == 2 * rj + 1)).astype(f32)
            return jnp.dot(Ph, jnp.dot(m, Pw, preferred_element_type=f32),
                           preferred_element_type=f32)

        fields = fields_ref[...]                    # (R, W): all unknowns, sublane-stacked
        inv_diag = [1.0 / diag_ref[k] for k in range(n_u)]

        # ================= hoisted, iteration-invariant work ==========================
        # couple_eq_sum for EVERY equation at once; the 8 shifted slabs are built once
        # and shared by all n_u^2 stencil terms (the reference evaluates this on the
        # original u.data[0] every sweep, so it is a loop constant).
        full_sum = [jnp.zeros((H, W), f32) for _ in range(n_u)]
        tgt_term = [jnp.zeros((H, W), f32) for _ in range(n_u)]
        for (dy, dx) in _OFFSETS:
            sh = fields if (dy == 0 and dx == 0) else shifted_edge(fields, dy, dx)
            for i in range(n_u):
                sh_i = sh[i * H:(i + 1) * H, :]     # aligned static sublane slice
                for k in range(n_u):
                    if k == i and dy == 0 and dx == 0:
                        continue                    # A[k][k] centre zeroed (generate_diag)
                    term = w_ref[widx(k, i, dy, dx)] * sh_i
                    full_sum[k] = full_sum[k] + term
                    if k == i:
                        tgt_term[k] = tgt_term[k] + term

        # residual, restriction pyramid and coarse-grid correction per target
        const_planes = []
        for k in range(n_u):
            r = full_sum[k] - b                     # r = couple_eq_sum(all) - b
            r_s = [r]
            for _ in range(1, nlevel - 3):
                r_s.append(restrict2(r_s[-1]))
            w_off = {(dy, dx): w_ref[widx(k, k, dy, dx)] for (dy, dx) in _NONCENTER}
            e_coarse = None
            for j in reversed(range(1, nlevel - 3)):
                if e_coarse is None:
                    # reference starts from a (1,1,1,1) zero tensor, so the first coarse
                    # step collapses exactly to r_s[j] / diag
                    e_coarse = r_s[j] * inv_diag[k]
                else:
                    e_coarse = (e_coarse
                                - conv3x3_zero(e_coarse, w_off) * inv_diag[k]
                                + r_s[j] * inv_diag[k])
                e_coarse = prolong2(e_coarse)
            if e_coarse is None:                    # degenerate tiny grids (nlevel <= 4)
                e_coarse = jnp.zeros((H, W), f32)
            rest_sum = full_sum[k] - tgt_term[k]    # couple_eq_sum(rest_var)
            const_planes.append(b * inv_diag[k] - e_coarse - rest_sum * inv_diag[k])

        const_slab = jnp.concatenate(const_planes, axis=0)                   # (R, W)
        tgt_slab = jnp.concatenate(tgt_term, axis=0)                         # (R, W)
        inv_diag_slab = jnp.concatenate(
            [jnp.full((H, W), inv_diag[k], f32) for k in range(n_u)], axis=0)

        # pre-splat the per-target stencil weights once (reused by every iteration)
        w_self_slab = {}
        for (dy, dx) in _NONCENTER:
            w_self_slab[(dy, dx)] = jnp.concatenate(
                [jnp.full((H, W), w_ref[widx(k, k, dy, dx)], f32) for k in range(n_u)],
                axis=0)

        # ========================= smoothing iterations ===============================
        # Fully unrolled (iteration == 4 in the reference forward); switch to a
        # lax.fori_loop carrying u if iteration ever grows past ~8 to cap live ranges.
        u = fields                                  # iterate starts at u.data[0]
        for it in range(iteration):
            if it == 0:
                tconv = tgt_slab                    # u == fields on the first sweep
            else:
                tconv = jnp.zeros((R, W), f32)
                for (dy, dx) in _NONCENTER:
                    tconv = tconv + w_self_slab[(dy, dx)] * shifted_edge(u, dy, dx)
            u_update = u + const_slab - tconv * inv_diag_slab
            if omega == 1.0:
                u = u_update
            else:
                u = (1.0 - omega) * u + omega * u_update

        # ---- final per-target min-max normalization (zero-range guarded) -------------
        out_planes = []
        for k in range(n_u):
            uk = u[k * H:(k + 1) * H, :]
            umin = jnp.min(uk)
            umax = jnp.max(uk)
            rng = umax - umin
            inv_rng = 1.0 / jnp.where(rng == 0.0, jnp.float32(1.0), rng)
            out_planes.append((uk - umin) * inv_rng)
        out_ref[...] = jnp.concatenate(out_planes, axis=0)

    return kernel


def couple_fcycle_all(fields, stencils, diags, *, nlevel, iteration, omega, b):
    """Run F_cycle(iteration) for every target unknown in one grid-less pallas_call."""
    n_u, ny, nx = fields.shape
    kernel = _make_kernel(n_u, ny, nx, nlevel, iteration, float(omega), float(b))
    # unknowns stacked along the sublane axis: (n_u*ny, nx) slab in / out
    fields_slab = fields.astype(jnp.float32).reshape(n_u * ny, nx)
    out_slab = pl.pallas_call(
        kernel,
        out_shape=jax.ShapeDtypeStruct((n_u * ny, nx), jnp.float32),
        in_specs=[
            pl.BlockSpec(memory_space=pltpu.MemorySpace.SMEM),   # diags     (n_u,)
            pl.BlockSpec(memory_space=pltpu.MemorySpace.SMEM),   # stencils  (n_u*n_u*9,)
            pl.BlockSpec(memory_space=pltpu.MemorySpace.VMEM),   # fields slab
        ],
        out_specs=pl.BlockSpec(memory_space=pltpu.MemorySpace.VMEM),
        compiler_params=pltpu.CompilerParams(
            # Everything is register/VMEM resident; at 16x16 the footprint is a few KiB.
            # Re-derive this (and consider streaming the coupling fields) if ny,nx scale
            # past ~512: v7x only has 64 MiB of VMEM (vs 128 MiB on v5e/v6e).
            vmem_limit_bytes=8 * 1024 * 1024,
        ),
    )(diags.astype(jnp.float32), stencils.astype(jnp.float32).reshape(-1), fields_slab)
    return out_slab.reshape(n_u, ny, nx)


class CouplePDESolverPallas:
    """JAX/Pallas port of Couple_PDE_Solver.forward (coupled multigrid F-cycle)."""

    # TODO(synk): the sympy `eqs`/`u`/`solver` front-end (stencil generation and the
    # detection of each equation's target unknown from its dt term) has no Pallas
    # equivalent; the per-equation 3x3 stencils are supplied directly instead.
    def __init__(self, fields, stencil_sets, nx, ny, omega=1.0, s=0.0):
        # fields:       (n_u, ny, nx)     == u_i.data[0] of every coupled unknown
        # stencil_sets: (n_u, n_u, 3, 3)  == A[k][i] (weight_dict of equation k)
        self.fields = jnp.asarray(fields, jnp.float32)
        st = jnp.asarray(stencil_sets, jnp.float32)
        self.n_u = self.fields.shape[0]
        self.nx, self.ny = nx, ny
        self.omega, self.s = float(omega), float(s)
        self.nlevel = int(math.log(min(nx, ny), 2)) + 1
        # mirror update_dict() + generate_diag(): diag = A[k][k][1,1], then zero it
        diags = []
        for k in range(self.n_u):
            diags.append(st[k, k, 1, 1])
            st = st.at[k, k, 1, 1].set(0.0)
        self.stencils = st
        self.diags = jnp.stack(diags)

    def forward(self, t=4):
        out = couple_fcycle_all(self.fields, self.stencils, self.diags,
                                nlevel=self.nlevel, iteration=t,
                                omega=self.omega, b=self.s)
        # match the reference's list of (1, 1, ny, nx) tensors
        return [out[k].reshape(1, 1, self.ny, self.nx) for k in range(self.n_u)]


if __name__ == "__main__":
    key = jax.random.PRNGKey(0)
    n_u, nx, ny = 2, 16, 16
    kf, kw = jax.random.split(key)

    # deterministic synthetic unknowns u_i.data[0]
    fields = jax.random.normal(kf, (n_u, ny, nx), dtype=jnp.float32)

    # deterministic synthetic stencils; each equation's own centre entry is dominant,
    # as a discretised advection-diffusion operator would be (nonzero diag required).
    stencils = 0.05 * jax.random.normal(kw, (n_u, n_u, 3, 3), dtype=jnp.float32)
    for k in range(n_u):
        stencils = stencils.at[k, k, 1, 1].set(-4.0)

    solver = CouplePDESolverPallas(fields, stencils, nx, ny, omega=1.0, s=0.0)
    outs = solver.forward(t=4)
    outs = [jax.block_until_ready(o) for o in outs]

    assert len(outs) == n_u
    assert all(o.shape == (1, 1, ny, nx) and o.dtype == jnp.float32 for o in outs)
    assert all(bool(jnp.isfinite(o).all()) for o in outs)
    print("KERNEL_OK")
</pallas_src>

<mosaic_0001>
module attributes {stable_mosaic.version = 11 : i64} {
  func.func @kernel(%arg0: memref<2xf32, #tpu.memory_space<smem>>, %arg1: memref<36xf32, #tpu.memory_space<smem>>, %arg2: memref<32x16xf32, #tpu.memory_space<vmem>>, %arg3: memref<32x16xf32, #tpu.memory_space<vmem>>) attributes {dimension_semantics = [], scalar_prefetch = 0 : i64, scratch_operands = 0 : i64, tpu.core_type = #tpu.core_type<tc>} {
    %0 = tpu.iota {dimensions = array<i32: 0>} : vector<32x16xi32>
    %1 = tpu.iota {dimensions = array<i32: 1>} : vector<32x16xi32>
    %c0_i32 = arith.constant 0 : i32
    %2 = vector.broadcast %c0_i32 : i32 to vector<32x16xi32>
    %3 = arith.cmpi eq, %0, %2 : vector<32x16xi32>
    %c15_i32 = arith.constant 15 : i32
    %4 = vector.broadcast %c15_i32 : i32 to vector<32x16xi32>
    %5 = arith.cmpi eq, %0, %4 : vector<32x16xi32>
    %c16_i32 = arith.constant 16 : i32
    %6 = vector.broadcast %c16_i32 : i32 to vector<32x16xi32>
    %7 = arith.cmpi eq, %0, %6 : vector<32x16xi32>
    %8 = arith.ori %3, %7 : vector<32x16xi1>
    %c31_i32 = arith.constant 31 : i32
    %9 = vector.broadcast %c31_i32 : i32 to vector<32x16xi32>
    %10 = arith.cmpi eq, %0, %9 : vector<32x16xi32>
    %11 = arith.ori %5, %10 : vector<32x16xi1>
    %c0_i32_0 = arith.constant 0 : i32
    %12 = vector.broadcast %c0_i32_0 : i32 to vector<32x16xi32>
    %13 = arith.cmpi eq, %1, %12 : vector<32x16xi32>
    %c15_i32_1 = arith.constant 15 : i32
    %14 = vector.broadcast %c15_i32_1 : i32 to vector<32x16xi32>
    %15 = arith.cmpi eq, %1, %14 : vector<32x16xi32>
    %c0 = arith.constant 0 : index
    %c0_2 = arith.constant 0 : index
    %16 = vector.load %arg2[%c0, %c0_2] : memref<32x16xf32, #tpu.memory_space<vmem>>, vector<32x16xf32>
    %c0_3 = arith.constant 0 : index
    %17 = memref.load %arg0[%c0_3] : memref<2xf32, #tpu.memory_space<smem>>
    %cst = arith.constant 1.000000e+00 : f32
    %18 = arith.divf %cst, %17 : f32
    %c1 = arith.constant 1 : index
    %19 = memref.load %arg0[%c1] : memref<2xf32, #tpu.memory_space<smem>>
    %cst_4 = arith.constant 1.000000e+00 : f32
    %20 = arith.divf %cst_4, %19 : f32
    %cst_5 = arith.constant 0.000000e+00 : f32
    %21 = vector.broadcast %cst_5 : f32 to vector<16x16xf32>
    %cst_6 = arith.constant 0.000000e+00 : f32
    %22 = vector.broadcast %cst_6 : f32 to vector<16x16xf32>
    %cst_7 = arith.constant 0.000000e+00 : f32
    %23 = vector.broadcast %cst_7 : f32 to vector<16x16xf32>
    %cst_8 = arith.constant 0.000000e+00 : f32
    %24 = vector.broadcast %cst_8 : f32 to vector<16x16xf32>
    %c1_i32 = arith.constant 1 : i32
    %25 = tpu.dynamic_rotate %16 by %c1_i32 dim 0 : vector<32x16xf32>, i32 -> vector<32x16xf32>
    %26 = arith.select %8, %16, %25 : vector<32x16xi1>, vector<32x16xf32>
    %c1_i32_9 = arith.constant 1 : i32
    %27 = tpu.dynamic_rotate %26 by %c1_i32_9 dim 1 : vector<32x16xf32>, i32 -> vector<32x16xf32>
    %28 = arith.select %13, %26, %27 : vector<32x16xi1>, vector<32x16xf32>
    %29 = arith.andi %8, %13 : vector<32x16xi1>
    %cst_10 = arith.constant 0.000000e+00 : f32
    %30 = vector.broadcast %cst_10 : f32 to vector<32x16xf32>
    %31 = arith.select %29, %30, %28 : vector<32x16xi1>, vector<32x16xf32>
    %32 = vector.extract_strided_slice %31 {offsets = [0, 0], sizes = [16, 16], strides = [1, 1]} : vector<32x16xf32> to vector<16x16xf32>
    %c0_11 = arith.constant 0 : index
    %33 = memref.load %arg1[%c0_11] : memref<36xf32, #tpu.memory_space<smem>>
    %34 = vector.broadcast %33 : f32 to vector<16x16xf32>
    %35 = arith.mulf %34, %32 : vector<16x16xf32>
    %36 = arith.addf %21, %35 : vector<16x16xf32>
    %37 = arith.addf %23, %35 : vector<16x16xf32>
    %c18 = arith.constant 18 : index
    %38 = memref.load %arg1[%c18] : memref<36xf32, #tpu.memory_space<smem>>
    %39 = vector.broadcast %38 : f32 to vector<16x16xf32>
    %40 = arith.mulf %39, %32 : vector<16x16xf32>
    %41 = arith.addf %22, %40 : vector<16x16xf32>
    %42 = vector.extract_strided_slice %31 {offsets = [16, 0], sizes = [16, 16], strides = [1, 1]} : vector<32x16xf32> to vector<16x16xf32>
    %c9 = arith.constant 9 : index
    %43 = memref.load %arg1[%c9] : memref<36xf32, #tpu.memory_space<smem>>
    %44 = vector.broadcast %43 : f32 to vector<16x16xf32>
    %45 = arith.mulf %44, %42 : vector<16x16xf32>
    %46 = arith.addf %36, %45 : vector<16x16xf32>
    %c27 = arith.constant 27 : index
    %47 = memref.load %arg1[%c27] : memref<36xf32, #tpu.memory_space<smem>>
    %48 = vector.broadcast %47 : f32 to vector<16x16xf32>
    %49 = arith.mulf %48, %42 : vector<16x16xf32>
    %50 = arith.addf %41, %49 : vector<16x16xf32>
    %51 = arith.addf %24, %49 : vector<16x16xf32>
    %c1_i32_12 = arith.constant 1 : i32
    %52 = tpu.dynamic_rotate %16 by %c1_i32_12 dim 0 : vector<32x16xf32>, i32 -> vector<32x16xf32>
    %53 = arith.select %8, %16, %52 : vector<32x16xi1>, vector<32x16xf32>
    %54 = vector.extract_strided_slice %53 {offsets = [0, 0], sizes = [16, 16], strides = [1, 1]} : vector<32x16xf32> to vector<16x16xf32>
    %c1_13 = arith.constant 1 : index
    %55 = memref.load %arg1[%c1_13] : memref<36xf32, #tpu.memory_space<smem>>
    %56 = vector.broadcast %55 : f32 to vector<16x16xf32>
    %57 = arith.mulf %56, %54 : vector<16x16xf32>
    %58 = arith.addf %46, %57 : vector<16x16xf32>
    %59 = arith.addf %37, %57 : vector<16x16xf32>
    %c19 = arith.constant 19 : index
    %60 = memref.load %arg1[%c19] : memref<36xf32, #tpu.memory_space<smem>>
    %61 = vector.broadcast %60 : f32 to vector<16x16xf32>
    %62 = arith.mulf %61, %54 : vector<16x16xf32>
    %63 = arith.addf %50, %62 : vector<16x16xf32>
    %64 = vector.extract_strided_slice %53 {offsets = [16, 0], sizes = [16, 16], strides = [1, 1]} : vector<32x16xf32> to vector<16x16xf32>
    %c10 = arith.constant 10 : index
    %65 = memref.load %arg1[%c10] : memref<36xf32, #tpu.memory_space<smem>>
    %66 = vector.broadcast %65 : f32 to vector<16x16xf32>
    %67 = arith.mulf %66, %64 : vector<16x16xf32>
    %68 = arith.addf %58, %67 : vector<16x16xf32>
    %c28 = arith.constant 28 : index
    %69 = memref.load %arg1[%c28] : memref<36xf32, #tpu.memory_space<smem>>
    %70 = vector.broadcast %69 : f32 to vector<16x16xf32>
    %71 = arith.mulf %70, %64 : vector<16x16xf32>
    %72 = arith.addf %63, %71 : vector<16x16xf32>
    %73 = arith.addf %51, %71 : vector<16x16xf32>
    %c1_i32_14 = arith.constant 1 : i32
    %74 = tpu.dynamic_rotate %16 by %c1_i32_14 dim 0 : vector<32x16xf32>, i32 -> vector<32x16xf32>
    %75 = arith.select %8, %16, %74 : vector<32x16xi1>, vector<32x16xf32>
    %c15_i32_15 = arith.constant 15 : i32
    %76 = tpu.dynamic_rotate %75 by %c15_i32_15 dim 1 : vector<32x16xf32>, i32 -> vector<32x16xf32>
    %77 = arith.select %15, %75, %76 : vector<32x16xi1>, vector<32x16xf32>
    %78 = arith.andi %8, %15 : vector<32x16xi1>
    %cst_16 = arith.constant 0.000000e+00 : f32
    %79 = vector.broadcast %cst_16 : f32 to vector<32x16xf32>
    %80 = arith.select %78, %79, %77 : vector<32x16xi1>, vector<32x16xf32>
    %81 = vector.extract_strided_slice %80 {offsets = [0, 0], sizes = [16, 16], strides = [1, 1]} : vector<32x16xf32> to vector<16x16xf32>
    %c2 = arith.constant 2 : index
    %82 = memref.load %arg1[%c2] : memref<36xf32, #tpu.memory_space<smem>>
    %83 = vector.broadcast %82 : f32 to vector<16x16xf32>
    %84 = arith.mulf %83, %81 : vector<16x16xf32>
    %85 = arith.addf %68, %84 : vector<16x16xf32>
    %86 = arith.addf %59, %84 : vector<16x16xf32>
    %c20 = arith.constant 20 : index
    %87 = memref.load %arg1[%c20] : memref<36xf32, #tpu.memory_space<smem>>
    %88 = vector.broadcast %87 : f32 to vector<16x16xf32>
    %89 = arith.mulf %88, %81 : vector<16x16xf32>
    %90 = arith.addf %72, %89 : vector<16x16xf32>
    %91 = vector.extract_strided_slice %80 {offsets = [16, 0], sizes = [16, 16], strides = [1, 1]} : vector<32x16xf32> to vector<16x16xf32>
    %c11 = arith.constant 11 : index
    %92 = memref.load %arg1[%c11] : memref<36xf32, #tpu.memory_space<smem>>
    %93 = vector.broadcast %92 : f32 to vector<16x16xf32>
    %94 = arith.mulf %93, %91 : vector<16x16xf32>
    %95 = arith.addf %85, %94 : vector<16x16xf32>
    %c29 = arith.constant 29 : index
    %96 = memref.load %arg1[%c29] : memref<36xf32, #tpu.memory_space<smem>>
    %97 = vector.broadcast %96 : f32 to vector<16x16xf32>
    %98 = arith.mulf %97, %91 : vector<16x16xf32>
    %99 = arith.addf %90, %98 : vector<16x16xf32>
    %100 = arith.addf %73, %98 : vector<16x16xf32>
    %c1_i32_17 = arith.constant 1 : i32
    %101 = tpu.dynamic_rotate %16 by %c1_i32_17 dim 1 : vector<32x16xf32>, i32 -> vector<32x16xf32>
    %102 = arith.select %13, %16, %101 : vector<32x16xi1>, vector<32x16xf32>
    %103 = vector.extract_strided_slice %102 {offsets = [0, 0], sizes = [16, 16], strides = [1, 1]} : vector<32x16xf32> to vector<16x16xf32>
    %c3 = arith.constant 3 : index
    %104 = memref.load %arg1[%c3] : memref<36xf32, #tpu.memory_space<smem>>
    %105 = vector.broadcast %104 : f32 to vector<16x16xf32>
    %106 = arith.mulf %105, %103 : vector<16x16xf32>
    %107 = arith.addf %95, %106 : vector<16x16xf32>
    %108 = arith.addf %86, %106 : vector<16x16xf32>
    %c21 = arith.constant 21 : index
    %109 = memref.load %arg1[%c21] : memref<36xf32, #tpu.memory_space<smem>>
    %110 = vector.broadcast %109 : f32 to vector<16x16xf32>
    %111 = arith.mulf %110, %103 : vector<16x16xf32>
    %112 = arith.addf %99, %111 : vector<16x16xf32>
    %113 = vector.extract_strided_slice %102 {offsets = [16, 0], sizes = [16, 16], strides = [1, 1]} : vector<32x16xf32> to vector<16x16xf32>
    %c12 = arith.constant 12 : index
    %114 = memref.load %arg1[%c12] : memref<36xf32, #tpu.memory_space<smem>>
    %115 = vector.broadcast %114 : f32 to vector<16x16xf32>
    %116 = arith.mulf %115, %113 : vector<16x16xf32>
    %117 = arith.addf %107, %116 : vector<16x16xf32>
    %c30 = arith.constant 30 : index
    %118 = memref.load %arg1[%c30] : memref<36xf32, #tpu.memory_space<smem>>
    %119 = vector.broadcast %118 : f32 to vector<16x16xf32>
    %120 = arith.mulf %119, %113 : vector<16x16xf32>
    %121 = arith.addf %112, %120 : vector<16x16xf32>
    %122 = arith.addf %100, %120 : vector<16x16xf32>
    %123 = vector.extract_strided_slice %16 {offsets = [0, 0], sizes = [16, 16], strides = [1, 1]} : vector<32x16xf32> to vector<16x16xf32>
    %c22 = arith.constant 22 : index
    %124 = memref.load %arg1[%c22] : memref<36xf32, #tpu.memory_space<smem>>
    %125 = vector.broadcast %124 : f32 to vector<16x16xf32>
    %126 = arith.mulf %125, %123 : vector<16x16xf32>
    %127 = arith.addf %121, %126 : vector<16x16xf32>
    %128 = vector.extract_strided_slice %16 {offsets = [16, 0], sizes = [16, 16], strides = [1, 1]} : vector<32x16xf32> to vector<16x16xf32>
    %c13 = arith.constant 13 : index
    %129 = memref.load %arg1[%c13] : memref<36xf32, #tpu.memory_space<smem>>
    %130 = vector.broadcast %129 : f32 to vector<16x16xf32>
    %131 = arith.mulf %130, %128 : vector<16x16xf32>
    %132 = arith.addf %117, %131 : vector<16x16xf32>
    %c15_i32_18 = arith.constant 15 : i32
    %133 = tpu.dynamic_rotate %16 by %c15_i32_18 dim 1 : vector<32x16xf32>, i32 -> vector<32x16xf32>
    %134 = arith.select %15, %16, %133 : vector<32x16xi1>, vector<32x16xf32>
    %135 = vector.extract_strided_slice %134 {offsets = [0, 0], sizes = [16, 16], strides = [1, 1]} : vector<32x16xf32> to vector<16x16xf32>
    %c5 = arith.constant 5 : index
    %136 = memref.load %arg1[%c5] : memref<36xf32, #tpu.memory_space<smem>>
    %137 = vector.broadcast %136 : f32 to vector<16x16xf32>
    %138 = arith.mulf %137, %135 : vector<16x16xf32>
    %139 = arith.addf %132, %138 : vector<16x16xf32>
    %140 = arith.addf %108, %138 : vector<16x16xf32>
    %c23 = arith.constant 23 : index
    %141 = memref.load %arg1[%c23] : memref<36xf32, #tpu.memory_space<smem>>
    %142 = vector.broadcast %141 : f32 to vector<16x16xf32>
    %143 = arith.mulf %142, %135 : vector<16x16xf32>
    %144 = arith.addf %127, %143 : vector<16x16xf32>
    %145 = vector.extract_strided_slice %134 {offsets = [16, 0], sizes = [16, 16], strides = [1, 1]} : vector<32x16xf32> to vector<16x16xf32>
    %c14 = arith.constant 14 : index
    %146 = memref.load %arg1[%c14] : memref<36xf32, #tpu.memory_space<smem>>
    %147 = vector.broadcast %146 : f32 to vector<16x16xf32>
    %148 = arith.mulf %147, %145 : vector<16x16xf32>
    %149 = arith.addf %139, %148 : vector<16x16xf32>
    %c32 = arith.constant 32 : index
    %150 = memref.load %arg1[%c32] : memref<36xf32, #tpu.memory_space<smem>>
    %151 = vector.broadcast %150 : f32 to vector<16x16xf32>
    %152 = arith.mulf %151, %145 : vector<16x16xf32>
    %153 = arith.addf %144, %152 : vector<16x16xf32>
    %154 = arith.addf %122, %152 : vector<16x16xf32>
    %c31_i32_19 = arith.constant 31 : i32
    %155 = tpu.dynamic_rotate %16 by %c31_i32_19 dim 0 : vector<32x16xf32>, i32 -> vector<32x16xf32>
    %156 = arith.select %11, %16, %155 : vector<32x16xi1>, vector<32x16xf32>
    %c1_i32_20 = arith.constant 1 : i32
    %157 = tpu.dynamic_rotate %156 by %c1_i32_20 dim 1 : vector<32x16xf32>, i32 -> vector<32x16xf32>
    %158 = arith.select %13, %156, %157 : vector<32x16xi1>, vector<32x16xf32>
    %159 = arith.andi %11, %13 : vector<32x16xi1>
    %cst_21 = arith.constant 0.000000e+00 : f32
    %160 = vector.broadcast %cst_21 : f32 to vector<32x16xf32>
    %161 = arith.select %159, %160, %158 : vector<32x16xi1>, vector<32x16xf32>
    %162 = vector.extract_strided_slice %161 {offsets = [0, 0], sizes = [16, 16], strides = [1, 1]} : vector<32x16xf32> to vector<16x16xf32>
    %c6 = arith.constant 6 : index
    %163 = memref.load %arg1[%c6] : memref<36xf32, #tpu.memory_space<smem>>
    %164 = vector.broadcast %163 : f32 to vector<16x16xf32>
    %165 = arith.mulf %164, %162 : vector<16x16xf32>
    %166 = arith.addf %149, %165 : vector<16x16xf32>
    %167 = arith.addf %140, %165 : vector<16x16xf32>
    %c24 = arith.constant 24 : index
    %168 = memref.load %arg1[%c24] : memref<36xf32, #tpu.memory_space<smem>>
    %169 = vector.broadcast %168 : f32 to vector<16x16xf32>
    %170 = arith.mulf %169, %162 : vector<16x16xf32>
    %171 = arith.addf %153, %170 : vector<16x16xf32>
    %172 = vector.extract_strided_slice %161 {offsets = [16, 0], sizes = [16, 16], strides = [1, 1]} : vector<32x16xf32> to vector<16x16xf32>
    %c15 = arith.constant 15 : index
    %173 = memref.load %arg1[%c15] : memref<36xf32, #tpu.memory_space<smem>>
    %174 = vector.broadcast %173 : f32 to vector<16x16xf32>
    %175 = arith.mulf %174, %172 : vector<16x16xf32>
    %176 = arith.addf %166, %175 : vector<16x16xf32>
    %c33 = arith.constant 33 : index
    %177 = memref.load %arg1[%c33] : memref<36xf32, #tpu.memory_space<smem>>
    %178 = vector.broadcast %177 : f32 to vector<16x16xf32>
    %179 = arith.mulf %178, %172 : vector<16x16xf32>
    %180 = arith.addf %171, %179 : vector<16x16xf32>
    %181 = arith.addf %154, %179 : vector<16x16xf32>
    %c31_i32_22 = arith.constant 31 : i32
    %182 = tpu.dynamic_rotate %16 by %c31_i32_22 dim 0 : vector<32x16xf32>, i32 -> vector<32x16xf32>
    %183 = arith.select %11, %16, %182 : vector<32x16xi1>, vector<32x16xf32>
    %184 = vector.extract_strided_slice %183 {offsets = [0, 0], sizes = [16, 16], strides = [1, 1]} : vector<32x16xf32> to vector<16x16xf32>
    %c7 = arith.constant 7 : index
    %185 = memref.load %arg1[%c7] : memref<36xf32, #tpu.memory_space<smem>>
    %186 = vector.broadcast %185 : f32 to vector<16x16xf32>
    %187 = arith.mulf %186, %184 : vector<16x16xf32>
    %188 = arith.addf %176, %187 : vector<16x16xf32>
    %189 = arith.addf %167, %187 : vector<16x16xf32>
    %c25 = arith.constant 25 : index
    %190 = memref.load %arg1[%c25] : memref<36xf32, #tpu.memory_space<smem>>
    %191 = vector.broadcast %190 : f32 to vector<16x16xf32>
    %192 = arith.mulf %191, %184 : vector<16x16xf32>
    %193 = arith.addf %180, %192 : vector<16x16xf32>
    %194 = vector.extract_strided_slice %183 {offsets = [16, 0], sizes = [16, 16], strides = [1, 1]} : vector<32x16xf32> to vector<16x16xf32>
    %c16 = arith.constant 16 : index
    %195 = memref.load %arg1[%c16] : memref<36xf32, #tpu.memory_space<smem>>
    %196 = vector.broadcast %195 : f32 to vector<16x16xf32>
    %197 = arith.mulf %196, %194 : vector<16x16xf32>
    %198 = arith.addf %188, %197 : vector<16x16xf32>
    %c34 = arith.constant 34 : index
    %199 = memref.load %arg1[%c34] : memref<36xf32, #tpu.memory_space<smem>>
    %200 = vector.broadcast %199 : f32 to vector<16x16xf32>
    %201 = arith.mulf %200, %194 : vector<16x16xf32>
    %202 = arith.addf %193, %201 : vector<16x16xf32>
    %203 = arith.addf %181, %201 : vector<16x16xf32>
    %c31_i32_23 = arith.constant 31 : i32
    %204 = tpu.dynamic_rotate %16 by %c31_i32_23 dim 0 : vector<32x16xf32>, i32 -> vector<32x16xf32>
    %205 = arith.select %11, %16, %204 : vector<32x16xi1>, vector<32x16xf32>
    %c15_i32_24 = arith.constant 15 : i32
    %206 = tpu.dynamic_rotate %205 by %c15_i32_24 dim 1 : vector<32x16xf32>, i32 -> vector<32x16xf32>
    %207 = arith.select %15, %205, %206 : vector<32x16xi1>, vector<32x16xf32>
    %208 = arith.andi %11, %15 : vector<32x16xi1>
    %cst_25 = arith.constant 0.000000e+00 : f32
    %209 = vector.broadcast %cst_25 : f32 to vector<32x16xf32>
    %210 = arith.select %208, %209, %207 : vector<32x16xi1>, vector<32x16xf32>
    %211 = vector.extract_strided_slice %210 {offsets = [0, 0], sizes = [16, 16], strides = [1, 1]} : vector<32x16xf32> to vector<16x16xf32>
    %c8 = arith.constant 8 : index
    %212 = memref.load %arg1[%c8] : memref<36xf32, #tpu.memory_space<smem>>
    %213 = vector.broadcast %212 : f32 to vector<16x16xf32>
    %214 = arith.mulf %213, %211 : vector<16x16xf32>
    %215 = arith.addf %198, %214 : vector<16x16xf32>
    %216 = arith.addf %189, %214 : vector<16x16xf32>
    %c26 = arith.constant 26 : index
    %217 = memref.load %arg1[%c26] : memref<36xf32, #tpu.memory_space<smem>>
    %218 = vector.broadcast %217 : f32 to vector<16x16xf32>
    %219 = arith.mulf %218, %211 : vector<16x16xf32>
    %220 = arith.addf %202, %219 : vector<16x16xf32>
    %221 = vector.extract_strided_slice %210 {offsets = [16, 0], sizes = [16, 16], strides = [1, 1]} : vector<32x16xf32> to vector<16x16xf32>
    %c17 = arith.constant 17 : index
    %222 = memref.load %arg1[%c17] : memref<36xf32, #tpu.memory_space<smem>>
    %223 = vector.broadcast %222 : f32 to vector<16x16xf32>
    %224 = arith.mulf %223, %221 : vector<16x16xf32>
    %225 = arith.addf %215, %224 : vector<16x16xf32>
    %c35 = arith.constant 35 : index
    %226 = memref.load %arg1[%c35] : memref<36xf32, #tpu.memory_space<smem>>
    %227 = vector.broadcast %226 : f32 to vector<16x16xf32>
    %228 = arith.mulf %227, %221 : vector<16x16xf32>
    %229 = arith.addf %220, %228 : vector<16x16xf32>
    %230 = arith.addf %203, %228 : vector<16x16xf32>
    %cst_26 = arith.constant 0.000000e+00 : f32
    %231 = vector.broadcast %cst_26 : f32 to vector<16x16xf32>
    %232 = arith.subf %225, %231 : vector<16x16xf32>
    %233 = tpu.iota {dimensions = array<i32: 0>} : vector<8x16xi32>
    %234 = tpu.iota {dimensions = array<i32: 1>} : vector<8x16xi32>
    %c2_i32 = arith.constant 2 : i32
    %235 = vector.broadcast %c2_i32 : i32 to vector<8x16xi32>
    %236 = arith.muli %235, %233 : vector<8x16xi32>
    %237 = arith.cmpi eq, %234, %236 : vector<8x16xi32>
    %c2_i32_27 = arith.constant 2 : i32
    %238 = vector.broadcast %c2_i32_27 : i32 to vector<8x16xi32>
    %239 = arith.muli %238, %233 : vector<8x16xi32>
    %c1_i32_28 = arith.constant 1 : i32
    %240 = vector.broadcast %c1_i32_28 : i32 to vector<8x16xi32>
    %241 = arith.addi %239, %240 : vector<8x16xi32>
    %242 = arith.cmpi eq, %234, %241 : vector<8x16xi32>
    %243 = arith.ori %237, %242 : vector<8x16xi1>
    %244 = arith.extui %243 : vector<8x16xi1> to vector<8x16xi32>
    %245 = arith.sitofp %244 : vector<8x16xi32> to vector<8x16xf32>
    %246 = tpu.iota {dimensions = array<i32: 0>} : vector<16x8xi32>
    %247 = tpu.iota {dimensions = array<i32: 1>} : vector<16x8xi32>
    %c2_i32_29 = arith.constant 2 : i32
    %248 = vector.broadcast %c2_i32_29 : i32 to vector<16x8xi32>
    %249 = arith.muli %248, %247 : vector<16x8xi32>
    %250 = arith.cmpi eq, %246, %249 : vector<16x8xi32>
    %c2_i32_30 = arith.constant 2 : i32
    %251 = vector.broadcast %c2_i32_30 : i32 to vector<16x8xi32>
    %252 = arith.muli %251, %247 : vector<16x8xi32>
    %c1_i32_31 = arith.constant 1 : i32
    %253 = vector.broadcast %c1_i32_31 : i32 to vector<16x8xi32>
    %254 = arith.addi %252, %253 : vector<16x8xi32>
    %255 = arith.cmpi eq, %246, %254 : vector<16x8xi32>
    %256 = arith.ori %250, %255 : vector<16x8xi1>
    %257 = arith.extui %256 : vector<16x8xi1> to vector<16x8xi32>
    %258 = arith.sitofp %257 : vector<16x8xi32> to vector<16x8xf32>
    %cst_32 = arith.constant dense<0.000000e+00> : vector<16x8xf32>
    %259 = tpu.matmul %232, %258, %cst_32 {dimension_numbers = #tpu.dot_dimension_numbers<[1], [0], [0], [1], [0, 0, 1, 1], [], []>} : vector<16x16xf32>, vector<16x8xf32>, vector<16x8xf32> -> vector<16x8xf32>
    %cst_33 = arith.constant dense<0.000000e+00> : vector<8x8xf32>
    %260 = tpu.matmul %245, %259, %cst_33 {dimension_numbers = #tpu.dot_dimension_numbers<[1], [0], [0], [1], [0, 0, 1, 1], [], []>} : vector<8x16xf32>, vector<16x8xf32>, vector<8x8xf32> -> vector<8x8xf32>
    %cst_34 = arith.constant 2.500000e-01 : f32
    %261 = vector.broadcast %cst_34 : f32 to vector<8x8xf32>
    %262 = arith.mulf %261, %260 : vector<8x8xf32>
    %263 = vector.broadcast %18 : f32 to vector<8x8xf32>
    %264 = arith.mulf %262, %263 : vector<8x8xf32>
    %265 = tpu.iota {dimensions = array<i32: 0>} : vector<16x8xi32>
    %266 = tpu.iota {dimensions = array<i32: 1>} : vector<16x8xi32>
    %c2_i32_35 = arith.constant 2 : i32
    %267 = vector.broadcast %c2_i32_35 : i32 to vector<16x8xi32>
    %268 = arith.muli %267, %266 : vector<16x8xi32>
    %269 = arith.cmpi eq, %265, %268 : vector<16x8xi32>
    %c2_i32_36 = arith.constant 2 : i32
    %270 = vector.broadcast %c2_i32_36 : i32 to vector<16x8xi32>
    %271 = arith.muli %270, %266 : vector<16x8xi32>
    %c1_i32_37 = arith.constant 1 : i32
    %272 = vector.broadcast %c1_i32_37 : i32 to vector<16x8xi32>
    %273 = arith.addi %271, %272 : vector<16x8xi32>
    %274 = arith.cmpi eq, %265, %273 : vector<16x8xi32>
    %275 = arith.ori %269, %274 : vector<16x8xi1>
    %276 = arith.extui %275 : vector<16x8xi1> to vector<16x8xi32>
    %277 = arith.sitofp %276 : vector<16x8xi32> to vector<16x8xf32>
    %278 = tpu.iota {dimensions = array<i32: 0>} : vector<8x16xi32>
    %279 = tpu.iota {dimensions = array<i32: 1>} : vector<8x16xi32>
    %c2_i32_38 = arith.constant 2 : i32
    %280 = vector.broadcast %c2_i32_38 : i32 to vector<8x16xi32>
    %281 = arith.muli %280, %278 : vector<8x16xi32>
    %282 = arith.cmpi eq, %279, %281 : vector<8x16xi32>
    %c2_i32_39 = arith.constant 2 : i32
    %283 = vector.broadcast %c2_i32_39 : i32 to vector<8x16xi32>
    %284 = arith.muli %283, %278 : vector<8x16xi32>
    %c1_i32_40 = arith.constant 1 : i32
    %285 = vector.broadcast %c1_i32_40 : i32 to vector<8x16xi32>
    %286 = arith.addi %284, %285 : vector<8x16xi32>
    %287 = arith.cmpi eq, %279, %286 : vector<8x16xi32>
    %288 = arith.ori %282, %287 : vector<8x16xi1>
    %289 = arith.extui %288 : vector<8x16xi1> to vector<8x16xi32>
    %290 = arith.sitofp %289 : vector<8x16xi32> to vector<8x16xf32>
    %cst_41 = arith.constant dense<0.000000e+00> : vector<8x16xf32>
    %291 = tpu.matmul %264, %290, %cst_41 {dimension_numbers = #tpu.dot_dimension_numbers<[1], [0], [0], [1], [0, 0, 1, 1], [], []>} : vector<8x8xf32>, vector<8x16xf32>, vector<8x16xf32> -> vector<8x16xf32>
    %cst_42 = arith.constant dense<0.000000e+00> : vector<16x16xf32>
    %292 = tpu.matmul %277, %291, %cst_42 {dimension_numbers = #tpu.dot_dimension_numbers<[1], [0], [0], [1], [0, 0, 1, 1], [], []>} : vector<16x8xf32>, vector<8x16xf32>, vector<16x16xf32> -> vector<16x16xf32>
    %293 = arith.subf %225, %216 : vector<16x16xf32>
    %cst_43 = arith.constant 0.000000e+00 : f32
    %294 = arith.mulf %cst_43, %18 : f32
    %295 = vector.broadcast %294 : f32 to vector<16x16xf32>
    %296 = arith.subf %295, %292 : vector<16x16xf32>
    %297 = vector.broadcast %18 : f32 to vector<16x16xf32>
    %298 = arith.mulf %293, %297 : vector<16x16xf32>
    %299 = arith.subf %296, %298 : vector<16x16xf32>
    %cst_44 = arith.constant 0.000000e+00 : f32
    %300 = vector.broadcast %cst_44 : f32 to vector<16x16xf32>
    %301 = arith.subf %229, %300 : vector<16x16xf32>
    %302 = tpu.iota {dimensions = array<i32: 0>} : vector<8x16xi32>
    %303 = tpu.iota {dimensions = array<i32: 1>} : vector<8x16xi32>
    %c2_i32_45 = arith.constant 2 : i32
    %304 = vector.broadcast %c2_i32_45 : i32 to vector<8x16xi32>
    %305 = arith.muli %304, %302 : vector<8x16xi32>
    %306 = arith.cmpi eq, %303, %305 : vector<8x16xi32>
    %c2_i32_46 = arith.constant 2 : i32
    %307 = vector.broadcast %c2_i32_46 : i32 to vector<8x16xi32>
    %308 = arith.muli %307, %302 : vector<8x16xi32>
    %c1_i32_47 = arith.constant 1 : i32
    %309 = vector.broadcast %c1_i32_47 : i32 to vector<8x16xi32>
    %310 = arith.addi %308, %309 : vector<8x16xi32>
    %311 = arith.cmpi eq, %303, %310 : vector<8x16xi32>
    %312 = arith.ori %306, %311 : vector<8x16xi1>
    %313 = arith.extui %312 : vector<8x16xi1> to vector<8x16xi32>
    %314 = arith.sitofp %313 : vector<8x16xi32> to vector<8x16xf32>
    %315 = tpu.iota {dimensions = array<i32: 0>} : vector<16x8xi32>
    %316 = tpu.iota {dimensions = array<i32: 1>} : vector<16x8xi32>
    %c2_i32_48 = arith.constant 2 : i32
    %317 = vector.broadcast %c2_i32_48 : i32 to vector<16x8xi32>
    %318 = arith.muli %317, %316 : vector<16x8xi32>
    %319 = arith.cmpi eq, %315, %318 : vector<16x8xi32>
    %c2_i32_49 = arith.constant 2 : i32
    %320 = vector.broadcast %c2_i32_49 : i32 to vector<16x8xi32>
    %321 = arith.muli %320, %316 : vector<16x8xi32>
    %c1_i32_50 = arith.constant 1 : i32
    %322 = vector.broadcast %c1_i32_50 : i32 to vector<16x8xi32>
    %323 = arith.addi %321, %322 : vector<16x8xi32>
    %324 = arith.cmpi eq, %315, %323 : vector<16x8xi32>
    %325 = arith.ori %319, %324 : vector<16x8xi1>
    %326 = arith.extui %325 : vector<16x8xi1> to vector<16x8xi32>
    %327 = arith.sitofp %326 : vector<16x8xi32> to vector<16x8xf32>
    %cst_51 = arith.constant dense<0.000000e+00> : vector<16x8xf32>
    %328 = tpu.matmul %301, %327, %cst_51 {dimension_numbers = #tpu.dot_dimension_numbers<[1], [0], [0], [1], [0, 0, 1, 1], [], []>} : vector<16x16xf32>, vector<16x8xf32>, vector<16x8xf32> -> vector<16x8xf32>
    %cst_52 = arith.constant dense<0.000000e+00> : vector<8x8xf32>
    %329 = tpu.matmul %314, %328, %cst_52 {dimension_numbers = #tpu.dot_dimension_numbers<[1], [0], [0], [1], [0, 0, 1, 1], [], []>} : vector<8x16xf32>, vector<16x8xf32>, vector<8x8xf32> -> vector<8x8xf32>
    %cst_53 = arith.constant 2.500000e-01 : f32
    %330 = vector.broadcast %cst_53 : f32 to vector<8x8xf32>
    %331 = arith.mulf %330, %329 : vector<8x8xf32>
    %332 = vector.broadcast %20 : f32 to vector<8x8xf32>
    %333 = arith.mulf %331, %332 : vector<8x8xf32>
    %334 = tpu.iota {dimensions = array<i32: 0>} : vector<16x8xi32>
    %335 = tpu.iota {dimensions = array<i32: 1>} : vector<16x8xi32>
    %c2_i32_54 = arith.constant 2 : i32
    %336 = vector.broadcast %c2_i32_54 : i32 to vector<16x8xi32>
    %337 = arith.muli %336, %335 : vector<16x8xi32>
    %338 = arith.cmpi eq, %334, %337 : vector<16x8xi32>
    %c2_i32_55 = arith.constant 2 : i32
    %339 = vector.broadcast %c2_i32_55 : i32 to vector<16x8xi32>
    %340 = arith.muli %339, %335 : vector<16x8xi32>
    %c1_i32_56 = arith.constant 1 : i32
    %341 = vector.broadcast %c1_i32_56 : i32 to vector<16x8xi32>
    %342 = arith.addi %340, %341 : vector<16x8xi32>
    %343 = arith.cmpi eq, %334, %342 : vector<16x8xi32>
    %344 = arith.ori %338, %343 : vector<16x8xi1>
    %345 = arith.extui %344 : vector<16x8xi1> to vector<16x8xi32>
    %346 = arith.sitofp %345 : vector<16x8xi32> to vector<16x8xf32>
    %347 = tpu.iota {dimensions = array<i32: 0>} : vector<8x16xi32>
    %348 = tpu.iota {dimensions = array<i32: 1>} : vector<8x16xi32>
    %c2_i32_57 = arith.constant 2 : i32
    %349 = vector.broadcast %c2_i32_57 : i32 to vector<8x16xi32>
    %350 = arith.muli %349, %347 : vector<8x16xi32>
    %351 = arith.cmpi eq, %348, %350 : vector<8x16xi32>
    %c2_i32_58 = arith.constant 2 : i32
    %352 = vector.broadcast %c2_i32_58 : i32 to vector<8x16xi32>
    %353 = arith.muli %352, %347 : vector<8x16xi32>
    %c1_i32_59 = arith.constant 1 : i32
    %354 = vector.broadcast %c1_i32_59 : i32 to vector<8x16xi32>
    %355 = arith.addi %353, %354 : vector<8x16xi32>
    %356 = arith.cmpi eq, %348, %355 : vector<8x16xi32>
    %357 = arith.ori %351, %356 : vector<8x16xi1>
    %358 = arith.extui %357 : vector<8x16xi1> to vector<8x16xi32>
    %359 = arith.sitofp %358 : vector<8x16xi32> to vector<8x16xf32>
    %cst_60 = arith.constant dense<0.000000e+00> : vector<8x16xf32>
    %360 = tpu.matmul %333, %359, %cst_60 {dimension_numbers = #tpu.dot_dimension_numbers<[1], [0], [0], [1], [0, 0, 1, 1], [], []>} : vector<8x8xf32>, vector<8x16xf32>, vector<8x16xf32> -> vector<8x16xf32>
    %cst_61 = arith.constant dense<0.000000e+00> : vector<16x16xf32>
    %361 = tpu.matmul %346, %360, %cst_61 {dimension_numbers = #tpu.dot_dimension_numbers<[1], [0], [0], [1], [0, 0, 1, 1], [], []>} : vector<16x8xf32>, vector<8x16xf32>, vector<16x16xf32> -> vector<16x16xf32>
    %362 = arith.subf %229, %230 : vector<16x16xf32>
    %cst_62 = arith.constant 0.000000e+00 : f32
    %363 = arith.mulf %cst_62, %20 : f32
    %364 = vector.broadcast %363 : f32 to vector<16x16xf32>
    %365 = arith.subf %364, %361 : vector<16x16xf32>
    %366 = vector.broadcast %20 : f32 to vector<16x16xf32>
    %367 = arith.mulf %362, %366 : vector<16x16xf32>
    %368 = arith.subf %365, %367 : vector<16x16xf32>
    %369 = tpu.concatenate %299, %368 in 0 : vector<16x16xf32>, vector<16x16xf32> -> vector<32x16xf32>
    %370 = tpu.concatenate %216, %230 in 0 : vector<16x16xf32>, vector<16x16xf32> -> vector<32x16xf32>
    %371 = vector.broadcast %18 : f32 to vector<16x16xf32>
    %372 = vector.broadcast %20 : f32 to vector<16x16xf32>
    %373 = tpu.concatenate %371, %372 in 0 : vector<16x16xf32>, vector<16x16xf32> -> vector<32x16xf32>
    %c0_63 = arith.constant 0 : index
    %374 = memref.load %arg1[%c0_63] : memref<36xf32, #tpu.memory_space<smem>>
    %375 = vector.broadcast %374 : f32 to vector<16x16xf32>
    %c27_64 = arith.constant 27 : index
    %376 = memref.load %arg1[%c27_64] : memref<36xf32, #tpu.memory_space<smem>>
    %377 = vector.broadcast %376 : f32 to vector<16x16xf32>
    %378 = tpu.concatenate %375, %377 in 0 : vector<16x16xf32>, vector<16x16xf32> -> vector<32x16xf32>
    %c1_65 = arith.constant 1 : index
    %379 = memref.load %arg1[%c1_65] : memref<36xf32, #tpu.memory_space<smem>>
    %380 = vector.broadcast %379 : f32 to vector<16x16xf32>
    %c28_66 = arith.constant 28 : index
    %381 = memref.load %arg1[%c28_66] : memref<36xf32, #tpu.memory_space<smem>>
    %382 = vector.broadcast %381 : f32 to vector<16x16xf32>
    %383 = tpu.concatenate %380, %382 in 0 : vector<16x16xf32>, vector<16x16xf32> -> vector<32x16xf32>
    %c2_67 = arith.constant 2 : index
    %384 = memref.load %arg1[%c2_67] : memref<36xf32, #tpu.memory_space<smem>>
    %385 = vector.broadcast %384 : f32 to vector<16x16xf32>
    %c29_68 = arith.constant 29 : index
    %386 = memref.load %arg1[%c29_68] : memref<36xf32, #tpu.memory_space<smem>>
    %387 = vector.broadcast %386 : f32 to vector<16x16xf32>
    %388 = tpu.concatenate %385, %387 in 0 : vector<16x16xf32>, vector<16x16xf32> -> vector<32x16xf32>
    %c3_69 = arith.constant 3 : index
    %389 = memref.load %arg1[%c3_69] : memref<36xf32, #tpu.memory_space<smem>>
    %390 = vector.broadcast %389 : f32 to vector<16x16xf32>
    %c30_70 = arith.constant 30 : index
    %391 = memref.load %arg1[%c30_70] : memref<36xf32, #tpu.memory_space<smem>>
    %392 = vector.broadcast %391 : f32 to vector<16x16xf32>
    %393 = tpu.concatenate %390, %392 in 0 : vector<16x16xf32>, vector<16x16xf32> -> vector<32x16xf32>
    %c5_71 = arith.constant 5 : index
    %394 = memref.load %arg1[%c5_71] : memref<36xf32, #tpu.memory_space<smem>>
    %395 = vector.broadcast %394 : f32 to vector<16x16xf32>
    %c32_72 = arith.constant 32 : index
    %396 = memref.load %arg1[%c32_72] : memref<36xf32, #tpu.memory_space<smem>>
    %397 = vector.broadcast %396 : f32 to vector<16x16xf32>
    %398 = tpu.concatenate %395, %397 in 0 : vector<16x16xf32>, vector<16x16xf32> -> vector<32x16xf32>
    %c6_73 = arith.constant 6 : index
    %399 = memref.load %arg1[%c6_73] : memref<36xf32, #tpu.memory_space<smem>>
    %400 = vector.broadcast %399 : f32 to vector<16x16xf32>
    %c33_74 = arith.constant 33 : index
    %401 = memref.load %arg1[%c33_74] : memref<36xf32, #tpu.memory_space<smem>>
    %402 = vector.broadcast %401 : f32 to vector<16x16xf32>
    %403 = tpu.concatenate %400, %402 in 0 : vector<16x16xf32>, vector<16x16xf32> -> vector<32x16xf32>
    %c7_75 = arith.constant 7 : index
    %404 = memref.load %arg1[%c7_75] : memref<36xf32, #tpu.memory_space<smem>>
    %405 = vector.broadcast %404 : f32 to vector<16x16xf32>
    %c34_76 = arith.constant 34 : index
    %406 = memref.load %arg1[%c34_76] : memref<36xf32, #tpu.memory_space<smem>>
    %407 = vector.broadcast %406 : f32 to vector<16x16xf32>
    %408 = tpu.concatenate %405, %407 in 0 : vector<16x16xf32>, vector<16x16xf32> -> vector<32x16xf32>
    %c8_77 = arith.constant 8 : index
    %409 = memref.load %arg1[%c8_77] : memref<36xf32, #tpu.memory_space<smem>>
    %410 = vector.broadcast %409 : f32 to vector<16x16xf32>
    %c35_78 = arith.constant 35 : index
    %411 = memref.load %arg1[%c35_78] : memref<36xf32, #tpu.memory_space<smem>>
    %412 = vector.broadcast %411 : f32 to vector<16x16xf32>
    %413 = tpu.concatenate %410, %412 in 0 : vector<16x16xf32>, vector<16x16xf32> -> vector<32x16xf32>
    %414 = arith.addf %16, %369 : vector<32x16xf32>
    %415 = arith.mulf %370, %373 : vector<32x16xf32>
    %416 = arith.subf %414, %415 : vector<32x16xf32>
    %cst_79 = arith.constant 0.000000e+00 : f32
    %417 = vector.broadcast %cst_79 : f32 to vector<32x16xf32>
    %c1_i32_80 = arith.constant 1 : i32
    %418 = tpu.dynamic_rotate %416 by %c1_i32_80 dim 0 : vector<32x16xf32>, i32 -> vector<32x16xf32>
    %419 = arith.select %8, %416, %418 : vector<32x16xi1>, vector<32x16xf32>
    %c1_i32_81 = arith.constant 1 : i32
    %420 = tpu.dynamic_rotate %419 by %c1_i32_81 dim 1 : vector<32x16xf32>, i32 -> vector<32x16xf32>
    %421 = arith.select %13, %419, %420 : vector<32x16xi1>, vector<32x16xf32>
    %422 = arith.andi %8, %13 : vector<32x16xi1>
    %cst_82 = arith.constant 0.000000e+00 : f32
    %423 = vector.broadcast %cst_82 : f32 to vector<32x16xf32>
    %424 = arith.select %422, %423, %421 : vector<32x16xi1>, vector<32x16xf32>
    %425 = arith.mulf %378, %424 : vector<32x16xf32>
    %426 = arith.addf %417, %425 : vector<32x16xf32>
    %c1_i32_83 = arith.constant 1 : i32
    %427 = tpu.dynamic_rotate %416 by %c1_i32_83 dim 0 : vector<32x16xf32>, i32 -> vector<32x16xf32>
    %428 = arith.select %8, %416, %427 : vector<32x16xi1>, vector<32x16xf32>
    %429 = arith.mulf %383, %428 : vector<32x16xf32>
    %430 = arith.addf %426, %429 : vector<32x16xf32>
    %c1_i32_84 = arith.constant 1 : i32
    %431 = tpu.dynamic_rotate %416 by %c1_i32_84 dim 0 : vector<32x16xf32>, i32 -> vector<32x16xf32>
    %432 = arith.select %8, %416, %431 : vector<32x16xi1>, vector<32x16xf32>
    %c15_i32_85 = arith.constant 15 : i32
    %433 = tpu.dynamic_rotate %432 by %c15_i32_85 dim 1 : vector<32x16xf32>, i32 -> vector<32x16xf32>
    %434 = arith.select %15, %432, %433 : vector<32x16xi1>, vector<32x16xf32>
    %435 = arith.andi %8, %15 : vector<32x16xi1>
    %cst_86 = arith.constant 0.000000e+00 : f32
    %436 = vector.broadcast %cst_86 : f32 to vector<32x16xf32>
    %437 = arith.select %435, %436, %434 : vector<32x16xi1>, vector<32x16xf32>
    %438 = arith.mulf %388, %437 : vector<32x16xf32>
    %439 = arith.addf %430, %438 : vector<32x16xf32>
    %c1_i32_87 = arith.constant 1 : i32
    %440 = tpu.dynamic_rotate %416 by %c1_i32_87 dim 1 : vector<32x16xf32>, i32 -> vector<32x16xf32>
    %441 = arith.select %13, %416, %440 : vector<32x16xi1>, vector<32x16xf32>
    %442 = arith.mulf %393, %441 : vector<32x16xf32>
    %443 = arith.addf %439, %442 : vector<32x16xf32>
    %c15_i32_88 = arith.constant 15 : i32
    %444 = tpu.dynamic_rotate %416 by %c15_i32_88 dim 1 : vector<32x16xf32>, i32 -> vector<32x16xf32>
    %445 = arith.select %15, %416, %444 : vector<32x16xi1>, vector<32x16xf32>
    %446 = arith.mulf %398, %445 : vector<32x16xf32>
    %447 = arith.addf %443, %446 : vector<32x16xf32>
    %c31_i32_89 = arith.constant 31 : i32
    %448 = tpu.dynamic_rotate %416 by %c31_i32_89 dim 0 : vector<32x16xf32>, i32 -> vector<32x16xf32>
    %449 = arith.select %11, %416, %448 : vector<32x16xi1>, vector<32x16xf32>
    %c1_i32_90 = arith.constant 1 : i32
    %450 = tpu.dynamic_rotate %449 by %c1_i32_90 dim 1 : vector<32x16xf32>, i32 -> vector<32x16xf32>
    %451 = arith.select %13, %449, %450 : vector<32x16xi1>, vector<32x16xf32>
    %452 = arith.andi %11, %13 : vector<32x16xi1>
    %cst_91 = arith.constant 0.000000e+00 : f32
    %453 = vector.broadcast %cst_91 : f32 to vector<32x16xf32>
    %454 = arith.select %452, %453, %451 : vector<32x16xi1>, vector<32x16xf32>
    %455 = arith.mulf %403, %454 : vector<32x16xf32>
    %456 = arith.addf %447, %455 : vector<32x16xf32>
    %c31_i32_92 = arith.constant 31 : i32
    %457 = tpu.dynamic_rotate %416 by %c31_i32_92 dim 0 : vector<32x16xf32>, i32 -> vector<32x16xf32>
    %458 = arith.select %11, %416, %457 : vector<32x16xi1>, vector<32x16xf32>
    %459 = arith.mulf %408, %458 : vector<32x16xf32>
    %460 = arith.addf %456, %459 : vector<32x16xf32>
    %c31_i32_93 = arith.constant 31 : i32
    %461 = tpu.dynamic_rotate %416 by %c31_i32_93 dim 0 : vector<32x16xf32>, i32 -> vector<32x16xf32>
    %462 = arith.select %11, %416, %461 : vector<32x16xi1>, vector<32x16xf32>
    %c15_i32_94 = arith.constant 15 : i32
    %463 = tpu.dynamic_rotate %462 by %c15_i32_94 dim 1 : vector<32x16xf32>, i32 -> vector<32x16xf32>
    %464 = arith.select %15, %462, %463 : vector<32x16xi1>, vector<32x16xf32>
    %465 = arith.andi %11, %15 : vector<32x16xi1>
    %cst_95 = arith.constant 0.000000e+00 : f32
    %466 = vector.broadcast %cst_95 : f32 to vector<32x16xf32>
    %467 = arith.select %465, %466, %464 : vector<32x16xi1>, vector<32x16xf32>
    %468 = arith.mulf %413, %467 : vector<32x16xf32>
    %469 = arith.addf %460, %468 : vector<32x16xf32>
    %470 = arith.addf %416, %369 : vector<32x16xf32>
    %471 = arith.mulf %469, %373 : vector<32x16xf32>
    %472 = arith.subf %470, %471 : vector<32x16xf32>
    %cst_96 = arith.constant 0.000000e+00 : f32
    %473 = vector.broadcast %cst_96 : f32 to vector<32x16xf32>
    %c1_i32_97 = arith.constant 1 : i32
    %474 = tpu.dynamic_rotate %472 by %c1_i32_97 dim 0 : vector<32x16xf32>, i32 -> vector<32x16xf32>
    %475 = arith.select %8, %472, %474 : vector<32x16xi1>, vector<32x16xf32>
    %c1_i32_98 = arith.constant 1 : i32
    %476 = tpu.dynamic_rotate %475 by %c1_i32_98 dim 1 : vector<32x16xf32>, i32 -> vector<32x16xf32>
    %477 = arith.select %13, %475, %476 : vector<32x16xi1>, vector<32x16xf32>
    %478 = arith.andi %8, %13 : vector<32x16xi1>
    %cst_99 = arith.constant 0.000000e+00 : f32
    %479 = vector.broadcast %cst_99 : f32 to vector<32x16xf32>
    %480 = arith.select %478, %479, %477 : vector<32x16xi1>, vector<32x16xf32>
    %481 = arith.mulf %378, %480 : vector<32x16xf32>
    %482 = arith.addf %473, %481 : vector<32x16xf32>
    %c1_i32_100 = arith.constant 1 : i32
    %483 = tpu.dynamic_rotate %472 by %c1_i32_100 dim 0 : vector<32x16xf32>, i32 -> vector<32x16xf32>
    %484 = arith.select %8, %472, %483 : vector<32x16xi1>, vector<32x16xf32>
    %485 = arith.mulf %383, %484 : vector<32x16xf32>
    %486 = arith.addf %482, %485 : vector<32x16xf32>
    %c1_i32_101 = arith.constant 1 : i32
    %487 = tpu.dynamic_rotate %472 by %c1_i32_101 dim 0 : vector<32x16xf32>, i32 -> vector<32x16xf32>
    %488 = arith.select %8, %472, %487 : vector<32x16xi1>, vector<32x16xf32>
    %c15_i32_102 = arith.constant 15 : i32
    %489 = tpu.dynamic_rotate %488 by %c15_i32_102 dim 1 : vector<32x16xf32>, i32 -> vector<32x16xf32>
    %490 = arith.select %15, %488, %489 : vector<32x16xi1>, vector<32x16xf32>
    %491 = arith.andi %8, %15 : vector<32x16xi1>
    %cst_103 = arith.constant 0.000000e+00 : f32
    %492 = vector.broadcast %cst_103 : f32 to vector<32x16xf32>
    %493 = arith.select %491, %492, %490 : vector<32x16xi1>, vector<32x16xf32>
    %494 = arith.mulf %388, %493 : vector<32x16xf32>
    %495 = arith.addf %486, %494 : vector<32x16xf32>
    %c1_i32_104 = arith.constant 1 : i32
    %496 = tpu.dynamic_rotate %472 by %c1_i32_104 dim 1 : vector<32x16xf32>, i32 -> vector<32x16xf32>
    %497 = arith.select %13, %472, %496 : vector<32x16xi1>, vector<32x16xf32>
    %498 = arith.mulf %393, %497 : vector<32x16xf32>
    %499 = arith.addf %495, %498 : vector<32x16xf32>
    %c15_i32_105 = arith.constant 15 : i32
    %500 = tpu.dynamic_rotate %472 by %c15_i32_105 dim 1 : vector<32x16xf32>, i32 -> vector<32x16xf32>
    %501 = arith.select %15, %472, %500 : vector<32x16xi1>, vector<32x16xf32>
    %502 = arith.mulf %398, %501 : vector<32x16xf32>
    %503 = arith.addf %499, %502 : vector<32x16xf32>
    %c31_i32_106 = arith.constant 31 : i32
    %504 = tpu.dynamic_rotate %472 by %c31_i32_106 dim 0 : vector<32x16xf32>, i32 -> vector<32x16xf32>
    %505 = arith.select %11, %472, %504 : vector<32x16xi1>, vector<32x16xf32>
    %c1_i32_107 = arith.constant 1 : i32
    %506 = tpu.dynamic_rotate %505 by %c1_i32_107 dim 1 : vector<32x16xf32>, i32 -> vector<32x16xf32>
    %507 = arith.select %13, %505, %506 : vector<32x16xi1>, vector<32x16xf32>
    %508 = arith.andi %11, %13 : vector<32x16xi1>
    %cst_108 = arith.constant 0.000000e+00 : f32
    %509 = vector.broadcast %cst_108 : f32 to vector<32x16xf32>
    %510 = arith.select %508, %509, %507 : vector<32x16xi1>, vector<32x16xf32>
    %511 = arith.mulf %403, %510 : vector<32x16xf32>
    %512 = arith.addf %503, %511 : vector<32x16xf32>
    %c31_i32_109 = arith.constant 31 : i32
    %513 = tpu.dynamic_rotate %472 by %c31_i32_109 dim 0 : vector<32x16xf32>, i32 -> vector<32x16xf32>
    %514 = arith.select %11, %472, %513 : vector<32x16xi1>, vector<32x16xf32>
    %515 = arith.mulf %408, %514 : vector<32x16xf32>
    %516 = arith.addf %512, %515 : vector<32x16xf32>
    %c31_i32_110 = arith.constant 31 : i32
    %517 = tpu.dynamic_rotate %472 by %c31_i32_110 dim 0 : vector<32x16xf32>, i32 -> vector<32x16xf32>
    %518 = arith.select %11, %472, %517 : vector<32x16xi1>, vector<32x16xf32>
    %c15_i32_111 = arith.constant 15 : i32
    %519 = tpu.dynamic_rotate %518 by %c15_i32_111 dim 1 : vector<32x16xf32>, i32 -> vector<32x16xf32>
    %520 = arith.select %15, %518, %519 : vector<32x16xi1>, vector<32x16xf32>
    %521 = arith.andi %11, %15 : vector<32x16xi1>
    %cst_112 = arith.constant 0.000000e+00 : f32
    %522 = vector.broadcast %cst_112 : f32 to vector<32x16xf32>
    %523 = arith.select %521, %522, %520 : vector<32x16xi1>, vector<32x16xf32>
    %524 = arith.mulf %413, %523 : vector<32x16xf32>
    %525 = arith.addf %516, %524 : vector<32x16xf32>
    %526 = arith.addf %472, %369 : vector<32x16xf32>
    %527 = arith.mulf %525, %373 : vector<32x16xf32>
    %528 = arith.subf %526, %527 : vector<32x16xf32>
    %cst_113 = arith.constant 0.000000e+00 : f32
    %529 = vector.broadcast %cst_113 : f32 to vector<32x16xf32>
    %c1_i32_114 = arith.constant 1 : i32
    %530 = tpu.dynamic_rotate %528 by %c1_i32_114 dim 0 : vector<32x16xf32>, i32 -> vector<32x16xf32>
    %531 = arith.select %8, %528, %530 : vector<32x16xi1>, vector<32x16xf32>
    %c1_i32_115 = arith.constant 1 : i32
    %532 = tpu.dynamic_rotate %531 by %c1_i32_115 dim 1 : vector<32x16xf32>, i32 -> vector<32x16xf32>
    %533 = arith.select %13, %531, %532 : vector<32x16xi1>, vector<32x16xf32>
    %534 = arith.andi %8, %13 : vector<32x16xi1>
    %cst_116 = arith.constant 0.000000e+00 : f32
    %535 = vector.broadcast %cst_116 : f32 to vector<32x16xf32>
    %536 = arith.select %534, %535, %533 : vector<32x16xi1>, vector<32x16xf32>
    %537 = arith.mulf %378, %536 : vector<32x16xf32>
    %538 = arith.addf %529, %537 : vector<32x16xf32>
    %c1_i32_117 = arith.constant 1 : i32
    %539 = tpu.dynamic_rotate %528 by %c1_i32_117 dim 0 : vector<32x16xf32>, i32 -> vector<32x16xf32>
    %540 = arith.select %8, %528, %539 : vector<32x16xi1>, vector<32x16xf32>
    %541 = arith.mulf %383, %540 : vector<32x16xf32>
    %542 = arith.addf %538, %541 : vector<32x16xf32>
    %c1_i32_118 = arith.constant 1 : i32
    %543 = tpu.dynamic_rotate %528 by %c1_i32_118 dim 0 : vector<32x16xf32>, i32 -> vector<32x16xf32>
    %544 = arith.select %8, %528, %543 : vector<32x16xi1>, vector<32x16xf32>
    %c15_i32_119 = arith.constant 15 : i32
    %545 = tpu.dynamic_rotate %544 by %c15_i32_119 dim 1 : vector<32x16xf32>, i32 -> vector<32x16xf32>
    %546 = arith.select %15, %544, %545 : vector<32x16xi1>, vector<32x16xf32>
    %547 = arith.andi %8, %15 : vector<32x16xi1>
    %cst_120 = arith.constant 0.000000e+00 : f32
    %548 = vector.broadcast %cst_120 : f32 to vector<32x16xf32>
    %549 = arith.select %547, %548, %546 : vector<32x16xi1>, vector<32x16xf32>
    %550 = arith.mulf %388, %549 : vector<32x16xf32>
    %551 = arith.addf %542, %550 : vector<32x16xf32>
    %c1_i32_121 = arith.constant 1 : i32
    %552 = tpu.dynamic_rotate %528 by %c1_i32_121 dim 1 : vector<32x16xf32>, i32 -> vector<32x16xf32>
    %553 = arith.select %13, %528, %552 : vector<32x16xi1>, vector<32x16xf32>
    %554 = arith.mulf %393, %553 : vector<32x16xf32>
    %555 = arith.addf %551, %554 : vector<32x16xf32>
    %c15_i32_122 = arith.constant 15 : i32
    %556 = tpu.dynamic_rotate %528 by %c15_i32_122 dim 1 : vector<32x16xf32>, i32 -> vector<32x16xf32>
    %557 = arith.select %15, %528, %556 : vector<32x16xi1>, vector<32x16xf32>
    %558 = arith.mulf %398, %557 : vector<32x16xf32>
    %559 = arith.addf %555, %558 : vector<32x16xf32>
    %c31_i32_123 = arith.constant 31 : i32
    %560 = tpu.dynamic_rotate %528 by %c31_i32_123 dim 0 : vector<32x16xf32>, i32 -> vector<32x16xf32>
    %561 = arith.select %11, %528, %560 : vector<32x16xi1>, vector<32x16xf32>
    %c1_i32_124 = arith.constant 1 : i32
    %562 = tpu.dynamic_rotate %561 by %c1_i32_124 dim 1 : vector<32x16xf32>, i32 -> vector<32x16xf32>
    %563 = arith.select %13, %561, %562 : vector<32x16xi1>, vector<32x16xf32>
    %564 = arith.andi %11, %13 : vector<32x16xi1>
    %cst_125 = arith.constant 0.000000e+00 : f32
    %565 = vector.broadcast %cst_125 : f32 to vector<32x16xf32>
    %566 = arith.select %564, %565, %563 : vector<32x16xi1>, vector<32x16xf32>
    %567 = arith.mulf %403, %566 : vector<32x16xf32>
    %568 = arith.addf %559, %567 : vector<32x16xf32>
    %c31_i32_126 = arith.constant 31 : i32
    %569 = tpu.dynamic_rotate %528 by %c31_i32_126 dim 0 : vector<32x16xf32>, i32 -> vector<32x16xf32>
    %570 = arith.select %11, %528, %569 : vector<32x16xi1>, vector<32x16xf32>
    %571 = arith.mulf %408, %570 : vector<32x16xf32>
    %572 = arith.addf %568, %571 : vector<32x16xf32>
    %c31_i32_127 = arith.constant 31 : i32
    %573 = tpu.dynamic_rotate %528 by %c31_i32_127 dim 0 : vector<32x16xf32>, i32 -> vector<32x16xf32>
    %574 = arith.select %11, %528, %573 : vector<32x16xi1>, vector<32x16xf32>
    %c15_i32_128 = arith.constant 15 : i32
    %575 = tpu.dynamic_rotate %574 by %c15_i32_128 dim 1 : vector<32x16xf32>, i32 -> vector<32x16xf32>
    %576 = arith.select %15, %574, %575 : vector<32x16xi1>, vector<32x16xf32>
    %577 = arith.andi %11, %15 : vector<32x16xi1>
    %cst_129 = arith.constant 0.000000e+00 : f32
    %578 = vector.broadcast %cst_129 : f32 to vector<32x16xf32>
    %579 = arith.select %577, %578, %576 : vector<32x16xi1>, vector<32x16xf32>
    %580 = arith.mulf %413, %579 : vector<32x16xf32>
    %581 = arith.addf %572, %580 : vector<32x16xf32>
    %582 = arith.addf %528, %369 : vector<32x16xf32>
    %583 = arith.mulf %581, %373 : vector<32x16xf32>
    %584 = arith.subf %582, %583 : vector<32x16xf32>
    %585 = vector.extract_strided_slice %584 {offsets = [0, 0], sizes = [16, 16], strides = [1, 1]} : vector<32x16xf32> to vector<16x16xf32>
    %586 = vector.shape_cast %585 : vector<16x16xf32> to vector<1x16x16xf32>
    %cst_130 = arith.constant dense<0x7F800000> : vector<1xf32>
    %587 = vector.multi_reduction <minimumf>, %586, %cst_130 [1, 2] : vector<1x16x16xf32> to vector<1xf32>
    %588 = vector.shape_cast %587 : vector<1xf32> to vector<1x1x1xf32>
    %589 = vector.extract %588[0, 0, 0] : f32 from vector<1x1x1xf32>
    %590 = vector.shape_cast %585 : vector<16x16xf32> to vector<1x16x16xf32>
    %cst_131 = arith.constant dense<0xFF800000> : vector<1xf32>
    %591 = vector.multi_reduction <maximumf>, %590, %cst_131 [1, 2] : vector<1x16x16xf32> to vector<1xf32>
    %592 = vector.shape_cast %591 : vector<1xf32> to vector<1x1x1xf32>
    %593 = vector.extract %592[0, 0, 0] : f32 from vector<1x1x1xf32>
    %594 = arith.subf %593, %589 : f32
    %cst_132 = arith.constant 0.000000e+00 : f32
    %595 = arith.cmpf oeq, %594, %cst_132 : f32
    %cst_133 = arith.constant 1.000000e+00 : f32
    %596 = arith.select %595, %cst_133, %594 : f32
    %cst_134 = arith.constant 1.000000e+00 : f32
    %597 = arith.divf %cst_134, %596 : f32
    %598 = vector.broadcast %589 : f32 to vector<16x16xf32>
    %599 = arith.subf %585, %598 : vector<16x16xf32>
    %600 = vector.broadcast %597 : f32 to vector<16x16xf32>
    %601 = arith.mulf %599, %600 : vector<16x16xf32>
    %602 = vector.extract_strided_slice %584 {offsets = [16, 0], sizes = [16, 16], strides = [1, 1]} : vector<32x16xf32> to vector<16x16xf32>
    %603 = vector.shape_cast %602 : vector<16x16xf32> to vector<1x16x16xf32>
    %cst_135 = arith.constant dense<0x7F800000> : vector<1xf32>
    %604 = vector.multi_reduction <minimumf>, %603, %cst_135 [1, 2] : vector<1x16x16xf32> to vector<1xf32>
    %605 = vector.shape_cast %604 : vector<1xf32> to vector<1x1x1xf32>
    %606 = vector.extract %605[0, 0, 0] : f32 from vector<1x1x1xf32>
    %607 = vector.shape_cast %602 : vector<16x16xf32> to vector<1x16x16xf32>
    %cst_136 = arith.constant dense<0xFF800000> : vector<1xf32>
    %608 = vector.multi_reduction <maximumf>, %607, %cst_136 [1, 2] : vector<1x16x16xf32> to vector<1xf32>
    %609 = vector.shape_cast %608 : vector<1xf32> to vector<1x1x1xf32>
    %610 = vector.extract %609[0, 0, 0] : f32 from vector<1x1x1xf32>
    %611 = arith.subf %610, %606 : f32
    %cst_137 = arith.constant 0.000000e+00 : f32
    %612 = arith.cmpf oeq, %611, %cst_137 : f32
    %cst_138 = arith.constant 1.000000e+00 : f32
    %613 = arith.select %612, %cst_138, %611 : f32
    %cst_139 = arith.constant 1.000000e+00 : f32
    %614 = arith.divf %cst_139, %613 : f32
    %615 = vector.broadcast %606 : f32 to vector<16x16xf32>
    %616 = arith.subf %602, %615 : vector<16x16xf32>
    %617 = vector.broadcast %614 : f32 to vector<16x16xf32>
    %618 = arith.mulf %616, %617 : vector<16x16xf32>
    %619 = tpu.concatenate %601, %618 in 0 : vector<16x16xf32>, vector<16x16xf32> -> vector<32x16xf32>
    %c0_140 = arith.constant 0 : index
    %c0_141 = arith.constant 0 : index
    %620 = vector.load %arg3[%c0_140, %c0_141] : memref<32x16xf32, #tpu.memory_space<vmem>>, vector<32x16xf32>
    tpu.vector_store %arg3[%c0_140, %c0_141], %619 {strides = array<i32>} : memref<32x16xf32, #tpu.memory_space<vmem>>, vector<32x16xf32>,
    return
  }
}

</mosaic_0001>

<bundles_post_ra>
// kernel: tpu_custom_call.1
= control target key start
LH: loop header
LB: loop body
LE: loop exit
PB: predicated region body
PF: predicated region fallthrough
CT: control target
= control target key end

     0   :  { %8 = vsyncpa [#allocation3], 0  ;;  %s3750_s0 = inlined_call_operand.vmem [shape: f32[2], index: 0, kind: input, shape index: {}]   ;;  %s3751_s1 = inlined_call_operand.vmem [shape: f32[36], index: 1, kind: input, shape index: {}]   ;;  %s3752_s2 = inlined_call_operand.vmem [shape: f32[32,16], index: 2, kind: input, shape index: {}]   ;;  %s3753_s3 = inlined_call_operand.vmem [shape: f32[32,16], index: 3, kind: output, shape index: {}]  }
   0x1   :  { %s15_s14 = sshll.u32 %s3750_s0, 4  ;;  %s16_s14 = int_to_ptr.vmem [resolvable:$true] %s15_s14 }
   0x2   :  { %9 = vsyncpa [#allocation5], 0  ;;  %s24_s17 = sshll.u32 %s3751_s1, 4  ;;  %s1957_s18 = smov [#allocation2]   ;;  %s25_s17 = int_to_ptr.vmem [resolvable:$true] %s24_s17 }
   0x3   :  { %18 = dma.vmem_to_smem %s16_s14, 16, %s1957_s18, [#allocation3]  }
   0x4   :  { %s1958_s19 = smov [#allocation4]  }
   0x5   :  { %27 = dma.vmem_to_smem %s25_s17, 16, %s1958_s19, [#allocation5]  }
   0x6   :  { %1953 = dma.done.wait [#allocation3], 16  }
   0x7   :  { %1954 = vsyncadd [#allocation3], 4294967280 }
   0x8   :  { %1955 = dma.done.wait [#allocation5], 16  }
   0x9   :  { %1956 = vsyncadd [#allocation5], 4294967280 }
   0xa   :  { %38 = sfence }
   0xb   :  { %v1993_v0 = vld [vmem:[%s3752_s2 + $0x8] sm:$0xff]  ;;  %v39_v1 = vlaneseq  ;;  %v1998_v2 = vld [vmem:[%s3752_s2] sm:$0xff]  ;;  %v2003_v3 = vld [vmem:[%s3752_s2 + $0x18] sm:$0xff]  ;;  %s1959_s24 = smov 16   ;;  %vm3774_vm6 = vcmask 1047680   ;;  %s1960_s27 = smov 113  }
   0xc   :  { %285 = vrot.lane.b32.xlu2 %v1993_v0, %s1959_s24  ;;  %v110_v4 = vrot.slane %v1998_v2, 7  ;;  %v111_v5 = vrot.slane %v1993_v0, 7  ;;  %v113_v6 = vrot.slane %v2003_v3, 7  ;;  %v2016_v8 = vld [vmem:[%s3752_s2 + $0x10] sm:$0xff]  ;;  %v411_v15 = vrot.slane %v1993_v0, 1  ;;  %s1961_s28 = smov 127  }
   0xd   :  { %v2011_v7 = vshrl.u32 %v39_v1, 7  ;;  %v112_v11 = vrot.slane %v2016_v8, 7  ;;  %v412_v16 = vrot.slane %v2016_v8, 1  ;;  %v413_v22 = vrot.slane %v2003_v3, 1  ;;  %s76_s29 = sld [smem:[#allocation2]] }
   0xe   :  { %v410_v24 = vrot.slane %v1998_v2, 1  ;;  %s1837_s30 = sld [smem:[#allocation2 + $0x1]] }
   0xf   :  { %3805 = vst [vmem:[#allocation8_spill] sm:$0xff] %v2011_v7  ;;  %vm114_vm0 = vcmp.lt.s32.totalorder %v2011_v7, 1  ;;  %vm3775_vm1 = vcmp.eq.s32.totalorder %v2011_v7, 0  ;;  %v2028_v12 = vadd.s32 16, %v2011_v7  ;;  %v2040_v14 = vadd.s32 8, %v2011_v7  ;;  %s1841_s4 = sld [smem:[#allocation4 + $0x1]] }
  0x10   :  { %v2022_v9 = vsel %vm114_vm0, %v110_v4, %v111_v5  ;;  %v118_v10 = vsel %vm114_vm0, %v113_v6, %v110_v4  ;;  %vm3777_vm2 = vcmp.lt.s32.totalorder %v2011_v7, 7  ;;  %v116_v17 = vsel %vm114_vm0, %v111_v5, %v112_v11  ;;  %s176_s5 = sld [smem:[#allocation4]] }
  0x11   :  { %3806 = vst [vmem:[#allocation9_spill] sm:$0xff] %v2028_v12  ;;  %127 = vrot.lane.b32.xlu0 %v2022_v9, %s1959_s24  ;;  %v2035_v13 = vsel %vm3775_vm1, %v1998_v2, %v118_v10  ;;  %vm3776_vm3 = vcmp.eq.s32.totalorder %v2028_v12, 16  ;;  %v2052_v18 = vsel %vm114_vm0, %v112_v11, %v113_v6  ;;  %vm51_vm4 = vcmp.eq.s32.totalorder %v2040_v14, 15  ;;  %s1845_s6 = sld [smem:[#allocation4 + $0x2]] }
  0x12   :  { %124 = vrot.lane.b32.xlu1 %v2035_v13, %s1959_s24  ;;  %3807 = vst [vmem:[#allocation10_spill] sm:$0xff] %v2040_v14  ;;  %v416_v19 = vsel %vm3777_vm2, %v411_v15, %v412_v16  ;;  %v2060_v20 = vsel %vm3776_vm3, %v2016_v8, %v116_v17  ;;  %v2075_v23 = vadd.s32 24, %v2011_v7  ;;  %v2082_v25 = vsel %vm3777_vm2, %v412_v16, %v413_v22  ;;  %s1849_s7 = sld [smem:[#allocation4 + $0x3]] }
  0x13   :  { %v2067_v21 = vsel %vm51_vm4, %v1993_v0, %v416_v19  ;;  %v418_v26 = vsel %vm3777_vm2, %v413_v22, %v410_v24  ;;  %v2098_v28 = vsel %vm3777_vm2, %v410_v24, %v411_v15  ;;  %s2226_s8 = sld [smem:[#allocation4 + $0x15]] }
  0x14   :  { %282 = vrot.lane.b32.xlu2 %v1998_v2, %s1959_s24  ;;  %3808 = vst [vmem:[#allocation11_spill] sm:$0xff] %v2075_v23  ;;  %vm3786_vm5 = vcmp.eq.s32.totalorder %v2075_v23, 31  ;;  %s2236_s9 = sld [smem:[#allocation4 + $0xc]] }
  0x15   :  { %v2094_v27 = vsel %vm3786_vm5, %v2003_v3, %v418_v26  ;;  %s1852_s10 = sld [smem:[#allocation4 + $0x1e]] }
  0x16   :  { %s2248_s11 = sld [smem:[#allocation4 + $0x12]] }
  0x17   :  { %s2254_s12 = sld [smem:[#allocation4 + $0x14]] }
  0x18   :  { %s2263_s13 = sld [smem:[#allocation4 + $0x9]] }
  0x19   :  { %133 = vrot.lane.b32.xlu0 %v2052_v18, %s1959_s24  ;;  %s1844_s14 = sld [smem:[#allocation4 + $0x1c]] }
  0x1a   :  { %130 = vrot.lane.b32.xlu1 %v2060_v20, %s1959_s24  ;;  %s1840_s15 = sld [smem:[#allocation4 + $0x1b]] }
  0x1b   :  { %s2271_s16 = sld [smem:[#allocation4 + $0x13]] }
  0x1c   :  { %426 = vrot.lane.b32.xlu2 %v2067_v21, %s1959_s24  ;;  %s2273_s17 = sld [smem:[#allocation4 + $0xe]] }
  0x1d   :  { %s2275_s18 = sld [smem:[#allocation4 + $0x20]] }
  0x1e   :  { %s2277_s19 = sld [smem:[#allocation4 + $0xa]] }
  0x1f   :  { %s2281_s20 = sld [smem:[#allocation4 + $0xb]] }
  0x20   :  { %s2283_s21 = sld [smem:[#allocation4 + $0x1d]] }
  0x21   :  { %291 = vrot.lane.b32.xlu0 %v2003_v3, %s1959_s24  ;;  %s2291_s0 = sld [smem:[#allocation4 + $0x8]] }
  0x22   :  { %288 = vrot.lane.b32.xlu1 %v2016_v8, %s1959_s24  ;;  %s2297_s22 = sld [smem:[#allocation4 + $0xf]] }
  0x23   :  { %s2305_s1 = sld [smem:[#allocation4 + $0x21]] }
  0x24   :  { %429 = vrot.lane.b32.xlu2 %v2082_v25, %s1959_s24  ;;  %s2316_s23 = sld [smem:[#allocation4 + $0x1a]] }
  0x25   :  { %s2336_s25 = sld [smem:[#allocation4 + $0x5]] }
  0x26   :  { %s2339_s26 = sld [smem:[#allocation4 + $0x17]] }
  0x29   :  { %432 = vrot.lane.b32.xlu0 %v2094_v27, %s1959_s24 }
  0x2a   :  { %423 = vrot.lane.b32.xlu1 %v2098_v28, %s1959_s24 }
  0x66   :  { %v286_v29 = vpop.permute.xlu2 %285 }
  0x67   :  { %v287_v30 = vsel %vm3774_vm6, %v286_v29, %v1993_v0 }
  0x68   :  { %296 = vrot.lane.b32.xlu1 %v287_v30, %s1959_s24  ;;  %v77_v30 = vstv %s76_s29  ;;  %s2354_s29 = sld [smem:[#allocation4 + $0x23]] }
  0x69   :  { %1917 = vrcp.f32 %v77_v30  ;;  %vm83_vm7 = vweird.f32 %v77_v30 }
  0x6e   :  { %v283_v31 = vpop.permute.xlu2 %282 }
  0x6f   :  { %v284_v32 = vsel %vm3774_vm6, %v283_v31, %v1998_v2  ;;  %v1918_v31 = vpop.eup %1917 }
  0x70   :  { %294 = vrot.lane.b32.xlu2 %v284_v32, %s1959_s24  ;;  %v79_v32 = vmul.f32 %v1918_v31, %v77_v30  ;;  %vm84_vm8 = vweird.f32 %v1918_v31 }
  0x71   :  { %vm85_vm9 = vmor %vm83_vm7, %vm84_vm8 }
  0x76   :  { %v427_v33 = vpop.permute.xlu2 %426 }
  0x77   :  { %v428_v41 = vsel %vm3774_vm6, %v427_v33, %v2067_v21  ;;  %v94_v33 = vstv %s1837_s30  ;;  %s2368_s30 = sld [smem:[#allocation4 + $0x22]] }
  0x78   :  { %1919 = vrcp.f32 %v94_v33  ;;  %vm100_vm11 = vweird.f32 %v94_v33 }
  0x7e   :  { %v430_v34 = vpop.permute.xlu2 %429 }
  0x7f   :  { %v431_v35 = vsel %vm3774_vm6, %v430_v34, %v2082_v25  ;;  %v80_v34 = vsub.f32 1.0, %v79_v32  ;;  %v335_v32 = vstv %s2226_s8  ;;  %s2483_s8 = sld [smem:[#allocation4 + $0x7]] }
  0x80   :  { %439 = vrot.lane.b32.xlu2 %v431_v35, %s1959_s24 }
  0x81   :  { %v81_v35 = vmul.f32 %v1918_v31, %v80_v34  ;;  %v2295_v34 = vstv %s1852_s10  ;;  %s2548_s10 = sld [smem:[#allocation4 + $0x10]] }
  0x82   :  { %3818 = vst [vmem:[#allocation17_spill] sm:$0xff] %v2295_v34 }
  0x83   :  { %v128_v36 = vpop.permute.xlu0 %127 }
  0x84   :  { %v125_v37 = vpop.permute.xlu1 %124  ;;  %v129_v46 = vsel %vm3774_vm6, %v128_v36, %v2022_v9  ;;  %v89_v36 = vand.u32 2147483648, %v77_v30 }
  0x85   :  { %v126_v38 = vsel %vm3774_vm6, %v125_v37, %v2035_v13  ;;  %v82_v37 = vadd.f32 %v1918_v31, %v81_v35 }
  0x88   :  { %136 = vrot.lane.b32.xlu2 %v126_v38, %s1959_s24  ;;  %v87_v38 = vand.u32 2147483647, %v77_v30 }
  0x8a   :  { %vm88_vm10 = vcmp.eq.f32.partialorder %v87_v38, 8.507059e+37  ;;  %v2302_v38 = vstv %s1840_s15 }
  0x8b   :  { %v134_v39 = vpop.permute.xlu0 %133  ;;  %3819 = vst [vmem:[#allocation18_spill] sm:$0xff] %v2302_v38 }
  0x8c   :  { %v131_v40 = vpop.permute.xlu1 %130  ;;  %v135_v47 = vsel %vm3774_vm6, %v134_v39, %v2052_v18  ;;  %v90_v39 = vor.u32 1.1754944e-38, %v89_v36 }
  0x8d   :  { %v132_v50 = vsel %vm3774_vm6, %v131_v40, %v2060_v20  ;;  %v1920_v40 = vpop.eup %1919 }
  0x8e   :  { %vm101_vm12 = vweird.f32 %v1920_v40 }
  0x8f   :  { %vm102_vm13 = vmor %vm100_vm11, %vm101_vm12 }
  0x90   :  { %437 = vrot.lane.b32.xlu2 %v428_v41, %s1959_s24  ;;  %v86_v41 = vsel %vm85_vm9, %v1918_v31, %v82_v37  ;;  %v2289_v31 = vstv %s1844_s14  ;;  %v3755_v37 = vstv %s2263_s13 }
  0x91   :  { %3817 = vst [vmem:[#allocation16_spill] sm:$0xff] %v2289_v31 }
  0x93   :  { %v292_v42 = vpop.permute.xlu0 %291 }
  0x94   :  { %v289_v43 = vpop.permute.xlu1 %288  ;;  %v293_v44 = vsel %vm3774_vm6, %v292_v42, %v2003_v3 }
  0x95   :  { %300 = vrot.lane.b32.xlu0 %v293_v44, %s1959_s24  ;;  %v290_v45 = vsel %vm3774_vm6, %v289_v43, %v2016_v8  ;;  %v91_v43 = vsel %vm88_vm10, %v90_v39, %v86_v41  ;;  %v96_v44 = vmul.f32 %v1920_v40, %v94_v33  ;;  %v211_v39 = vstv %s2271_s16 }
  0x96   :  { %298 = vrot.lane.b32.xlu1 %v290_v45, %s1959_s24  ;;  %1894 = vpush %v91_v43  ;;  %v183_v41 = vstv %s2248_s11  ;;  %v225_v43 = vmul.f32 %v2289_v31, %v2052_v18  ;;  %s2632_s11 = sld [smem:[#allocation4 + $0x11]] }
  0x97   :  { %v97_v45 = vsub.f32 1.0, %v96_v44 }
  0x9b   :  { %v433_v51 = vpop.permute.xlu0 %432 }
  0x9c   :  { %v424_v48 = vpop.permute.xlu1 %423  ;;  %v434_v52 = vsel %vm3774_vm6, %v433_v51, %v2094_v27 }
  0x9d   :  { %138 = vrot.lane.b32.xlu0 %v129_v46, %s1959_s24  ;;  %v425_v49 = vsel %vm3774_vm6, %v424_v48, %v2098_v28  ;;  %v98_v46 = vmul.f32 %v1920_v40, %v97_v45  ;;  %v106_v48 = vand.u32 2147483648, %v94_v33 }
  0x9e   :  { %142 = vrot.lane.b32.xlu1 %v135_v47, %s1959_s24  ;;  %v104_v47 = vand.u32 2147483647, %v94_v33  ;;  %v3754_v33 = vstv %s2236_s9 }
  0xa0   :  { %vm105_vm14 = vcmp.eq.f32.partialorder %v104_v47, 8.507059e+37 }
  0xa5   :  { %140 = vrot.lane.b32.xlu0 %v132_v50, %s1959_s24  ;;  %v107_v50 = vor.u32 1.1754944e-38, %v106_v48 }
  0xa6   :  { %435 = vrot.lane.b32.xlu1 %v425_v49, %s1959_s24  ;;  %v99_v49 = vadd.f32 %v1920_v40, %v98_v46 }
  0xa8   :  { %v103_v51 = vsel %vm102_vm13, %v1920_v40, %v99_v49 }
  0xad   :  { %441 = vrot.lane.b32.xlu0 %v434_v52, %s1959_s24  ;;  %v108_v52 = vsel %vm105_vm14, %v107_v50, %v103_v51  ;;  %v213_v50 = vmul.f32 %v211_v39, %v2022_v9 }
  0xae   :  { %1896 = vpush %v108_v52 }
  0xca   :  { %v295_v53 = vpop.permute.xlu2 %294 }
  0xcb   :  { %v302_v54 = vsel %vm3774_vm6, %v295_v53, %v1998_v2 }
  0xcc   :  { %310 = vrot.lane.b32.xlu0 %v302_v54, %s1960_s27 }
  0xda   :  { %v297_v55 = vpop.permute.xlu1 %296  ;;  %v440_v57 = vpop.permute.xlu2 %439 }
  0xdb   :  { %v303_v56 = vsel %vm3774_vm6, %v297_v55, %v1993_v0  ;;  %v445_v29 = vsel %vm3774_vm6, %v440_v57, %v2082_v25  ;;  %v2196_v55 = vstv %s1841_s4  ;;  %v2206_v57 = vstv %s176_s5  ;;  %s2378_s4 = sld [smem:[#allocation4 + $0x16]] }
  0xdc   :  { %312 = vrot.lane.b32.xlu2 %v303_v56, %s1960_s27  ;;  %3809 = vst [vmem:[#allocation12_spill] sm:$0xff] %v2196_v55  ;;  %v205_v35 = vmul.f32 %v2196_v55, %v2022_v9  ;;  %s2389_s5 = sld [smem:[#allocation4 + $0xd]] }
  0xe2   :  { %v137_v62 = vpop.permute.xlu2 %136 }
  0xe3   :  { %v144_v10 = vsel %vm3774_vm6, %v137_v62, %v2035_v13 }
  0xea   :  { %v438_v19 = vpop.permute.xlu2 %437 }
  0xeb   :  { %v444_v22 = vsel %vm3774_vm6, %v438_v19, %v2067_v21 }
 0x107   :  { %v301_v58 = vpop.permute.xlu0 %300 }
 0x108   :  { %v299_v59 = vpop.permute.xlu1 %298  ;;  %v305_v60 = vsel %vm3774_vm6, %v301_v58, %v2003_v3 }
 0x109   :  { %316 = vrot.lane.b32.xlu1 %v305_v60, %s1960_s27  ;;  %v304_v61 = vsel %vm3774_vm6, %v299_v59, %v2016_v8 }
 0x10a   :  { %314 = vrot.lane.b32.xlu2 %v304_v61, %s1960_s27 }
 0x10f   :  { %v139_v63 = vpop.permute.xlu0 %138 }
 0x110   :  { %v143_v4 = vpop.permute.xlu1 %142  ;;  %v145_v5 = vsel %vm3774_vm6, %v139_v63, %v2022_v9 }
 0x111   :  { %154 = vrot.lane.b32.xlu0 %v145_v5, %s1960_s27  ;;  %v147_v6 = vsel %vm3774_vm6, %v143_v4, %v2052_v18  ;;  %v3813_v4 = vmov 0 }
 0x112   :  { %158 = vrot.lane.b32.xlu1 %v147_v6, %s1960_s27  ;;  %152 = vrot.lane.b32.xlu2 %v144_v10, %s1960_s27 }
 0x117   :  { %v141_v11 = vpop.permute.xlu0 %140 }
 0x118   :  { %v146_v15 = vsel %vm3774_vm6, %v141_v11, %v2060_v20  ;;  %v436_v24 = vpop.permute.xlu1 %435 }
 0x119   :  { %236 = vrot.lane.b32.xlu0 %v147_v6, %s1961_s28  ;;  %v443_v26 = vsel %vm3774_vm6, %v436_v24, %v2098_v28 }
 0x11a   :  { %232 = vrot.lane.b32.xlu1 %v145_v5, %s1961_s28  ;;  %230 = vrot.lane.b32.xlu2 %v144_v10, %s1961_s28  ;;  %v2238_v5 = vstv %s1845_s6  ;;  %s2431_s6 = sld [smem:[#allocation4 + $0x6]] }
 0x11f   :  { %v442_v16 = vpop.permute.xlu0 %441 }
 0x120   :  { %v446_v17 = vsel %vm3774_vm6, %v442_v16, %v2094_v27 }
 0x121   :  { %156 = vrot.lane.b32.xlu0 %v146_v15, %s1960_s27 }
 0x122   :  { %366 = vrot.lane.b32.xlu1 %v302_v54, %s1961_s28  ;;  %372 = vrot.lane.b32.xlu2 %v305_v60, %s1961_s28  ;;  %v2193_v54 = vand.u32 127, %v39_v1  ;;  %v2210_v1 = vmul.f32 %v2196_v55, %v2035_v13 }
 0x124   :  { %vm3785_vm15 = vcmp.eq.s32.totalorder %v2193_v54, 0  ;;  %vm3784_vm8 = vcmp.eq.s32.totalorder %v2193_v54, 15 }
 0x125   :  { %vm2202_vm7 = vmand %vm3775_vm1, %vm3785_vm15 }
 0x126   :  { %vm2232_vm9 = vmand %vm3775_vm1, %vm3784_vm8 }
 0x127   :  { %v3814_v4 = vsel %vm2232_vm9, 4294967295, %v3813_v4  ;;  %vm2360_vm10 = vmand %vm3786_vm5, %vm3785_vm15 }
 0x128   :  { %3815 = vst [vmem:[#allocation14_spill] sm:$0xff] %v3814_v4  ;;  %vm2424_vm11 = vmand %vm3776_vm3, %vm3785_vm15 }
 0x129   :  { %368 = vrot.lane.b32.xlu0 %v303_v56, %s1961_s28  ;;  %v3810_v56 = vmov 0  ;;  %vm2508_vm12 = vmand %vm3776_vm3, %vm3784_vm8 }
 0x12a   :  { %234 = vrot.lane.b32.xlu1 %v146_v15, %s1961_s28  ;;  %457 = vrot.lane.b32.xlu2 %v446_v17, %s1960_s27  ;;  %v3811_v56 = vsel %vm2202_vm7, 4294967295, %v3810_v56  ;;  %v2246_v15 = vstv %s1849_s7  ;;  %s2475_s7 = sld [smem:[#allocation4 + $0x18]]  ;;  %vm2521_vm6 = vmand %vm51_vm4, %vm3784_vm8 }
 0x12b   :  { %3812 = vst [vmem:[#allocation13_spill] sm:$0xff] %v3811_v56 }
 0x12c   :  { %3816 = vst [vmem:[#allocation15_spill] sm:$0xff] %v2246_v15 }
 0x131   :  { %453 = vrot.lane.b32.xlu0 %v444_v22, %s1960_s27 }
 0x132   :  { %370 = vrot.lane.b32.xlu1 %v304_v61, %s1961_s28  ;;  %533 = vrot.lane.b32.xlu2 %v444_v22, %s1961_s28 }
 0x136   :  { %v2188_v42 = vpop.permute.xlu2 %312 }
 0x137   :  { %v323_v30 = vsel %vm3785_vm15, %v1993_v0, %v2188_v42 }
 0x138   :  { %v2308_v40 = vmul.f32 %v2246_v15, %v323_v30  ;;  %v2318_v45 = vmul.f32 %v335_v32, %v323_v30 }
 0x139   :  { %451 = vrot.lane.b32.xlu0 %v443_v26, %s1960_s27 }
 0x13a   :  { %455 = vrot.lane.b32.xlu1 %v445_v29, %s1960_s27  ;;  %535 = vrot.lane.b32.xlu2 %v445_v29, %s1961_s28 }
 0x13e   :  { %v311_v63 = vpop.permute.xlu0 %310 }
 0x13f   :  { %v322_v10 = vsel %vm3785_vm15, %v1998_v2, %v311_v63  ;;  %v217_v63 = vstv %s2277_s19 }
 0x140   :  { %v2261_v19 = vmul.f32 %v2246_v15, %v322_v10 }
 0x141   :  { %537 = vrot.lane.b32.xlu0 %v446_v17, %s1961_s28 }
 0x142   :  { %531 = vrot.lane.b32.xlu1 %v443_v26, %s1961_s28 }
 0x164   :  { %v2190_v53 = vpop.permute.xlu2 %314 }
 0x165   :  { %v324_v49 = vsel %vm3785_vm15, %v2016_v8, %v2190_v53 }
 0x166   :  { %v2343_v30 = vmul.f32 %v3754_v33, %v324_v49 }
 0x16c   :  { %v153_v58 = vpop.permute.xlu2 %152 }
 0x16d   :  { %v164_v59 = vsel %vm3785_vm15, %v2035_v13, %v153_v58  ;;  %v3766_v58 = vstv %s2254_s12 }
 0x16e   :  { %v2217_v60 = vsel %vm2202_vm7, 0.0, %v164_v59  ;;  %v2333_v59 = vmul.f32 %v335_v32, %v322_v10  ;;  %v2346_v10 = vmul.f32 %v2295_v34, %v324_v49  ;;  %v2349_v32 = vstv %s2275_s18 }
 0x16f   :  { %v2221_v61 = vmul.f32 %v2206_v57, %v2217_v60  ;;  %3820 = vst [vmem:[#allocation19_spill] sm:$0xff] %v2349_v32  ;;  %v219_v49 = vmul.f32 %v217_v63, %v2052_v18 }
 0x171   :  { %v208_v62 = vadd.f32 %v2210_v1, %v2221_v61 }
 0x174   :  { %v231_v6 = vpop.permute.xlu2 %230 }
 0x175   :  { %v242_v11 = vsel %vm3784_vm8, %v2035_v13, %v231_v6 }
 0x176   :  { %v2252_v16 = vsel %vm2232_vm9, 0.0, %v242_v11 }
 0x177   :  { %v2258_v17 = vmul.f32 %v2238_v5, %v2252_v16 }
 0x179   :  { %v260_v22 = vadd.f32 %v2258_v17, %v208_v62 }
 0x17b   :  { %v2267_v24 = vadd.f32 %v2261_v19, %v260_v22  ;;  %v2269_v26 = vpop.permute.xlu1 %316 }
 0x17c   :  { %v2279_v29 = vpop.permute.xlu2 %372 }
 0x183   :  { %v155_v36 = vpop.permute.xlu0 %154 }
 0x184   :  { %v165_v42 = vsel %vm3785_vm15, %v2022_v9, %v155_v36  ;;  %v159_v44 = vpop.permute.xlu1 %158  ;;  %v458_v36 = vpop.permute.xlu2 %457 }
 0x185   :  { %v179_v46 = vmul.f32 %v2206_v57, %v165_v42  ;;  %v185_v47 = vmul.f32 %v183_v41, %v165_v42  ;;  %v167_v48 = vsel %vm3785_vm15, %v2052_v18, %v159_v44  ;;  %v2352_v42 = vstv %s2283_s21 }
 0x186   :  { %v191_v51 = vmul.f32 %v3755_v37, %v167_v48  ;;  %v197_v52 = vmul.f32 %v2302_v38, %v167_v48  ;;  %v466_v48 = vsel %vm3785_vm15, %v2094_v27, %v458_v36  ;;  %v325_v36 = vsel %vm3785_vm15, %v2003_v3, %v2269_v26 }
 0x187   :  { %v209_v62 = vadd.f32 %v205_v35, %v179_v46  ;;  %v381_v37 = vsel %vm3784_vm8, %v2003_v3, %v2279_v29  ;;  %v349_v4 = vmul.f32 %v2295_v34, %v325_v36  ;;  %v218_v29 = vmul.f32 %v217_v63, %v2060_v20 }
 0x188   :  { %v193_v11 = vadd.f32 %v191_v51, %v179_v46  ;;  %v199_v22 = vadd.f32 %v197_v52, %v185_v47  ;;  %v229_v53 = vadd.f32 %v225_v43, %v197_v52  ;;  %v3821_v47 = vmov 0 }
 0x189   :  { %v3822_v47 = vsel %vm2360_vm10, 4294967295, %v3821_v47 }
 0x18a   :  { %v207_v44 = vadd.f32 %v205_v35, %v193_v11  ;;  %v215_v46 = vadd.f32 %v213_v50, %v199_v22  ;;  %3823 = vst [vmem:[#allocation20_spill] sm:$0xff] %v3822_v47  ;;  %v2372_v35 = vstv %s2305_s1  ;;  %v2376_v11 = vstv %s2291_s0 }
 0x18b   :  { %v237_v52 = vpop.permute.xlu0 %236  ;;  %v184_v22 = vmul.f32 %v183_v41, %v2217_v60  ;;  %v2397_v60 = vsel %vm2360_vm10, 0.0, %v466_v48  ;;  %v212_v48 = vmul.f32 %v211_v39, %v2035_v13  ;;  %v3824_v47 = vstv %s2281_s20 }
 0x18c   :  { %v245_v51 = vsel %vm3784_vm8, %v2052_v18, %v237_v52  ;;  %v233_v6 = vpop.permute.xlu1 %232  ;;  %v221_v41 = vadd.f32 %v219_v49, %v207_v44  ;;  %v227_v52 = vadd.f32 %v225_v43, %v215_v46  ;;  %v2416_v44 = vmul.f32 %v2372_v35, %v2397_v60 }
 0x18d   :  { %v277_v26 = vmul.f32 %v2352_v42, %v245_v51  ;;  %v243_v18 = vsel %vm3784_vm8, %v2022_v9, %v233_v6  ;;  %v271_v15 = vmul.f32 %v3824_v47, %v245_v51  ;;  %v2412_v6 = vmul.f32 %v2349_v32, %v381_v37 }
 0x18e   :  { %v257_v33 = vmul.f32 %v2238_v5, %v243_v18  ;;  %v265_v50 = vmul.f32 %v3766_v58, %v243_v18  ;;  %v224_v13 = vmul.f32 %v2289_v31, %v2060_v20  ;;  %v2442_v49 = vstv %s2354_s29 }
 0x18f   :  { %v281_v56 = vadd.f32 %v277_v26, %v229_v53  ;;  %v3769_v18 = vstv %s2378_s4 }
 0x190   :  { %v259_v55 = vadd.f32 %v257_v33, %v221_v41  ;;  %v261_v9 = vadd.f32 %v257_v33, %v209_v62  ;;  %v267_v43 = vadd.f32 %v265_v50, %v227_v52  ;;  %v3825_v33 = vmov 0 }
 0x191   :  { %v353_v53 = vadd.f32 %v349_v4, %v281_v56  ;;  %v3826_v33 = vsel %vm2424_vm11, 4294967295, %v3825_v33  ;;  %v2434_v56 = vstv %s2368_s30  ;;  %v357_v58 = vmul.f32 %v3769_v18, %v1993_v0 }
 0x192   :  { %v273_v39 = vadd.f32 %v271_v15, %v259_v55  ;;  %v279_v63 = vadd.f32 %v277_v26, %v267_v43  ;;  %3827 = vst [vmem:[#allocation21_spill] sm:$0xff] %v3826_v33  ;;  %v2429_v62 = vadd.f32 %v2308_v40, %v261_v9  ;;  %v2438_v15 = vstv %s2336_s25 }
 0x193   :  { %v409_v46 = vadd.f32 %v2412_v6, %v353_v53  ;;  %v157_v55 = vpop.permute.xlu0 %156  ;;  %v2459_v43 = vmul.f32 %v2434_v56, %v2094_v27  ;;  %v3831_v18 = vstv %s2273_s17 }
 0x194   :  { %v339_v51 = vadd.f32 %v2318_v45, %v279_v63  ;;  %v166_v50 = vsel %vm3785_vm15, %v2060_v20, %v157_v55  ;;  %v367_v26 = vpop.permute.xlu1 %366  ;;  %v331_v53 = vadd.f32 %v2308_v40, %v273_v39  ;;  %v3828_v63 = vstv %s2263_s13 }
 0x195   :  { %v174_v52 = vsel %vm2424_vm11, 0.0, %v166_v50  ;;  %v2455_v9 = vsel %vm3784_vm8, %v1998_v2, %v367_v26  ;;  %v502_v45 = vadd.f32 %v2416_v44, %v409_v46  ;;  %v3829_v26 = vstv %s2236_s9  ;;  %s2495_s9 = sld [smem:[#allocation4 + $0x19]] }
 0x196   :  { %v190_v55 = vmul.f32 %v3828_v63, %v174_v52  ;;  %v196_v50 = vmul.f32 %v2302_v38, %v174_v52  ;;  %v2468_v47 = vmul.f32 %v2438_v15, %v2455_v9  ;;  %v343_v41 = vmul.f32 %v3829_v26, %v325_v36 }
 0x197   :  { %v351_v34 = vadd.f32 %v349_v4, %v339_v51  ;;  %v590_v40 = vmul.u32 2, %v2193_v54  ;;  %v3830_v36 = vstv %s2254_s12  ;;  %v2490_v4 = vmul.f32 %v3831_v18, %v381_v37  ;;  %v534_v18 = vpop.permute.xlu2 %533  ;;  %s1895_s12 = spop %1894 }
 0x198   :  { %v192_v39 = vadd.f32 %v190_v55, %v2221_v61  ;;  %v198_v46 = vadd.f32 %v196_v50, %v184_v22  ;;  %v228_v63 = vadd.f32 %v224_v13, %v196_v50  ;;  %v2481_v52 = vadd.f32 %v2468_v47, %v2267_v24  ;;  %s713_s13 = smul.f32 0.0, %s1895_s12  ;;  %s1897_s16 = spop %1896 }
 0x199   :  { %v264_v26 = vmul.f32 %v3830_v36, %v2252_v16  ;;  %v3832_v51 = vstv %s2389_s5  ;;  %v2498_v61 = vadd.f32 %v2459_v43, %v502_v45  ;;  %v345_v55 = vadd.f32 %v343_v41, %v331_v53  ;;  %s821_s19 = smul.f32 0.0, %s1897_s16 }
 0x19a   :  { %v363_v38 = vmul.f32 %v3832_v51, %v2003_v3  ;;  %v206_v22 = vadd.f32 %v2210_v1, %v192_v39  ;;  %v214_v24 = vadd.f32 %v212_v48, %v198_v46  ;;  %v2502_v50 = vstv %s2431_s6  ;;  %v1925_v46 = vld [vmem:[%s3752_s2] sm:$0xff] }
 0x19b   :  { %v369_v31 = vpop.permute.xlu0 %368  ;;  %v359_v16 = vadd.f32 %v357_v58, %v351_v34  ;;  %vm592_vm13 = vcmp.eq.s32.totalorder %v2040_v14, %v590_v40  ;;  %v593_v37 = vadd.s32 1, %v590_v40  ;;  %vm591_vm14 = vcmp.eq.s32.totalorder %v2011_v7, %v590_v40 }
 0x19c   :  { %v379_v1 = vsel %vm3784_vm8, %v1993_v0, %v369_v31  ;;  %v235_v48 = vpop.permute.xlu1 %234  ;;  %v220_v41 = vadd.f32 %v218_v29, %v206_v22  ;;  %v226_v34 = vadd.f32 %v224_v13, %v214_v24  ;;  %v3835_v58 = vmov 0 }
 0x19d   :  { %v3836_v58 = vsel %vm2521_vm6, 4294967295, %v3835_v58  ;;  %v385_v45 = vmul.f32 %v2438_v15, %v379_v1  ;;  %v3838_v53 = vstv %s2339_s26  ;;  %v244_v0 = vsel %vm3784_vm8, %v2060_v20, %v235_v48 }
 0x19e   :  { %3837 = vst [vmem:[#allocation22_spill] sm:$0xff] %v3836_v58  ;;  %v393_v39 = vmul.f32 %v3838_v53, %v379_v1  ;;  %vm595_vm1 = vcmp.eq.s32.totalorder %v2040_v14, %v593_v37  ;;  %v252_v31 = vsel %vm2508_vm12, 0.0, %v244_v0  ;;  %v258_v29 = vadd.f32 %v2258_v17, %v220_v41 }
 0x19f   :  { %v266_v13 = vadd.f32 %v264_v26, %v226_v34  ;;  %vm2537_vm3 = vmor %vm592_vm13, %vm595_vm1  ;;  %vm594_vm2 = vcmp.eq.s32.totalorder %v2011_v7, %v593_v37  ;;  %v544_v20 = vsel %vm3784_vm8, %v2067_v21, %v534_v18  ;;  %v389_v36 = vadd.f32 %v385_v45, %v2429_v62 }
 0x1a0   :  { %v395_v51 = vadd.f32 %v393_v39, %v359_v16  ;;  %v3841_v22 = vstv %s2281_s20  ;;  %v3778_v26 = vmov 1.0   ;;  %vm2555_vm1 = vmor %vm591_vm14, %vm594_vm2  ;;  %v3844_v37 = vstv %s2297_s22 }
 0x1a1   :  { %v270_v17 = vmul.f32 %v3841_v22, %v252_v31  ;;  %1892 = vmatpush.msk.msra.mxu1 %vm2537_vm3, %v3778_v26  ;;  %v492_v18 = vmul.f32 %v3844_v37, %v2397_v60  ;;  %v365_v62 = vadd.f32 %v363_v38, %v345_v55  ;;  %v276_v16 = vmul.f32 %v2352_v42, %v252_v31  ;;  %vm2581_vm2 = vmand %vm51_vm4, %vm3785_vm15 }
 0x1a2   :  { %v2564_v1 = vstv %s2483_s8  ;;  %1874 = vmatpush.msk.msra.mxu0 %vm2537_vm3, %v3778_v26  ;;  %v407_v40 = vadd.f32 %v2412_v6, %v395_v51  ;;  %v484_v41 = vstv %s2475_s7  ;;  %v512_v34 = vstv %s2495_s9  ;;  %vm2658_vm13 = vmand %vm3786_vm5, %vm3784_vm8 }
 0x1a3   :  { %v272_v48 = vadd.f32 %v270_v17, %v258_v29  ;;  %1893 = vmatpush.msk.msra.mxu1 %vm2555_vm1, %v3778_v26  ;;  %v552_v38 = vsel %vm2521_vm6, 0.0, %v544_v20  ;;  %v387_v60 = vadd.f32 %v385_v45, %v365_v62  ;;  %v278_v55 = vadd.f32 %v276_v16, %v266_v13  ;;  %v454_v0 = vpop.permute.xlu0 %453 }
 0x1a4   :  { %v280_v53 = vadd.f32 %v276_v16, %v228_v63  ;;  %1875 = vmatpush.msk.msra.mxu0 %vm2555_vm1, %v3778_v26  ;;  %v506_v45 = vmul.f32 %v2564_v1, %v2067_v21  ;;  %v3847_v63 = vstv %s2378_s4  ;;  %v3848_v29 = vstv %s2389_s5  ;;  %v371_v22 = vpop.permute.xlu1 %370 }
 0x1a5   :  { %v330_v6 = vadd.f32 %v2261_v19, %v272_v48  ;;  %v356_v31 = vmul.f32 %v3847_v63, %v1998_v2  ;;  %v362_v13 = vmul.f32 %v3848_v29, %v2016_v8  ;;  %v338_v20 = vadd.f32 %v2333_v59, %v278_v55 }
 0x1a6   :  { %v464_v51 = vsel %vm3785_vm15, %v2067_v21, %v454_v0  ;;  %v514_v19 = vmul.f32 %v512_v34, %v2067_v21  ;;  %v352_v17 = vadd.f32 %v2346_v10, %v280_v53  ;;  %v2604_v37 = vmul.f32 %v2376_v11, %v552_v38 }
 0x1a7   :  { %v344_v2 = vadd.f32 %v2343_v30, %v330_v6  ;;  %v472_v62 = vsel %vm2581_vm2, 0.0, %v464_v51  ;;  %v380_v59 = vsel %vm3784_vm8, %v2016_v8, %v371_v22  ;;  %v401_v16 = vadd.f32 %v2490_v4, %v387_v60 }
 0x1a8   :  { %v350_v21 = vadd.f32 %v2346_v10, %v338_v20  ;;  %v478_v48 = vmul.f32 %v2502_v50, %v472_v62  ;;  %v486_v55 = vmul.f32 %v484_v41, %v472_v62  ;;  %v3849_v53 = vstv %s2339_s26 }
 0x1a9   :  { %v392_v0 = vmul.f32 %v3849_v53, %v2455_v9  ;;  %v364_v63 = vadd.f32 %v362_v13, %v344_v2  ;;  %v404_v30 = vmul.f32 %v2349_v32, %v380_v59  ;;  %v518_v6 = vstv %s2548_s10  ;;  %v536_v53 = vpop.permute.xlu2 %535 }
 0x1aa   :  { %v480_v29 = vadd.f32 %v478_v48, %v401_v16  ;;  %v482_v51 = vadd.f32 %v478_v48, %v389_v36  ;;  %v488_v26 = vadd.f32 %v486_v55, %v407_v40  ;;  %v358_v58 = vadd.f32 %v356_v31, %v350_v21 }
 0x1ab   :  { %v3850_v8 = vstv %s2316_s23  ;;  %v386_v4 = vadd.f32 %v2468_v47, %v364_v63  ;;  %v408_v10 = vadd.f32 %v404_v30, %v352_v17  ;;  %v505_v60 = vmul.f32 %v2564_v1, %v2098_v28  ;;  %v452_v36 = vpop.permute.xlu0 %451 }
 0x1ac   :  { %v566_v22 = vmul.f32 %v3850_v8, %v552_v38  ;;  %v500_v20 = vadd.f32 %v2416_v44, %v488_v26  ;;  %v510_v62 = vadd.f32 %v506_v45, %v482_v51  ;;  %v394_v9 = vadd.f32 %v392_v0, %v358_v58  ;;  %v456_v26 = vpop.permute.xlu1 %455 }
 0x1ad   :  { %v3851_v13 = vstv %s2273_s17  ;;  %v494_v32 = vadd.f32 %v492_v18, %v480_v29  ;;  %v513_v40 = vmul.f32 %v512_v34, %v2098_v28  ;;  %v525_v38 = vmul.f32 %v2434_v56, %v2082_v25 }
 0x1ae   :  { %v398_v2 = vmul.f32 %v3851_v13, %v380_v59  ;;  %v520_v47 = vmul.f32 %v518_v6, %v2094_v27  ;;  %v516_v31 = vadd.f32 %v514_v19, %v500_v20  ;;  %v406_v44 = vadd.f32 %v404_v30, %v394_v9 }
 0x1af   :  { %v463_v58 = vsel %vm3785_vm15, %v2098_v28, %v452_v36  ;;  %v465_v34 = vsel %vm3785_vm15, %v2082_v25, %v456_v26  ;;  %v2642_v16 = vadd.f32 %v2604_v37, %v510_v62  ;;  %v545_v19 = vsel %vm3784_vm8, %v2082_v25, %v536_v53 }
 0x1b0   :  { %v400_v17 = vadd.f32 %v398_v2, %v386_v4  ;;  %v477_v18 = vmul.f32 %v2502_v50, %v463_v58  ;;  %v485_v59 = vmul.f32 %v484_v41, %v463_v58  ;;  %v3852_v21 = vstv %s2297_s22 }
 0x1b1   :  { %v491_v48 = vmul.f32 %v3852_v21, %v465_v34  ;;  %v497_v55 = vmul.f32 %v2372_v35, %v465_v34  ;;  %v528_v0 = vadd.f32 %v2459_v43, %v516_v31  ;;  %v508_v63 = vadd.f32 %v506_v45, %v494_v32 }
 0x1b2   :  { %v479_v30 = vadd.f32 %v477_v18, %v400_v17  ;;  %v481_v41 = vadd.f32 %v477_v18, %v2481_v52  ;;  %v487_v29 = vadd.f32 %v485_v59, %v406_v44  ;;  %v519_v62 = vmul.f32 %v518_v6, %v2082_v25 }
 0x1b3   :  { %v501_v51 = vadd.f32 %v497_v55, %v408_v10  ;;  %v568_v8 = vadd.f32 %v566_v22, %v528_v0  ;;  %v577_v13 = vmul.f32 %v2442_v49, %v545_v19  ;;  %v538_v45 = vpop.permute.xlu0 %537  ;;  %v522_v22 = vadd.f32 %v520_v47, %v508_v63 }
 0x1b4   :  { %v493_v4 = vadd.f32 %v491_v48, %v479_v30  ;;  %v499_v20 = vadd.f32 %v497_v55, %v487_v29  ;;  %v509_v9 = vadd.f32 %v505_v60, %v481_v41  ;;  %v570_v10 = vstv %s2632_s11  ;;  %v532_v6 = vpop.permute.xlu1 %531 }
 0x1b5   :  { %v529_v2 = vadd.f32 %v525_v38, %v501_v51  ;;  %v546_v25 = vsel %vm3784_vm8, %v2094_v27, %v538_v45  ;;  %v3855_v58 = vstv %s2316_s23  ;;  %v571_v27 = vmul.f32 %v570_v10, %v545_v19 }
 0x1b6   :  { %v507_v43 = vadd.f32 %v505_v60, %v493_v4  ;;  %v515_v52 = vadd.f32 %v513_v40, %v499_v20  ;;  %v554_v36 = vsel %vm2658_vm13, 0.0, %v546_v25  ;;  %v543_v60 = vsel %vm3784_vm8, %v2098_v28, %v532_v6 }
 0x1b7   :  { %v2666_v53 = vadd.f32 %v577_v13, %v529_v2  ;;  %v572_v40 = vmul.f32 %v570_v10, %v554_v36  ;;  %v578_v47 = vmul.f32 %v2442_v49, %v554_v36  ;;  %v557_v44 = vmul.f32 %v2376_v11, %v543_v60 }
 0x1b8   :  { %v521_v31 = vadd.f32 %v519_v62, %v507_v43  ;;  %v527_v17 = vadd.f32 %v525_v38, %v515_v52  ;;  %v565_v26 = vmul.f32 %v3855_v58, %v543_v60  ;;  %v560_v18 = vadd.f32 %v2604_v37, %v522_v22 }
 0x1b9   :  { %vm602_vm14 = vcmask 130048   ;;  %v2679_v59 = vadd.f32 %v578_v47, %v2498_v61  ;;  %v561_v38 = vadd.f32 %v557_v44, %v509_v9  ;;  %v2681_v55 = vadd.f32 %v578_v47, %v568_v8 }
 0x1ba   :  { %v559_v34 = vadd.f32 %v557_v44, %v521_v31  ;;  %v567_v21 = vadd.f32 %v565_v26, %v527_v17  ;;  %v574_v48 = vadd.f32 %v572_v40, %v560_v18  ;;  %v583_v19 = vmul.u32 2, %v2011_v7  ;;  %v1926_v18 = vld [vmem:[%s3752_s2 + $0x8] sm:$0xff] }
 0x1bb   :  { %v3858_v41 = vmov 1.0   ;;  %v1963_v8 = vmov 0.0   ;;  %v2707_v9 = vstv %s1895_s12  ;;  %v714_v10 = vstv %s713_s13 }
 0x1bc   :  { %v2683_v28 = vadd.f32 %v577_v13, %v567_v21  ;;  %v573_v0 = vadd.f32 %v571_v27, %v559_v34  ;;  %1877 = vmatmul.msk.f32.vlgmr.msra.gmra.mxu1 %vm602_vm14, %v574_v48  ;;  %v712_v63 = vsub.f32 %v574_v48, %v2642_v16  ;;  %v585_v61 = vadd.s32 1, %v583_v19 }
 0x1bd   :  { %vm584_vm8 = vcmp.eq.s32.totalorder %v2193_v54, %v583_v19  ;;  %v1872_v2 = vsel %vm2555_vm1, 1.0, %v1963_v8  ;;  %v1873_v52 = vsel %vm2537_vm3, 1.0, %v1963_v8  ;;  %v833_v31 = vmul.f32 %v2707_v9, %v561_v38 }
 0x1be   :  { %1876 = vmatmul.msk.f32.vlgmr.msra.gmra.mxu0 %vm602_vm14, %v573_v0  ;;  %v711_v37 = vsub.f32 %v573_v0, %v561_v38  ;;  %vm586_vm15 = vcmp.eq.s32.totalorder %v2193_v54, %v585_v61  ;;  %v718_v44 = vmul.f32 %v712_v63, %v2707_v9  ;;  %v834_v27 = vmul.f32 %v2707_v9, %v2642_v16 }
 0x1bf   :  { %vm2691_vm5 = vmor %vm584_vm8, %vm586_vm15  ;;  %vm658_vm15 = vcmask 64512   ;;  %v2746_v21 = vstv %s1897_s16 }
 0x1c0   :  { %1879 = vmatpush.msk.msra.mxu2 %vm2691_vm5, %v3858_v41  ;;  %v1871_v4 = vsel %vm2691_vm5, 1.0, %v1963_v8  ;;  %v717_v6 = vmul.f32 %v711_v37, %v2707_v9  ;;  %3860 = vst [vmem:[#allocation24_spill] sm:$0xff] %v2746_v21  ;;  %v822_v8 = vstv %s821_s19 }
 0x1c2   :  { %1883 = vmatpush.msk.msrb.mxu2 %vm2537_vm3, %v3858_v41  ;;  %vm3861_vm3 = vcmp.lt.s32.totalorder %v2011_v7, 7 }
 0x1c3   :  { %vm3864_vm8 = vmmov %vm3861_vm3 }
 0x1c4   :  { %1884 = vmatpush.msk.msrb.mxu2 %vm2555_vm1, %v3858_v41  ;;  %vm3865_vm1 = vcmp.eq.s32.totalorder %v2011_v7, 0 }
 0x239   :  { %v629_v29 = vpop.f32.mrf.mxu1 }
 0x23a   :  { %649 = vmatpush.msrb.mxu1 %v629_v29  ;;  %v819_v29 = vsub.f32 %v2683_v28, %v2666_v53 }
 0x23b   :  { %v626_v51 = vpop.f32.mrf.mxu0 }
 0x23c   :  { %650 = vmatpush.msrb.mxu1 %v626_v51 }
 0x23d   :  { %1878 = vmatmul.msk.f32.vlgmr.msrb.gmra.mxu1 %vm602_vm14, %v1871_v4 }
 0x2ba   :  { %v652_v20 = vpop.f32.mrf.mxu1 }
 0x2bb   :  { %v655_v62 = vmul.f32 0.25, %v652_v20  ;;  %v825_v20 = vmul.f32 %v819_v29, %v2746_v21 }
 0x2bd   :  { %v657_v13 = vmul.f32 %v2707_v9, %v655_v62 }
 0x2bf   :  { %1880 = vmatmul.msk.f32.vlgmr.msra.gmra.mxu2 %vm658_vm15, %v657_v13  ;;  %v820_v13 = vsub.f32 %v2681_v55, %v2679_v59 }
 0x2c7   :  { %1885 = vmatmul.msk.f32.vlgmr.msrb.gmra.mxu2 %vm602_vm14, %v2683_v28 }
 0x2cf   :  { %1886 = vmatmul.msk.f32.gmra.mxu2 %vm602_vm14, %v2681_v55 }
 0x342   :  { %v679_v43 = vpop.f32.mrf.mxu2 }
 0x343   :  { %703 = vmatpush.msra.mxu3 %v679_v43 }
 0x344   :  { %1881 = vmatmul.msk.f32.vlgmr.msra.gmra.mxu3 %vm658_vm15, %v1872_v2 }
 0x345   :  { %1888 = vmatpush.msk.msrb.mxu3 %vm2691_vm5, %v3858_v41  ;;  %vm3863_vm5 = vcmp.eq.s32.totalorder %v2028_v12, 16 }
 0x34a   :  { %v744_v45 = vpop.f32.mrf.mxu2 }
 0x34c   :  { %1882 = vmatmul.msk.f32.gmra.mxu3 %vm658_vm15, %v1873_v52 }
 0x352   :  { %v747_v22 = vpop.f32.mrf.mxu2 }
 0x353   :  { %764 = vmatpush.msra.mxu1 %v747_v22 }
 0x355   :  { %765 = vmatpush.msra.mxu1 %v744_v45 }
 0x356   :  { %1887 = vmatmul.msk.f32.vlgmr.msra.gmra.mxu1 %vm602_vm14, %v1871_v4 }
 0x3c7   :  { %v705_v24 = vpop.f32.mrf.mxu3 }
 0x3c8   :  { %v715_v25 = vsub.f32 %v714_v10, %v705_v24  ;;  %v826_v24 = vmul.f32 %v820_v13, %v2746_v21 }
 0x3ca   :  { %v2726_v36 = vsub.f32 %v715_v25, %v717_v6  ;;  %v1928_v6 = vld [vmem:[%s3752_s2 + $0x18] sm:$0xff] }
 0x3cc   :  { %3859 = vst [vmem:[#allocation23_spill] sm:$0xff] %v2726_v36  ;;  %v829_v17 = vadd.f32 %v1925_v46, %v2726_v36  ;;  %v836_v46 = vmul.f32 %v2746_v21, %v2679_v59 }
 0x3ce   :  { %v2733_v60 = vsub.f32 %v829_v17, %v833_v31 }
 0x3cf   :  { %v708_v40 = vpop.f32.mrf.mxu3 }
 0x3d0   :  { %v716_v47 = vsub.f32 %v714_v10, %v708_v40  ;;  %945 = vrot.lane.b32.xlu1 %v2733_v60, %s1959_s24  ;;  %v841_v16 = vrot.slane %v2733_v60, 7  ;;  %v1021_v61 = vrot.slane %v2733_v60, 1 }
 0x3d2   :  { %v2738_v58 = vsub.f32 %v716_v47, %v718_v44 }
 0x3d3   :  { %v767_v26 = vpop.f32.mrf.mxu1 }
 0x3d4   :  { %v830_v34 = vadd.f32 %v1926_v18, %v2738_v58  ;;  %v770_v38 = vmul.f32 0.25, %v767_v26 }
 0x3d6   :  { %v2748_v48 = vsub.f32 %v830_v34, %v834_v27  ;;  %v772_v0 = vmul.f32 %v2746_v21, %v770_v38 }
 0x3d8   :  { %1889 = vmatmul.msk.f32.vlgmr.msrb.gmra.mxu3 %vm658_vm15, %v772_v0  ;;  %948 = vrot.lane.b32.xlu2 %v2748_v48, %s1959_s24  ;;  %v842_v63 = vrot.slane %v2748_v48, 7  ;;  %v1022_v19 = vrot.slane %v2748_v48, 1 }
 0x3da   :  { %v2758_v37 = vsel %vm114_vm0, %v841_v16, %v842_v63  ;;  %v2766_v30 = vsel %vm3861_vm3, %v1021_v61, %v1022_v19 }
 0x3db   :  { %856 = vrot.lane.b32.xlu0 %v2758_v37, %s1959_s24 }
 0x3e3   :  { %1033 = vrot.lane.b32.xlu0 %v2766_v30, %s1959_s24 }
 0x44d   :  { %v857_v34 = vpop.permute.xlu0 %856 }
 0x45b   :  { %v793_v41 = vpop.f32.mrf.mxu3 }
 0x45c   :  { %811 = vmatpush.msrb.mxu0 %v793_v41  ;;  %v1034_v41 = vpop.permute.xlu0 %1033 }
 0x45d   :  { %1890 = vmatmul.msk.f32.vlgmr.msrb.gmra.mxu0 %vm658_vm15, %v1872_v2  ;;  %v1927_v2 = vld [vmem:[%s3752_s2 + $0x10] sm:$0xff] }
 0x465   :  { %1891 = vmatmul.msk.f32.gmra.mxu0 %vm658_vm15, %v1873_v52  ;;  %v835_v52 = vmul.f32 %v2746_v21, %v2666_v53  ;;  %vm3866_vm15 = vmmov %vm3861_vm3  ;;  %vm3867_vm3 = vcmask 1047680  }
 0x4da   :  { %v813_v51 = vpop.f32.mrf.mxu0 }
 0x4db   :  { %v823_v4 = vsub.f32 %v822_v8, %v813_v51 }
 0x4dd   :  { %v2775_v62 = vsub.f32 %v823_v4, %v825_v20 }
 0x4df   :  { %3862 = vst [vmem:[#allocation25_spill] sm:$0xff] %v2775_v62  ;;  %v831_v43 = vadd.f32 %v1927_v2, %v2775_v62 }
 0x4e1   :  { %v2785_v28 = vsub.f32 %v831_v43, %v835_v52 }
 0x4e2   :  { %v816_v45 = vpop.f32.mrf.mxu0 }
 0x4e3   :  { %v824_v22 = vsub.f32 %v822_v8, %v816_v45  ;;  %951 = vrot.lane.b32.xlu0 %v2785_v28, %s1959_s24  ;;  %v843_v55 = vrot.slane %v2785_v28, 7  ;;  %v1023_v17 = vrot.slane %v2785_v28, 1 }
 0x4e5   :  { %v2791_v10 = vsub.f32 %v824_v22, %v826_v24  ;;  %v846_v25 = vsel %vm114_vm0, %v842_v63, %v843_v55  ;;  %v1026_v44 = vsel %vm3864_vm8, %v1022_v19, %v1023_v17  ;;  %v946_v63 = vpop.permute.xlu1 %945  ;;  %v949_v19 = vpop.permute.xlu2 %948  ;;  %vm3869_vm8 = vmmov %vm3867_vm3 }
 0x4e6   :  { %v2798_v53 = vsel %vm3863_vm5, %v2785_v28, %v846_v25  ;;  %v2830_v18 = vsel %vm51_vm4, %v2748_v48, %v1026_v44  ;;  %vm3868_vm5 = vmmov %vm3867_vm3  ;;  %v1035_v51 = vsel %vm3869_vm8, %v1034_v41, %v2766_v30 }
 0x4e7   :  { %v832_v31 = vadd.f32 %v1928_v6, %v2791_v10  ;;  %859 = vrot.lane.b32.xlu2 %v2798_v53, %s1959_s24  ;;  %v947_v29 = vsel %vm3868_vm5, %v946_v63, %v2733_v60 }
 0x4e9   :  { %v2809_v40 = vsub.f32 %v832_v31, %v836_v46 }
 0x4eb   :  { %v844_v47 = vrot.slane %v2809_v40, 7  ;;  %v1024_v38 = vrot.slane %v2809_v40, 1 }
 0x4ed   :  { %v2816_v26 = vsel %vm114_vm0, %v843_v55, %v844_v47  ;;  %v848_v27 = vsel %vm114_vm0, %v844_v47, %v841_v16  ;;  %v2839_v0 = vsel %vm3866_vm15, %v1023_v17, %v1024_v38  ;;  %v858_v16 = vsel %vm3867_vm3, %v857_v34, %v2758_v37 }
 0x4ee   :  { %862 = vrot.lane.b32.xlu1 %v2816_v26, %s1959_s24  ;;  %v2825_v59 = vsel %vm3865_vm1, %v2733_v60, %v848_v27  ;;  %vm3870_vm1 = vmmov %vm3867_vm3  ;;  %v1028_v4 = vsel %vm3866_vm15, %v1024_v38, %v1021_v61  ;;  %vm3871_vm3 = vcmp.eq.s32.totalorder %v2075_v23, 31 }
 0x4ef   :  { %853 = vrot.lane.b32.xlu0 %v2825_v59, %s1959_s24  ;;  %1036 = vrot.lane.b32.xlu2 %v2830_v18, %s1959_s24  ;;  %v950_v8 = vsel %vm3870_vm1, %v949_v19, %v2748_v48  ;;  %v2862_v20 = vsel %vm3871_vm3, %v2809_v40, %v1028_v4  ;;  %vm3872_vm5 = vmmov %vm3870_vm1 }
 0x4f0   :  { %vm3873_vm8 = vmmov %vm3870_vm1 }
 0x4f1   :  { %vm3874_vm15 = vmmov %vm3870_vm1 }
 0x4f2   :  { %vm3875_vm3 = vmmov %vm3870_vm1 }
 0x4f6   :  { %1039 = vrot.lane.b32.xlu1 %v2839_v0, %s1959_s24 }
 0x4f7   :  { %867 = vrot.lane.b32.xlu0 %v858_v16, %s1959_s24  ;;  %954 = vrot.lane.b32.xlu2 %v2809_v40, %s1959_s24 }
 0x4fe   :  { %957 = vrot.lane.b32.xlu1 %v947_v29, %s1959_s24 }
 0x4ff   :  { %1045 = vrot.lane.b32.xlu0 %v1035_v51, %s1959_s24  ;;  %959 = vrot.lane.b32.xlu2 %v950_v8, %s1959_s24 }
 0x506   :  { %1042 = vrot.lane.b32.xlu1 %v2862_v20, %s1959_s24 }
 0x541   :  { %v860_v13 = vpop.permute.xlu2 %859 }
 0x542   :  { %v861_v2 = vsel %vm3872_vm5, %v860_v13, %v2798_v53  ;;  %vm3876_vm5 = vmmov %vm3870_vm1 }
 0x543   :  { %869 = vrot.lane.b32.xlu2 %v861_v2, %s1959_s24 }
 0x549   :  { %v1037_v43 = vpop.permute.xlu2 %1036 }
 0x54a   :  { %v1038_v52 = vsel %vm3873_vm8, %v1037_v43, %v2830_v18  ;;  %vm3877_vm8 = vmmov %vm3870_vm1 }
 0x54b   :  { %1047 = vrot.lane.b32.xlu2 %v1038_v52, %s1959_s24 }
 0x551   :  { %v955_v61 = vpop.permute.xlu2 %954 }
 0x552   :  { %v956_v45 = vsel %vm3870_vm1, %v955_v61, %v2809_v40 }
 0x553   :  { %963 = vrot.lane.b32.xlu2 %v956_v45, %s1959_s24 }
 0x555   :  { %v952_v22 = vpop.permute.xlu0 %951 }
 0x556   :  { %v953_v47 = vsel %vm3876_vm5, %v952_v22, %v2785_v28  ;;  %vm3880_vm5 = vmmov %vm3870_vm1 }
 0x559   :  { %v960_v44 = vpop.permute.xlu2 %959 }
 0x55a   :  { %v966_v34 = vsel %vm3870_vm1, %v960_v44, %v2748_v48 }
 0x560   :  { %v863_v24 = vpop.permute.xlu1 %862 }
 0x561   :  { %v854_v55 = vpop.permute.xlu0 %853  ;;  %v864_v27 = vsel %vm3877_vm8, %v863_v24, %v2816_v26  ;;  %vm3881_vm8 = vmmov %vm3870_vm1 }
 0x568   :  { %v1040_v25 = vpop.permute.xlu1 %1039 }
 0x569   :  { %v868_v6 = vpop.permute.xlu0 %867 }
 0x56a   :  { %v874_v31 = vsel %vm3874_vm15, %v868_v6, %v2758_v37  ;;  %vm3878_vm15 = vmmov %vm3870_vm1 }
 0x56b   :  { %883 = vrot.lane.b32.xlu0 %v874_v31, %s1960_s27  ;;  %v855_v38 = vsel %vm3878_vm15, %v854_v55, %v2825_v59  ;;  %vm3882_vm15 = vmmov %vm3870_vm1 }
 0x570   :  { %v958_v46 = vpop.permute.xlu1 %957 }
 0x571   :  { %v965_v17 = vsel %vm3875_vm3, %v958_v46, %v2733_v60  ;;  %vm3879_vm3 = vmmov %vm3870_vm1  ;;  %v1046_v63 = vpop.permute.xlu0 %1045 }
 0x572   :  { %973 = vrot.lane.b32.xlu1 %v965_v17, %s1960_s27  ;;  %997 = vrot.lane.b32.xlu2 %v965_v17, %s1961_s28  ;;  %v1041_v16 = vsel %vm3879_vm3, %v1040_v25, %v2839_v0  ;;  %v1053_v19 = vsel %vm3880_vm5, %v1046_v63, %v2766_v30  ;;  %vm3883_vm3 = vmmov %vm3870_vm1 }
 0x573   :  { %961 = vrot.lane.b32.xlu0 %v953_v47, %s1959_s24  ;;  %vm3884_vm5 = vmmov %vm3870_vm1 }
 0x578   :  { %v1043_v41 = vpop.permute.xlu1 %1042 }
 0x579   :  { %v1044_v29 = vsel %vm3881_vm8, %v1043_v41, %v2862_v20  ;;  %vm3885_vm8 = vmmov %vm3870_vm1 }
 0x57a   :  { %871 = vrot.lane.b32.xlu1 %v864_v27, %s1959_s24  ;;  %975 = vrot.lane.b32.xlu2 %v966_v34, %s1960_s27 }
 0x57b   :  { %865 = vrot.lane.b32.xlu0 %v855_v38, %s1959_s24 }
 0x582   :  { %1049 = vrot.lane.b32.xlu1 %v1041_v16, %s1959_s24  ;;  %999 = vrot.lane.b32.xlu2 %v966_v34, %s1961_s28 }
 0x583   :  { %919 = vrot.lane.b32.xlu0 %v874_v31, %s1961_s28 }
 0x58a   :  { %1061 = vrot.lane.b32.xlu1 %v1053_v19, %s1960_s27 }
 0x592   :  { %1051 = vrot.lane.b32.xlu1 %v1044_v29, %s1959_s24 }
 0x59d   :  { %v870_v51 = vpop.permute.xlu2 %869 }
 0x59e   :  { %v875_v8 = vsel %vm3870_vm1, %v870_v51, %v2798_v53 }
 0x59f   :  { %885 = vrot.lane.b32.xlu2 %v875_v8, %s1960_s27 }
 0x5a5   :  { %v1048_v4 = vpop.permute.xlu2 %1047 }
 0x5a6   :  { %v1054_v46 = vsel %vm3870_vm1, %v1048_v4, %v2830_v18 }
 0x5a7   :  { %921 = vrot.lane.b32.xlu2 %v875_v8, %s1961_s28 }
 0x5ad   :  { %v964_v13 = vpop.permute.xlu2 %963 }
 0x5ae   :  { %v968_v2 = vsel %vm3882_vm15, %v964_v13, %v2809_v40  ;;  %vm3886_vm15 = vmmov %vm3870_vm1 }
 0x5af   :  { %979 = vrot.lane.b32.xlu2 %v968_v2, %s1960_s27 }
 0x5cc   :  { %v998_v27 = vpop.permute.xlu2 %997 }
 0x5d4   :  { %v976_v34 = vpop.permute.xlu2 %975 }
 0x5dc   :  { %v1000_v38 = vpop.permute.xlu2 %999 }
 0x5dd   :  { %v884_v43 = vpop.permute.xlu0 %883 }
 0x5e4   :  { %v974_v52 = vpop.permute.xlu1 %973 }
 0x5e5   :  { %v962_v61 = vpop.permute.xlu0 %961 }
 0x5e6   :  { %v967_v45 = vsel %vm3883_vm3, %v962_v61, %v2785_v28  ;;  %vm3887_vm3 = vmmov %vm3870_vm1 }
 0x5e7   :  { %1001 = vrot.lane.b32.xlu0 %v967_v45, %s1961_s28  ;;  %977 = vrot.lane.b32.xlu1 %v967_v45, %s1960_s27  ;;  %v3890_v45 = vld [vmem:[#allocation12_spill] sm:$0xff] }
 0x5ec   :  { %v872_v22 = vpop.permute.xlu1 %871 }
 0x5ed   :  { %v876_v24 = vsel %vm3884_vm5, %v872_v22, %v2816_v26  ;;  %v866_v55 = vpop.permute.xlu0 %865  ;;  %vm3888_vm5 = vcmp.eq.s32.totalorder %v2193_v54, 0  ;;  %v910_v22 = vmul.f32 %v2758_v37, %v3890_v45 }
 0x5ee   :  { %v873_v6 = vsel %vm3885_vm8, %v866_v55, %v2825_v59  ;;  %v894_v4 = vsel %vm3888_vm5, %v2758_v37, %v884_v43  ;;  %vm3889_vm8 = vcmp.eq.s32.totalorder %v2193_v54, 15  ;;  %vm3891_vm1 = vmmov %vm3888_vm5 }
 0x5ef   :  { %887 = vrot.lane.b32.xlu1 %v876_v24, %s1960_s27  ;;  %1003 = vrot.lane.b32.xlu0 %v968_v2, %s1961_s28  ;;  %v902_v61 = vmul.f32 %v894_v4, %v2206_v57  ;;  %v986_v43 = vsel %vm3891_vm1, %v2748_v48, %v976_v34  ;;  %vm3895_vm5 = vmmov %vm3891_vm1  ;;  %v1010_v34 = vsel %vm3889_vm8, %v2748_v48, %v1000_v38  ;;  %v3899_v38 = vld [vmem:[#allocation16_spill] sm:$0xff] }
 0x5f4   :  { %v1050_v25 = vpop.permute.xlu1 %1049 }
 0x5f5   :  { %v1055_v44 = vsel %vm3887_vm3, %v1050_v25, %v2839_v0  ;;  %v920_v63 = vpop.permute.xlu0 %919  ;;  %v914_v25 = vadd.f32 %v910_v22, %v902_v61  ;;  %vm3894_vm3 = vmmov %vm3891_vm1 }
 0x5f7   :  { %923 = vrot.lane.b32.xlu1 %v876_v24, %s1961_s28  ;;  %881 = vrot.lane.b32.xlu0 %v873_v6, %s1960_s27 }
 0x5f9   :  { %v886_v16 = vpop.permute.xlu2 %885 }
 0x5fc   :  { %v2924_v31 = vpop.permute.xlu1 %1061 }
 0x5ff   :  { %1063 = vrot.lane.b32.xlu1 %v1054_v46, %s1960_s27  ;;  %917 = vrot.lane.b32.xlu0 %v873_v6, %s1961_s28 }
 0x601   :  { %v922_v41 = vpop.permute.xlu2 %921 }
 0x604   :  { %v1052_v17 = vpop.permute.xlu1 %1051 }
 0x605   :  { %v1056_v47 = vsel %vm3886_vm15, %v1052_v17, %v2862_v20  ;;  %vm3892_vm15 = vmmov %vm3891_vm1 }
 0x606   :  { %1103 = vrot.lane.b32.xlu2 %v1056_v47, %s1961_s28  ;;  %vm3896_vm1 = vmmov %vm3889_vm8 }
 0x607   :  { %1067 = vrot.lane.b32.xlu1 %v1056_v47, %s1960_s27  ;;  %1065 = vrot.lane.b32.xlu0 %v1055_v44, %s1960_s27  ;;  %v931_v61 = vsel %vm3896_vm1, %v2798_v53, %v922_v41  ;;  %v1014_v41 = vmul.f32 %v1010_v34, %v2438_v15 }
 0x609   :  { %v980_v8 = vpop.permute.xlu2 %979 }
 0x60e   :  { %1099 = vrot.lane.b32.xlu2 %v1054_v46, %s1961_s28 }
 0x60f   :  { %1101 = vrot.lane.b32.xlu1 %v1055_v44, %s1961_s28  ;;  %1097 = vrot.lane.b32.xlu0 %v1053_v19, %s1961_s28  ;;  %v930_v19 = vsel %vm3889_vm8, %v2758_v37, %v920_v63  ;;  %v3893_v44 = vld [vmem:[#allocation15_spill] sm:$0xff]  ;;  %v895_v37 = vsel %vm3894_vm3, %v2798_v53, %v886_v16  ;;  %vm3902_vm8 = vmmov %vm3894_vm3 }
 0x610   :  { %v938_v24 = vmul.f32 %v930_v19, %v2238_v5  ;;  %v990_v63 = vmul.f32 %v986_v43, %v3893_v44  ;;  %v911_v43 = vmul.f32 %v2798_v53, %v3899_v38  ;;  %v935_v53 = vsel %vm2508_vm12, 0.0, %v931_v61 }
 0x612   :  { %v942_v6 = vadd.f32 %v938_v24, %v914_v25  ;;  %v899_v25 = vsel %vm2424_vm11, 0.0, %v895_v37 }
 0x614   :  { %v994_v19 = vadd.f32 %v990_v63, %v942_v6  ;;  %v3900_v6 = vld [vmem:[#allocation18_spill] sm:$0xff] }
 0x615   :  { %v903_v24 = vmul.f32 %v899_v25, %v3900_v6 }
 0x659   :  { %v978_v29 = vpop.permute.xlu1 %977  ;;  %v2940_v51 = vpop.permute.xlu0 %1001 }
 0x65a   :  { %v987_v33 = vsel %vm3902_vm8, %v2785_v28, %v978_v29 }
 0x660   :  { %v2952_v55 = vpop.permute.xlu2 %1103 }
 0x661   :  { %v888_v13 = vpop.permute.xlu1 %887  ;;  %v1004_v2 = vpop.permute.xlu0 %1003 }
 0x662   :  { %v896_v4 = vsel %vm3895_vm5, %v2816_v26, %v888_v13  ;;  %v985_v13 = vsel %vm3894_vm3, %v2733_v60, %v974_v52  ;;  %v1090_v52 = vmul.f32 %v2830_v18, %v2564_v1  ;;  %vm3901_vm5 = vmmov %vm3896_vm1 }
 0x663   :  { %v1009_v37 = vsel %vm3901_vm5, %v2733_v60, %v998_v27  ;;  %vm3905_vm5 = vmmov %vm3902_vm8 }
 0x664   :  { %v988_v29 = vsel %vm3905_vm5, %v2809_v40, %v980_v8  ;;  %vm3907_vm8 = vmmov %vm3905_vm5 }
 0x668   :  { %v1100_v63 = vpop.permute.xlu2 %1099 }
 0x669   :  { %v924_v46 = vpop.permute.xlu1 %923  ;;  %v882_v17 = vpop.permute.xlu0 %881  ;;  %v1110_v27 = vsel %vm3896_vm1, %v2830_v18, %v1100_v63 }
 0x66a   :  { %v893_v47 = vsel %vm3892_vm15, %v2825_v59, %v882_v17  ;;  %vm3897_vm15 = vmmov %vm3896_vm1  ;;  %v904_v17 = vmul.f32 %v896_v4, %v3900_v6 }
 0x66b   :  { %v932_v22 = vsel %vm3897_vm15, %v2816_v26, %v924_v46  ;;  %v897_v16 = vsel %vm2202_vm7, 0.0, %v893_v47  ;;  %v912_v46 = vmul.f32 %v2816_v26, %v3899_v38  ;;  %v909_v47 = vmul.f32 %v2825_v59, %v3890_v45  ;;  %vm3903_vm15 = vmmov %vm3894_vm3 }
 0x66c   :  { %v940_v4 = vmul.f32 %v932_v22, %v2352_v42  ;;  %v901_v34 = vmul.f32 %v897_v16, %v2206_v57  ;;  %v989_v26 = vmul.f32 %v985_v13, %v3893_v44  ;;  %v1018_v45 = vadd.f32 %v1014_v41, %v994_v19  ;;  %vm3904_vm3 = vmmov %vm3896_vm1 }
 0x66d   :  { %v916_v14 = vadd.f32 %v912_v46, %v904_v17  ;;  %v939_v16 = vmul.f32 %v935_v53, %v2352_v42  ;;  %v915_v46 = vadd.f32 %v911_v43, %v903_v24  ;;  %v1114_v53 = vsel %vm2521_vm6, 0.0, %v1110_v27 }
 0x66e   :  { %v913_v41 = vadd.f32 %v909_v47, %v901_v34  ;;  %v1013_v24 = vmul.f32 %v1009_v37, %v2438_v15 }
 0x66f   :  { %v944_v17 = vadd.f32 %v940_v4, %v916_v14  ;;  %v1012_v14 = vsel %vm3896_vm1, %v2809_v40, %v1004_v2  ;;  %v943_v43 = vadd.f32 %v939_v16, %v915_v46 }
 0x671   :  { %v1064_v38 = vpop.permute.xlu1 %1063  ;;  %v918_v23 = vpop.permute.xlu0 %917 }
 0x672   :  { %v1074_v61 = vsel %vm3903_vm15, %v2830_v18, %v1064_v38  ;;  %v929_v22 = vsel %vm3904_vm3, %v2825_v59, %v918_v23  ;;  %v1073_v23 = vsel %vm3907_vm8, %v2766_v30, %v2924_v31  ;;  %v3908_v59 = vld [vmem:[#allocation17_spill] sm:$0xff]  ;;  %vm3910_vm15 = vmmov %vm3896_vm1 }
 0x673   :  { %v1078_v19 = vsel %vm2581_vm2, 0.0, %v1074_v61  ;;  %v933_v25 = vsel %vm2232_vm9, 0.0, %v929_v22  ;;  %v991_v8 = vmul.f32 %v987_v33, %v3908_v59  ;;  %v992_v61 = vmul.f32 %v988_v29, %v3908_v59  ;;  %vm3911_vm3 = vmmov %vm3896_vm1 }
 0x674   :  { %v1082_v18 = vmul.f32 %v1078_v19, %v2502_v50  ;;  %v937_v38 = vmul.f32 %v933_v25, %v2238_v5  ;;  %v1011_v31 = vsel %vm3910_vm15, %v2785_v28, %v2940_v51  ;;  %v1118_v33 = vmul.f32 %v1114_v53, %v2376_v11  ;;  %vm3913_vm8 = vmmov %vm3905_vm5 }
 0x675   :  { %v996_v34 = vadd.f32 %v992_v61, %v944_v17  ;;  %v1081_v29 = vmul.f32 %v1073_v23, %v2502_v50  ;;  %v995_v19 = vadd.f32 %v991_v8, %v943_v43  ;;  %v1112_v2 = vsel %vm3911_vm3, %v2862_v20, %v2952_v55  ;;  %vm3915_vm15 = vmmov %vm3896_vm1 }
 0x676   :  { %v1086_v47 = vadd.f32 %v1082_v18, %v1018_v45  ;;  %v941_v4 = vadd.f32 %v937_v38, %v913_v41  ;;  %v3912_v45 = vld [vmem:[#allocation19_spill] sm:$0xff]  ;;  %vm3916_vm3 = vcmp.lt.s32.totalorder %v2011_v7, 7 }
 0x677   :  { %v1016_v37 = vmul.f32 %v1012_v14, %v3912_v45  ;;  %v1015_v17 = vmul.f32 %v1011_v31, %v3912_v45 }
 0x678   :  { %v1094_v27 = vadd.f32 %v1090_v52, %v1086_v47  ;;  %v993_v22 = vadd.f32 %v989_v26, %v941_v4  ;;  %v1126_v26 = vadd.f32 %v2748_v48, %v2738_v58  ;;  %v1116_v47 = vsel %vm2658_vm13, 0.0, %v1112_v2 }
 0x679   :  { %v1068_v16 = vpop.permute.xlu1 %1067  ;;  %v1066_v25 = vpop.permute.xlu0 %1065  ;;  %v1020_v8 = vadd.f32 %v1016_v37, %v996_v34  ;;  %v1019_v14 = vadd.f32 %v1015_v17, %v995_v19  ;;  %v1092_v48 = vmul.f32 %v2862_v20, %v2434_v56  ;;  %v1120_v31 = vmul.f32 %v1116_v47, %v2442_v49 }
 0x67a   :  { %v1122_v41 = vadd.f32 %v1118_v33, %v1094_v27  ;;  %v1017_v18 = vadd.f32 %v1013_v24, %v993_v22  ;;  %v1076_v51 = vsel %vm3905_vm5, %v2862_v20, %v1068_v16  ;;  %v1075_v52 = vsel %vm3913_vm8, %v2839_v0, %v1066_v25  ;;  %vm3918_vm8 = vmmov %vm3916_vm3 }
 0x67b   :  { %v1080_v38 = vsel %vm2360_vm10, 0.0, %v1076_v51  ;;  %v1083_v46 = vmul.f32 %v1075_v52, %v2372_v35  ;;  %v1091_v34 = vmul.f32 %v2839_v0, %v2434_v56  ;;  %v1089_v22 = vmul.f32 %v2766_v30, %v2564_v1 }
 0x67c   :  { %v1130_v23 = vmul.f32 %v1122_v41, %v2707_v9  ;;  %v1084_v53 = vmul.f32 %v1080_v38, %v2372_v35  ;;  %v1085_v61 = vadd.f32 %v1081_v29, %v1017_v18  ;;  %v1128_v51 = vadd.f32 %v2809_v40, %v2791_v10 }
 0x67d   :  { %v1087_v43 = vadd.f32 %v1083_v46, %v1019_v14  ;;  %vm3917_vm5 = vcmp.eq.s32.totalorder %v2028_v12, 16 }
 0x67e   :  { %v3063_v4 = vsub.f32 %v1126_v26, %v1130_v23  ;;  %v1088_v24 = vadd.f32 %v1084_v53, %v1020_v8  ;;  %v1093_v25 = vadd.f32 %v1089_v22, %v1085_v61  ;;  %v1125_v23 = vadd.f32 %v2733_v60, %v2726_v36 }
 0x67f   :  { %v1095_v37 = vadd.f32 %v1091_v34, %v1087_v43 }
 0x680   :  { %v1096_v33 = vadd.f32 %v1092_v48, %v1088_v24  ;;  %1244 = vrot.lane.b32.xlu2 %v3063_v4, %s1959_s24  ;;  %v1318_v24 = vrot.slane %v3063_v4, 1 }
 0x681   :  { %v1102_v27 = vpop.permute.xlu1 %1101  ;;  %v1098_v29 = vpop.permute.xlu0 %1097 }
 0x682   :  { %v1124_v19 = vadd.f32 %v1120_v31, %v1096_v33  ;;  %v1111_v20 = vsel %vm3896_vm1, %v2839_v0, %v1102_v27  ;;  %v1109_v2 = vsel %vm3915_vm15, %v2766_v30, %v1098_v29  ;;  %v1127_v0 = vadd.f32 %v2785_v28, %v2775_v62  ;;  %vm3920_vm1 = vmmov %vm3916_vm3  ;;  %v3953_v62 = vld [vmem:[#allocation16_spill] sm:$0xff] }
 0x683   :  { %v1119_v16 = vmul.f32 %v1111_v20, %v2442_v49  ;;  %v1117_v41 = vmul.f32 %v1109_v2, %v2376_v11  ;;  %v1138_v28 = vrot.slane %v3063_v4, 7  ;;  %vm3921_vm15 = vmmov %vm3920_vm1  ;;  %v3922_v2 = vld [vmem:[#allocation11_spill] sm:$0xff] }
 0x684   :  { %v1132_v18 = vmul.f32 %v1124_v19, %v2746_v21 }
 0x685   :  { %v1123_v52 = vadd.f32 %v1119_v16, %v1095_v37  ;;  %v1121_v26 = vadd.f32 %v1117_v41, %v1093_v25 }
 0x686   :  { %v3087_v17 = vsub.f32 %v1128_v51, %v1132_v18 }
 0x687   :  { %v1131_v30 = vmul.f32 %v1123_v52, %v2746_v21  ;;  %v1129_v46 = vmul.f32 %v1121_v26, %v2707_v9 }
 0x688   :  { %v1320_v8 = vrot.slane %v3087_v17, 1  ;;  %v1140_v27 = vrot.slane %v3087_v17, 7 }
 0x689   :  { %v3090_v38 = vsub.f32 %v1127_v0, %v1131_v30  ;;  %v3101_v61 = vsub.f32 %v1125_v23, %v1129_v46 }
 0x68b   :  { %1247 = vrot.lane.b32.xlu1 %v3090_v38, %s1959_s24  ;;  %v1319_v40 = vrot.slane %v3090_v38, 1  ;;  %v1139_v53 = vrot.slane %v3090_v38, 7  ;;  %v1137_v48 = vrot.slane %v3101_v61, 7  ;;  %v1317_v22 = vrot.slane %v3101_v61, 1 }
 0x68d   :  { %v3105_v14 = vsel %vm3916_vm3, %v1319_v40, %v1320_v8  ;;  %v1142_v60 = vsel %vm114_vm0, %v1138_v28, %v1139_v53  ;;  %v1322_v43 = vsel %vm3918_vm8, %v1318_v24, %v1319_v40  ;;  %v3126_v31 = vsel %vm114_vm0, %v1137_v48, %v1138_v28 }
 0x68e   :  { %1335 = vrot.lane.b32.xlu2 %v3105_v14, %s1959_s24  ;;  %v3114_v47 = vsel %vm3917_vm5, %v3090_v38, %v1142_v60  ;;  %v3133_v34 = vsel %vm51_vm4, %v3063_v4, %v1322_v43  ;;  %v3141_v29 = vsel %vm114_vm0, %v1139_v53, %v1140_v27  ;;  %v3147_v19 = vsel %vm3920_vm1, %v1317_v22, %v1318_v24 }
 0x68f   :  { %1155 = vrot.lane.b32.xlu0 %v3114_v47, %s1959_s24  ;;  %v1324_v20 = vsel %vm3921_vm15, %v1320_v8, %v1317_v22  ;;  %vm3923_vm3 = vcmp.eq.s32.totalorder %v3922_v2, 31  ;;  %v1144_v16 = vsel %vm114_vm0, %v1140_v27, %v1137_v48  ;;  %vm3924_vm5 = vcmp.eq.s32.totalorder %v2011_v7, 0 }
 0x690   :  { %v3158_v37 = vsel %vm3923_vm3, %v3087_v17, %v1324_v20  ;;  %v3167_v25 = vsel %vm3924_vm5, %v3101_v61, %v1144_v16  ;;  %vm3925_vm8 = vcmask 1047680   ;;  %v1208_v7 = vmul.f32 %v3141_v29, %v3953_v62 }
 0x691   :  { %vm3926_vm1 = vmmov %vm3925_vm8 }
 0x692   :  { %vm3927_vm15 = vmmov %vm3926_vm1 }
 0x693   :  { %1250 = vrot.lane.b32.xlu1 %v3087_v17, %s1959_s24  ;;  %vm3928_vm3 = vmmov %vm3926_vm1 }
 0x694   :  { %vm3929_vm5 = vmmov %vm3926_vm1 }
 0x696   :  { %1152 = vrot.lane.b32.xlu2 %v3126_v31, %s1959_s24 }
 0x697   :  { %1332 = vrot.lane.b32.xlu0 %v3133_v34, %s1959_s24 }
 0x69b   :  { %1158 = vrot.lane.b32.xlu1 %v3141_v29, %s1959_s24 }
 0x69e   :  { %1329 = vrot.lane.b32.xlu2 %v3147_v19, %s1959_s24 }
 0x69f   :  { %1241 = vrot.lane.b32.xlu0 %v3101_v61, %s1959_s24 }
 0x6a3   :  { %1338 = vrot.lane.b32.xlu1 %v3158_v37, %s1959_s24 }
 0x6a7   :  { %1149 = vrot.lane.b32.xlu0 %v3167_v25, %s1959_s24 }
 0x6da   :  { %v1245_v41 = vpop.permute.xlu2 %1244 }
 0x6db   :  { %v1246_v18 = vsel %vm3925_vm8, %v1245_v41, %v3063_v4  ;;  %vm3930_vm8 = vmmov %vm3926_vm1 }
 0x6dc   :  { %1255 = vrot.lane.b32.xlu2 %v1246_v18, %s1959_s24 }
 0x6e8   :  { %v1336_v51 = vpop.permute.xlu2 %1335 }
 0x6e9   :  { %v1337_v52 = vsel %vm3926_vm1, %v1336_v51, %v3105_v14 }
 0x6ea   :  { %1345 = vrot.lane.b32.xlu2 %v1337_v52, %s1959_s24 }
 0x6f0   :  { %v1153_v26 = vpop.permute.xlu2 %1152 }
 0x6f1   :  { %v1154_v0 = vsel %vm3927_vm15, %v1153_v26, %v3126_v31  ;;  %vm3931_vm15 = vmmov %vm3926_vm1 }
 0x6f2   :  { %1163 = vrot.lane.b32.xlu2 %v1154_v0, %s1959_s24 }
 0x6f8   :  { %v1330_v30 = vpop.permute.xlu2 %1329 }
 0x6f9   :  { %v1331_v46 = vsel %vm3928_vm3, %v1330_v30, %v3147_v19  ;;  %vm3932_vm3 = vmmov %vm3926_vm1 }
 0x6fa   :  { %1341 = vrot.lane.b32.xlu2 %v1331_v46, %s1959_s24 }
 0x6fd   :  { %v1248_v23 = vpop.permute.xlu1 %1247 }
 0x6fe   :  { %v1249_v40 = vsel %vm3929_vm5, %v1248_v23, %v3090_v38  ;;  %vm3933_vm5 = vmmov %vm3926_vm1 }
 0x6ff   :  { %1257 = vrot.lane.b32.xlu1 %v1249_v40, %s1959_s24 }
 0x701   :  { %v1156_v8 = vpop.permute.xlu0 %1155 }
 0x702   :  { %v1157_v28 = vsel %vm3930_vm8, %v1156_v8, %v3114_v47  ;;  %vm3934_vm8 = vmmov %vm3926_vm1 }
 0x703   :  { %1165 = vrot.lane.b32.xlu0 %v1157_v28, %s1959_s24 }
 0x705   :  { %v1251_v53 = vpop.permute.xlu1 %1250 }
 0x706   :  { %v1252_v60 = vsel %vm3926_vm1, %v1251_v53, %v3087_v17 }
 0x707   :  { %1259 = vrot.lane.b32.xlu1 %v1252_v60, %s1959_s24 }
 0x709   :  { %v1333_v48 = vpop.permute.xlu0 %1332 }
 0x70a   :  { %v1334_v24 = vsel %vm3931_vm15, %v1333_v48, %v3133_v34  ;;  %vm3935_vm15 = vmmov %vm3926_vm1 }
 0x70b   :  { %1343 = vrot.lane.b32.xlu0 %v1334_v24, %s1959_s24 }
 0x70d   :  { %v1159_v43 = vpop.permute.xlu1 %1158 }
 0x70e   :  { %v1160_v27 = vsel %vm3932_vm3, %v1159_v43, %v3141_v29  ;;  %vm3936_vm3 = vmmov %vm3926_vm1 }
 0x70f   :  { %1167 = vrot.lane.b32.xlu1 %v1160_v27, %s1959_s24 }
 0x711   :  { %v1242_v22 = vpop.permute.xlu0 %1241 }
 0x712   :  { %v1243_v20 = vsel %vm3933_vm5, %v1242_v22, %v3101_v61  ;;  %vm3937_vm5 = vmmov %vm3926_vm1 }
 0x713   :  { %1253 = vrot.lane.b32.xlu0 %v1243_v20, %s1959_s24 }
 0x715   :  { %v1339_v16 = vpop.permute.xlu1 %1338 }
 0x716   :  { %v1340_v41 = vsel %vm3934_vm8, %v1339_v16, %v3158_v37  ;;  %vm3938_vm8 = vmmov %vm3926_vm1 }
 0x717   :  { %1347 = vrot.lane.b32.xlu1 %v1340_v41, %s1959_s24 }
 0x719   :  { %v1150_v18 = vpop.permute.xlu0 %1149 }
 0x71a   :  { %v1151_v51 = vsel %vm3926_vm1, %v1150_v18, %v3167_v25 }
 0x71b   :  { %1161 = vrot.lane.b32.xlu0 %v1151_v51, %s1959_s24 }
 0x736   :  { %v1256_v52 = vpop.permute.xlu2 %1255 }
 0x737   :  { %v1262_v26 = vsel %vm3935_vm15, %v1256_v52, %v3063_v4  ;;  %vm3939_vm15 = vmmov %vm3926_vm1 }
 0x738   :  { %1271 = vrot.lane.b32.xlu2 %v1262_v26, %s1960_s27  ;;  %1295 = vrot.lane.b32.xlu1 %v1262_v26, %s1961_s28 }
 0x744   :  { %v1346_v0 = vpop.permute.xlu2 %1345 }
 0x74c   :  { %v1164_v8 = vpop.permute.xlu2 %1163 }
 0x74d   :  { %v1170_v53 = vsel %vm3938_vm8, %v1164_v8, %v3126_v31  ;;  %vm3942_vm8 = vmmov %vm3926_vm1 }
 0x754   :  { %v1342_v24 = vpop.permute.xlu2 %1341 }
 0x755   :  { %v1349_v27 = vsel %vm3939_vm15, %v1342_v24, %v3147_v19  ;;  %vm3943_vm15 = vmmov %vm3926_vm1 }
 0x771   :  { %v1258_v30 = vpop.permute.xlu1 %1257 }
 0x772   :  { %v1263_v46 = vsel %vm3936_vm3, %v1258_v30, %v3090_v38  ;;  %vm3940_vm3 = vmmov %vm3926_vm1 }
 0x773   :  { %1273 = vrot.lane.b32.xlu0 %v1263_v46, %s1960_s27 }
 0x775   :  { %v1166_v23 = vpop.permute.xlu0 %1165 }
 0x776   :  { %v1171_v40 = vsel %vm3937_vm5, %v1166_v23, %v3114_v47  ;;  %vm3941_vm5 = vmmov %vm3926_vm1 }
 0x777   :  { %1181 = vrot.lane.b32.xlu2 %v1171_v40, %s1960_s27 }
 0x779   :  { %v1260_v48 = vpop.permute.xlu1 %1259 }
 0x77a   :  { %v1264_v20 = vsel %vm3941_vm5, %v1260_v48, %v3087_v17  ;;  %vm3945_vm5 = vcmp.eq.s32.totalorder %v2193_v54, 15 }
 0x77b   :  { %1217 = vrot.lane.b32.xlu0 %v1171_v40, %s1961_s28 }
 0x77d   :  { %v1344_v28 = vpop.permute.xlu0 %1343 }
 0x77e   :  { %v1350_v60 = vsel %vm3926_vm1, %v1344_v28, %v3133_v34 }
 0x77f   :  { %1215 = vrot.lane.b32.xlu2 %v1170_v53, %s1961_s28  ;;  %1359 = vrot.lane.b32.xlu1 %v1350_v60, %s1960_s27 }
 0x781   :  { %v1168_v16 = vpop.permute.xlu1 %1167 }
 0x782   :  { %v1172_v26 = vsel %vm3943_vm15, %v1168_v16, %v3141_v29 }
 0x785   :  { %v1254_v43 = vpop.permute.xlu0 %1253 }
 0x786   :  { %v1261_v22 = vsel %vm3940_vm3, %v1254_v43, %v3101_v61  ;;  %vm3944_vm3 = vmmov %vm3926_vm1 }
 0x787   :  { %1357 = vrot.lane.b32.xlu2 %v1349_v27, %s1960_s27  ;;  %1269 = vrot.lane.b32.xlu0 %v1261_v22, %s1960_s27  ;;  %v1351_v30 = vsel %vm3944_vm3, %v1346_v0, %v3105_v14 }
 0x788   :  { %1275 = vrot.lane.b32.xlu1 %v1264_v20, %s1960_s27 }
 0x789   :  { %v1348_v51 = vpop.permute.xlu1 %1347 }
 0x78a   :  { %v1352_v52 = vsel %vm3926_vm1, %v1348_v51, %v3158_v37 }
 0x78d   :  { %v1162_v41 = vpop.permute.xlu0 %1161 }
 0x78e   :  { %v1169_v18 = vsel %vm3942_vm8, %v1162_v41, %v3167_v25  ;;  %vm3946_vm8 = vcmp.eq.s32.totalorder %v2193_v54, 0 }
 0x78f   :  { %1213 = vrot.lane.b32.xlu2 %v1169_v18, %s1961_s28  ;;  %1293 = vrot.lane.b32.xlu0 %v1261_v22, %s1961_s28  ;;  %vm3948_vm1 = vmmov %vm3946_vm8 }
 0x790   :  { %1299 = vrot.lane.b32.xlu1 %v1264_v20, %s1961_s28  ;;  %vm3949_vm15 = vmmov %vm3948_vm1 }
 0x791   :  { %vm3950_vm3 = vmmov %vm3948_vm1 }
 0x792   :  { %v1272_v23 = vpop.permute.xlu2 %1271 }
 0x793   :  { %v1282_v2 = vsel %vm3948_vm1, %v3063_v4, %v1272_v23 }
 0x794   :  { %v1286_v23 = vmul.f32 %v1282_v2, %v3893_v44 }
 0x797   :  { %1179 = vrot.lane.b32.xlu0 %v1170_v53, %s1960_s27  ;;  %1399 = vrot.lane.b32.xlu2 %v1352_v52, %s1961_s28 }
 0x798   :  { %1183 = vrot.lane.b32.xlu1 %v1172_v26, %s1960_s27 }
 0x79f   :  { %1177 = vrot.lane.b32.xlu0 %v1169_v18, %s1960_s27  ;;  %1395 = vrot.lane.b32.xlu2 %v1350_v60, %s1961_s28 }
 0x7a0   :  { %1219 = vrot.lane.b32.xlu1 %v1172_v26, %s1961_s28 }
 0x7a7   :  { %1397 = vrot.lane.b32.xlu2 %v1351_v30, %s1961_s28  ;;  %1363 = vrot.lane.b32.xlu0 %v1352_v52, %s1960_s27  ;;  %v3947_v52 = vld [vmem:[#allocation12_spill] sm:$0xff] }
 0x7a8   :  { %1393 = vrot.lane.b32.xlu1 %v1349_v27, %s1961_s28  ;;  %v1206_v26 = vmul.f32 %v3126_v31, %v3947_v52 }
 0x7aa   :  { %v1296_v53 = vpop.permute.xlu1 %1295 }
 0x7af   :  { %1297 = vrot.lane.b32.xlu0 %v1263_v46, %s1961_s28 }
 0x7b0   :  { %1361 = vrot.lane.b32.xlu1 %v1351_v30, %s1960_s27 }
 0x7d1   :  { %v1182_v40 = vpop.permute.xlu2 %1181 }
 0x7d9   :  { %v1216_v8 = vpop.permute.xlu2 %1215 }
 0x7da   :  { %v1226_v46 = vsel %vm3945_vm5, %v3126_v31, %v1216_v8 }
 0x7db   :  { %v1234_v8 = vmul.f32 %v1226_v46, %v2238_v5 }
 0x7e1   :  { %v1358_v60 = vpop.permute.xlu2 %1357 }
 0x7e5   :  { %v3255_v28 = vpop.permute.xlu0 %1273 }
 0x7e9   :  { %v1214_v22 = vpop.permute.xlu2 %1213 }
 0x7ed   :  { %v1218_v48 = vpop.permute.xlu0 %1217 }
 0x7f1   :  { %v1360_v24 = vpop.permute.xlu1 %1359  ;;  %v1400_v41 = vpop.permute.xlu2 %1399 }
 0x7f2   :  { %v1370_v12 = vsel %vm3949_vm15, %v3133_v34, %v1360_v24 }
 0x7f3   :  { %v1374_v46 = vsel %vm2581_vm2, 0.0, %v1370_v12 }
 0x7f9   :  { %v1270_v0 = vpop.permute.xlu0 %1269 }
 0x7fa   :  { %v1276_v43 = vpop.permute.xlu1 %1275 }
 0x801   :  { %v1294_v20 = vpop.permute.xlu0 %1293 }
 0x802   :  { %v1300_v16 = vpop.permute.xlu1 %1299 }
 0x809   :  { %v1180_v27 = vpop.permute.xlu0 %1179 }
 0x80a   :  { %v1190_v18 = vsel %vm3946_vm8, %v3126_v31, %v1180_v27  ;;  %v1184_v51 = vpop.permute.xlu1 %1183  ;;  %v1306_v31 = vsel %vm3945_vm5, %v3063_v4, %v1296_v53  ;;  %vm3951_vm8 = vmmov %vm3948_vm1 }
 0x80b   :  { %v1198_v30 = vmul.f32 %v1190_v18, %v2206_v57  ;;  %v1192_v27 = vsel %vm3950_vm3, %v3141_v29, %v1184_v51  ;;  %v1191_v18 = vsel %vm3951_vm8, %v3114_v47, %v1182_v40  ;;  %vm3952_vm1 = vmmov %vm3945_vm5  ;;  %v1386_v51 = vmul.f32 %v3133_v34, %v2564_v1 }
 0x80c   :  { %v1225_v24 = vsel %vm3952_vm1, %v3167_v25, %v1214_v22  ;;  %v1200_v53 = vmul.f32 %v1192_v27, %v3900_v6  ;;  %v1310_v40 = vmul.f32 %v1306_v31, %v2438_v15  ;;  %v1195_v36 = vsel %vm2424_vm11, 0.0, %v1191_v18  ;;  %vm3955_vm15 = vmmov %vm3952_vm1 }
 0x80d   :  { %v1210_v33 = vadd.f32 %v1206_v26, %v1198_v30  ;;  %v1396_v26 = vpop.permute.xlu2 %1395  ;;  %v1205_v22 = vmul.f32 %v3167_v25, %v3947_v52  ;;  %vm3956_vm5 = vmmov %vm3950_vm3 }
 0x80e   :  { %v1406_v27 = vsel %vm3955_vm15, %v3133_v34, %v1396_v26  ;;  %v1284_v18 = vsel %vm3956_vm5, %v3087_v17, %v1276_v43  ;;  %vm3958_vm8 = vmmov %vm3952_vm1  ;;  %v1227_v34 = vsel %vm3952_vm1, %v3114_v47, %v1218_v48 }
 0x80f   :  { %v1238_v30 = vadd.f32 %v1234_v8, %v1210_v33  ;;  %v1229_v33 = vsel %vm2232_vm9, 0.0, %v1225_v24  ;;  %v1378_v8 = vmul.f32 %v1374_v46, %v2502_v50  ;;  %v1212_v46 = vadd.f32 %v1208_v7, %v1200_v53  ;;  %vm3959_vm15 = vmmov %vm3950_vm3 }
 0x810   :  { %v1233_v43 = vmul.f32 %v1229_v33, %v2238_v5  ;;  %v1288_v7 = vmul.f32 %v1284_v18, %v3908_v59  ;;  %v1231_v53 = vsel %vm2508_vm12, 0.0, %v1227_v34  ;;  %vm3960_vm5 = vmmov %vm3952_vm1  ;;  %v1207_v18 = vmul.f32 %v3114_v47, %v3953_v62 }
 0x811   :  { %v1290_v21 = vadd.f32 %v1286_v23, %v1238_v30  ;;  %v1178_v12 = vpop.permute.xlu0 %1177 }
 0x812   :  { %v1189_v31 = vsel %vm3950_vm3, %v3167_v25, %v1178_v12  ;;  %v1220_v2 = vpop.permute.xlu1 %1219 }
 0x813   :  { %v1314_v23 = vadd.f32 %v1310_v40, %v1290_v21  ;;  %v1193_v13 = vsel %vm2202_vm7, 0.0, %v1189_v31  ;;  %v1228_v24 = vsel %vm3958_vm8, %v3141_v29, %v1220_v2  ;;  %v1369_v21 = vsel %vm3959_vm15, %v3147_v19, %v1358_v60  ;;  %vm3961_vm8 = vmmov %vm3952_vm1 }
 0x814   :  { %v1197_v25 = vmul.f32 %v1193_v13, %v2206_v57  ;;  %v1236_v26 = vmul.f32 %v1228_v24, %v2352_v42  ;;  %v1281_v40 = vsel %vm3950_vm3, %v3101_v61, %v1270_v0  ;;  %v1410_v2 = vsel %vm2521_vm6, 0.0, %v1406_v27  ;;  %vm3962_vm15 = vmmov %vm3950_vm3 }
 0x815   :  { %v1382_v29 = vadd.f32 %v1378_v8, %v1314_v23  ;;  %v1408_v60 = vsel %vm3960_vm5, %v3158_v37, %v1400_v41  ;;  %v1305_v12 = vsel %vm3961_vm8, %v3101_v61, %v1294_v20  ;;  %v1308_v0 = vsel %vm3952_vm1, %v3087_v17, %v1300_v16  ;;  %vm3963_vm3 = vmmov %vm3952_vm1 }
 0x816   :  { %v1209_v48 = vadd.f32 %v1205_v22, %v1197_v25  ;;  %v1240_v13 = vadd.f32 %v1236_v26, %v1212_v46  ;;  %v1285_v33 = vmul.f32 %v1281_v40, %v3893_v44  ;;  %v1199_v31 = vmul.f32 %v1195_v36, %v3900_v6  ;;  %vm3964_vm5 = vmmov %vm3962_vm15 }
 0x817   :  { %v1390_v8 = vadd.f32 %v1386_v51, %v1382_v29  ;;  %v1414_v41 = vmul.f32 %v1410_v2, %v2376_v11  ;;  %v1309_v24 = vmul.f32 %v1305_v12, %v2438_v15  ;;  %v1312_v20 = vmul.f32 %v1308_v0, %v3912_v45  ;;  %vm3965_vm8 = vmmov %vm3952_vm1 }
 0x818   :  { %v1237_v22 = vadd.f32 %v1233_v43, %v1209_v48  ;;  %v1292_v27 = vadd.f32 %v1288_v7, %v1240_v13  ;;  %v1377_v46 = vmul.f32 %v1369_v21, %v2502_v50  ;;  %v1235_v36 = vmul.f32 %v1231_v53, %v2352_v42  ;;  %vm3966_vm1 = vmmov %vm3964_vm5 }
 0x819   :  { %v1364_v23 = vpop.permute.xlu0 %1363  ;;  %v1412_v47 = vsel %vm2658_vm13, 0.0, %v1408_v60  ;;  %v1418_v26 = vadd.f32 %v1414_v41, %v1390_v8  ;;  %v1211_v2 = vadd.f32 %v1207_v18, %v1199_v31  ;;  %v1388_v7 = vmul.f32 %v3158_v37, %v2434_v56 }
 0x81a   :  { %v1289_v34 = vadd.f32 %v1285_v33, %v1237_v22  ;;  %v1372_v16 = vsel %vm3962_vm15, %v3158_v37, %v1364_v23  ;;  %v1394_v51 = vpop.permute.xlu1 %1393  ;;  %v1316_v43 = vadd.f32 %v1312_v20, %v1292_v27  ;;  %v1283_v48 = vsel %vm3964_vm5, %v3090_v38, %v3255_v28  ;;  %vm3969_vm15 = vmmov %vm3963_vm3 }
 0x81b   :  { %v1376_v25 = vsel %vm2360_vm10, 0.0, %v1372_v16  ;;  %v1405_v21 = vsel %vm3963_vm3, %v3147_v19, %v1394_v51  ;;  %v1385_v60 = vmul.f32 %v3147_v19, %v2564_v1  ;;  %v1239_v12 = vadd.f32 %v1235_v36, %v1211_v2 }
 0x81c   :  { %v1380_v40 = vmul.f32 %v1376_v25, %v2372_v35  ;;  %v1313_v29 = vadd.f32 %v1309_v24, %v1289_v34  ;;  %v1416_v0 = vmul.f32 %v1412_v47, %v2442_v49  ;;  %v1426_v33 = vmul.f32 %v1418_v26, %v2707_v9  ;;  %v1398_v24 = vpop.permute.xlu2 %1397  ;;  %v3968_v47 = vld [vmem:[#allocation23_spill] sm:$0xff] }
 0x81d   :  { %v1413_v22 = vmul.f32 %v1405_v21, %v2376_v11  ;;  %v1287_v27 = vmul.f32 %v1283_v48, %v3908_v59  ;;  %v1422_v28 = vadd.f32 %v3063_v4, %v2738_v58  ;;  %v1424_v20 = vadd.f32 %v3087_v17, %v2791_v10  ;;  %v3967_v4 = vld [vmem:[#allocation24_spill] sm:$0xff] }
 0x81e   :  { %v1384_v13 = vadd.f32 %v1380_v40, %v1316_v43  ;;  %v1381_v53 = vadd.f32 %v1377_v46, %v1313_v29  ;;  %v1421_v25 = vadd.f32 %v3101_v61, %v3968_v47  ;;  %v1407_v17 = vsel %vm3969_vm15, %v3105_v14, %v1398_v24 }
 0x81f   :  { %v1291_v34 = vadd.f32 %v1287_v27, %v1239_v12  ;;  %v3384_v46 = vsub.f32 %v1422_v28, %v1426_v33  ;;  %v3970_v12 = vld [vmem:[#allocation8_spill] sm:$0xff] }
 0x820   :  { %v1392_v37 = vadd.f32 %v1388_v7, %v1384_v13  ;;  %v1389_v8 = vadd.f32 %v1385_v60, %v1381_v53  ;;  %v1387_v7 = vmul.f32 %v3105_v14, %v2434_v56  ;;  %v1415_v53 = vmul.f32 %v1407_v17, %v2442_v49 }
 0x821   :  { %v1298_v31 = vpop.permute.xlu0 %1297  ;;  %v1434_v48 = vrot.slane %v3384_v46, 7  ;;  %vm3971_vm3 = vcmp.eq.s32.totalorder %v3970_v12, 0  ;;  %v1614_v28 = vrot.slane %v3384_v46, 1  ;;  %vm3973_vm5 = vcmp.lt.s32.totalorder %v3970_v12, 7 }
 0x822   :  { %v1420_v18 = vadd.f32 %v1416_v0, %v1392_v37  ;;  %v1417_v41 = vadd.f32 %v1413_v22, %v1389_v8  ;;  %v1307_v19 = vsel %vm3965_vm8, %v3090_v38, %v1298_v31  ;;  %v1362_v23 = vpop.permute.xlu1 %1361  ;;  %v3972_v22 = vld [vmem:[#allocation25_spill] sm:$0xff]  ;;  %vm3974_vm8 = vmmov %vm3973_vm5 }
 0x823   :  { %v1311_v16 = vmul.f32 %v1307_v19, %v3912_v45  ;;  %v1371_v51 = vsel %vm3966_vm1, %v3105_v14, %v1362_v23  ;;  %v1423_v27 = vadd.f32 %v3090_v38, %v3972_v22 }
 0x824   :  { %v1428_v36 = vmul.f32 %v1420_v18, %v3967_v4  ;;  %v1425_v26 = vmul.f32 %v1417_v41, %v2707_v9  ;;  %v1379_v40 = vmul.f32 %v1371_v51, %v2372_v35 }
 0x825   :  { %v1315_v43 = vadd.f32 %v1311_v16, %v1291_v34  ;;  %v3976_v16 = vld [vmem:[#allocation9_spill] sm:$0xff] }
 0x826   :  { %v3394_v29 = vsub.f32 %v1424_v20, %v1428_v36  ;;  %v3396_v2 = vsub.f32 %v1421_v25, %v1425_v26  ;;  %vm3977_vm1 = vcmp.eq.s32.totalorder %v3976_v16, 16 }
 0x827   :  { %v1383_v21 = vadd.f32 %v1379_v40, %v1315_v43 }
 0x828   :  { %1537 = vrot.lane.b32.xlu2 %v3396_v2, %s1959_s24  ;;  %v1433_v61 = vrot.slane %v3396_v2, 7  ;;  %v1436_v13 = vrot.slane %v3394_v29, 7  ;;  %v1613_v8 = vrot.slane %v3396_v2, 1 }
 0x829   :  { %v1391_v60 = vadd.f32 %v1387_v7, %v1383_v21 }
 0x82a   :  { %v3408_v0 = vsel %vm114_vm0, %v1433_v61, %v1434_v48  ;;  %v1440_v14 = vsel %vm114_vm0, %v1436_v13, %v1433_v61  ;;  %v3430_v41 = vsel %vm3973_vm5, %v1613_v8, %v1614_v28 }
 0x82b   :  { %v1419_v33 = vadd.f32 %v1415_v53, %v1391_v60  ;;  %1448 = vrot.lane.b32.xlu1 %v3408_v0, %s1959_s24  ;;  %v3417_v37 = vsel %vm3971_vm3, %v3396_v2, %v1440_v14  ;;  %v1616_v14 = vrot.slane %v3394_v29, 1 }
 0x82c   :  { %1445 = vrot.lane.b32.xlu0 %v3417_v37, %s1959_s24  ;;  %v1501_v39 = vmul.f32 %v3417_v37, %v3947_v52 }
 0x82d   :  { %v1427_v31 = vmul.f32 %v1419_v33, %v3967_v4 }
 0x82f   :  { %v3426_v18 = vsub.f32 %v1423_v27, %v1427_v31  ;;  %v3985_v27 = vld [vmem:[#allocation11_spill] sm:$0xff] }
 0x830   :  { %1625 = vrot.lane.b32.xlu2 %v3430_v41, %s1959_s24 }
 0x831   :  { %v1615_v19 = vrot.slane %v3426_v18, 1  ;;  %v1435_v20 = vrot.slane %v3426_v18, 7 }
 0x833   :  { %v1618_v23 = vsel %vm3974_vm8, %v1614_v28, %v1615_v19  ;;  %v1438_v34 = vsel %vm114_vm0, %v1434_v48, %v1435_v20  ;;  %v3460_v36 = vsel %vm114_vm0, %v1435_v20, %v1436_v13 }
 0x834   :  { %1540 = vrot.lane.b32.xlu0 %v3384_v46, %s1959_s24  ;;  %v3442_v24 = vsel %vm51_vm4, %v3384_v46, %v1618_v23  ;;  %v3454_v51 = vsel %vm3977_vm1, %v3426_v18, %v1438_v34  ;;  %vm3978_vm4 = vcmask 1047680   ;;  %vm3984_vm1 = vcmp.lt.s32.totalorder %v3970_v12, 7 }
 0x835   :  { %1628 = vrot.lane.b32.xlu1 %v3442_v24, %s1959_s24  ;;  %vm3979_vm15 = vmmov %vm3978_vm4  ;;  %v1620_v33 = vsel %vm3984_vm1, %v1616_v14, %v1613_v8 }
 0x836   :  { %vm3980_vm0 = vmmov %vm3978_vm4 }
 0x837   :  { %vm3981_vm3 = vmmov %vm3980_vm0 }
 0x838   :  { %1543 = vrot.lane.b32.xlu2 %v3426_v18, %s1959_s24  ;;  %vm3982_vm5 = vmmov %vm3980_vm0 }
 0x839   :  { %vm3983_vm8 = vmmov %vm3980_vm0 }
 0x83c   :  { %1451 = vrot.lane.b32.xlu0 %v3454_v51, %s1959_s24 }
 0x83d   :  { %1454 = vrot.lane.b32.xlu1 %v3460_v36, %s1959_s24 }
 0x882   :  { %v1538_v25 = vpop.permute.xlu2 %1537 }
 0x883   :  { %v1539_v26 = vsel %vm3978_vm4, %v1538_v25, %v3396_v2  ;;  %vm3986_vm4 = vcmp.eq.s32.totalorder %v3985_v27, 31 }
 0x884   :  { %1549 = vrot.lane.b32.xlu2 %v1539_v26, %s1959_s24  ;;  %v3490_v31 = vsel %vm3986_vm4, %v3394_v29, %v1620_v33  ;;  %vm3992_vm4 = vmmov %vm3980_vm0 }
 0x88a   :  { %v1626_v43 = vpop.permute.xlu2 %1625 }
 0x88b   :  { %v1627_v40 = vsel %vm3979_vm15, %v1626_v43, %v3430_v41  ;;  %vm3987_vm15 = vmmov %vm3984_vm1 }
 0x88c   :  { %1637 = vrot.lane.b32.xlu2 %v1627_v40, %s1959_s24  ;;  %v3496_v28 = vsel %vm3987_vm15, %v1615_v19, %v1616_v14  ;;  %vm3991_vm1 = vmmov %vm3980_vm0 }
 0x88d   :  { %vm3993_vm15 = vmmov %vm3980_vm0 }
 0x892   :  { %v1544_v23 = vpop.permute.xlu2 %1543 }
 0x89d   :  { %v1449_v7 = vpop.permute.xlu1 %1448 }
 0x89e   :  { %v1446_v17 = vpop.permute.xlu0 %1445  ;;  %v1450_v60 = vsel %vm3983_vm8, %v1449_v7, %v3408_v0  ;;  %vm3990_vm8 = vmmov %vm3980_vm0 }
 0x89f   :  { %v1447_v53 = vsel %vm3982_vm5, %v1446_v17, %v3417_v37  ;;  %vm3989_vm5 = vmmov %vm3980_vm0 }
 0x8a6   :  { %v1541_v21 = vpop.permute.xlu0 %1540 }
 0x8a7   :  { %v1542_v61 = vsel %vm3980_vm0, %v1541_v21, %v3384_v46  ;;  %v1629_v48 = vpop.permute.xlu1 %1628 }
 0x8a8   :  { %v1630_v13 = vsel %vm3981_vm3, %v1629_v48, %v3442_v24  ;;  %1551 = vrot.lane.b32.xlu0 %v1542_v61, %s1959_s24  ;;  %vm3988_vm3 = vmmov %vm3980_vm0 }
 0x8a9   :  { %1639 = vrot.lane.b32.xlu1 %v1630_v13, %s1959_s24 }
 0x8ae   :  { %v1452_v16 = vpop.permute.xlu0 %1451 }
 0x8af   :  { %v1455_v12 = vpop.permute.xlu1 %1454  ;;  %v1453_v21 = vsel %vm3992_vm4, %v1452_v16, %v3454_v51  ;;  %vm3998_vm4 = vcmp.eq.s32.totalorder %v2193_v54, 0 }
 0x8b0   :  { %1457 = vrot.lane.b32.xlu0 %v1447_v53, %s1959_s24 }
 0x8b1   :  { %1459 = vrot.lane.b32.xlu1 %v1450_v60, %s1959_s24 }
 0x8b8   :  { %1546 = vrot.lane.b32.xlu0 %v3394_v29, %s1959_s24 }
 0x8b9   :  { %1634 = vrot.lane.b32.xlu1 %v3490_v31, %s1959_s24 }
 0x8c0   :  { %1631 = vrot.lane.b32.xlu0 %v3496_v28, %s1959_s24 }
 0x8de   :  { %v1550_v8 = vpop.permute.xlu2 %1549 }
 0x8df   :  { %v1557_v38 = vsel %vm3980_vm0, %v1550_v8, %v3396_v2 }
 0x8e0   :  { %1589 = vrot.lane.b32.xlu0 %v1557_v38, %s1961_s28 }
 0x8e6   :  { %v1638_v20 = vpop.permute.xlu2 %1637 }
 0x8e7   :  { %v1645_v34 = vsel %vm3988_vm3, %v1638_v20, %v3430_v41  ;;  %vm3994_vm3 = vmmov %vm3980_vm0 }
 0x8e8   :  { %1653 = vrot.lane.b32.xlu0 %v1645_v34, %s1960_s27  ;;  %v1456_v53 = vsel %vm3994_vm3, %v1455_v12, %v3460_v36 }
 0x91a   :  { %v1552_v19 = vpop.permute.xlu0 %1551 }
 0x91b   :  { %v1558_v25 = vsel %vm3989_vm5, %v1552_v19, %v3384_v46  ;;  %v1640_v26 = vpop.permute.xlu1 %1639  ;;  %vm3995_vm5 = vmmov %vm3980_vm0 }
 0x91c   :  { %1567 = vrot.lane.b32.xlu2 %v1558_v25, %s1960_s27  ;;  %1591 = vrot.lane.b32.xlu1 %v1558_v25, %s1961_s28  ;;  %v1646_v17 = vsel %vm3991_vm1, %v1640_v26, %v3442_v24  ;;  %vm3997_vm1 = vmmov %vm3980_vm0 }
 0x91d   :  { %vm4001_vm3 = vmmov %vm3997_vm1 }
 0x922   :  { %v1458_v43 = vpop.permute.xlu0 %1457 }
 0x923   :  { %v1465_v40 = vsel %vm3990_vm8, %v1458_v43, %v3417_v37  ;;  %v1460_v7 = vpop.permute.xlu1 %1459  ;;  %vm3996_vm8 = vmmov %vm3980_vm0 }
 0x924   :  { %1509 = vrot.lane.b32.xlu0 %v1465_v40, %s1961_s28  ;;  %1565 = vrot.lane.b32.xlu1 %v1557_v38, %s1960_s27  ;;  %v1466_v61 = vsel %vm3993_vm15, %v1460_v7, %v3408_v0  ;;  %v1545_v33 = vsel %vm3996_vm8, %v1544_v23, %v3426_v18  ;;  %vm3999_vm15 = vcmp.eq.s32.totalorder %v2193_v54, 15  ;;  %v1720_v54 = vadd.f32 %v3394_v29, %v2791_v10 }
 0x925   :  { %1655 = vrot.lane.b32.xlu2 %v1646_v17, %s1960_s27  ;;  %vm4003_vm8 = vmmov %vm3999_vm15 }
 0x92a   :  { %v1547_v48 = vpop.permute.xlu0 %1546 }
 0x92b   :  { %v1548_v13 = vsel %vm3980_vm0, %v1547_v48, %v3394_v29  ;;  %v1635_v60 = vpop.permute.xlu1 %1634  ;;  %vm4000_vm0 = vmmov %vm3998_vm4 }
 0x92c   :  { %1461 = vrot.lane.b32.xlu0 %v1453_v21, %s1959_s24  ;;  %1691 = vrot.lane.b32.xlu1 %v1646_v17, %s1961_s28  ;;  %v1636_v14 = vsel %vm3995_vm5, %v1635_v60, %v3490_v31  ;;  %v1502_v21 = vmul.f32 %v3408_v0, %v3947_v52  ;;  %vm4002_vm5 = vmmov %vm3997_vm1 }
 0x92d   :  { %1475 = vrot.lane.b32.xlu2 %v1466_v61, %s1960_s27 }
 0x932   :  { %v1632_v27 = vpop.permute.xlu0 %1631 }
 0x933   :  { %v1633_v8 = vsel %vm3997_vm1, %v1632_v27, %v3496_v28  ;;  %vm4004_vm1 = vmmov %vm4000_vm0 }
 0x934   :  { %1555 = vrot.lane.b32.xlu0 %v1548_v13, %s1959_s24  ;;  %1473 = vrot.lane.b32.xlu1 %v1465_v40, %s1960_s27 }
 0x935   :  { %1511 = vrot.lane.b32.xlu2 %v1466_v61, %s1961_s28 }
 0x93c   :  { %1463 = vrot.lane.b32.xlu1 %v1456_v53, %s1959_s24 }
 0x93d   :  { %1689 = vrot.lane.b32.xlu2 %v1645_v34, %s1961_s28 }
 0x944   :  { %1643 = vrot.lane.b32.xlu1 %v1636_v14, %s1959_s24 }
 0x945   :  { %1553 = vrot.lane.b32.xlu2 %v1545_v33, %s1959_s24 }
 0x94d   :  { %1641 = vrot.lane.b32.xlu2 %v1633_v8, %s1959_s24 }
 0x952   :  { %v1590_v34 = vpop.permute.xlu0 %1589 }
 0x95a   :  { %v1654_v12 = vpop.permute.xlu0 %1653 }
 0x976   :  { %v1568_v38 = vpop.permute.xlu2 %1567 }
 0x977   :  { %v1578_v13 = vsel %vm4000_vm0, %v3384_v46, %v1568_v38 }
 0x97f   :  { %v1656_v20 = vpop.permute.xlu2 %1655 }
 0x987   :  { %v1476_v16 = vpop.permute.xlu2 %1475 }
 0x988   :  { %v1486_v23 = vsel %vm3998_vm4, %v3408_v0, %v1476_v16  ;;  %v1666_v16 = vsel %vm4004_vm1, %v3442_v24, %v1656_v20  ;;  %vm4005_vm4 = vmmov %vm4003_vm8 }
 0x989   :  { %v1494_v7 = vmul.f32 %v1486_v23, %v2206_v57  ;;  %vm4014_vm1 = vmmov %vm4002_vm5 }
 0x98b   :  { %v1506_v48 = vadd.f32 %v1502_v21, %v1494_v7  ;;  %v1670_v7 = vsel %vm2581_vm2, 0.0, %v1666_v16  ;;  %vm4008_vm2 = vmmov %vm4000_vm0 }
 0x98e   :  { %v1592_v19 = vpop.permute.xlu1 %1591 }
 0x98f   :  { %v1512_v25 = vpop.permute.xlu2 %1511  ;;  %v1602_v38 = vsel %vm4003_vm8, %v3384_v46, %v1592_v19  ;;  %vm4013_vm8 = vmmov %vm4002_vm5 }
 0x990   :  { %v1522_v17 = vsel %vm3999_vm15, %v3408_v0, %v1512_v25  ;;  %v1582_v0 = vmul.f32 %v1578_v13, %v3893_v44  ;;  %v1606_v23 = vmul.f32 %v1602_v38, %v2438_v15  ;;  %vm4006_vm15 = vmmov %vm4005_vm4 }
 0x991   :  { %v1530_v61 = vmul.f32 %v1522_v17, %v2238_v5 }
 0x993   :  { %v1534_v14 = vadd.f32 %v1530_v61, %v1506_v48 }
 0x995   :  { %v1586_v25 = vadd.f32 %v1582_v0, %v1534_v14 }
 0x996   :  { %v1510_v26 = vpop.permute.xlu0 %1509  ;;  %v1566_v43 = vpop.permute.xlu1 %1565 }
 0x997   :  { %v1690_v40 = vpop.permute.xlu2 %1689  ;;  %v1521_v17 = vsel %vm4005_vm4, %v3417_v37, %v1510_v26  ;;  %v1610_v61 = vadd.f32 %v1606_v23, %v1586_v25  ;;  %v1674_v26 = vmul.f32 %v1670_v7, %v2502_v50 }
 0x998   :  { %v1525_v13 = vsel %vm2232_vm9, 0.0, %v1521_v17  ;;  %vm4010_vm9 = vmmov %vm4000_vm0 }
 0x999   :  { %v1678_v0 = vadd.f32 %v1674_v26, %v1610_v61  ;;  %v1529_v38 = vmul.f32 %v1525_v13, %v2238_v5  ;;  %v1665_v63 = vsel %vm4010_vm9, %v3430_v41, %v1654_v12  ;;  %v1681_v12 = vmul.f32 %v3430_v41, %v2564_v1  ;;  %vm4022_vm9 = vmmov %vm4000_vm0 }
 0x99a   :  { %v1718_v13 = vadd.f32 %v3384_v46, %v2738_v58 }
 0x99e   :  { %v1462_v53 = vpop.permute.xlu0 %1461  ;;  %v1692_v60 = vpop.permute.xlu1 %1691 }
 0x99f   :  { %v1467_v33 = vsel %vm4001_vm3, %v1462_v53, %v3454_v51  ;;  %v1554_v27 = vpop.permute.xlu2 %1553  ;;  %v1702_v19 = vsel %vm4006_vm15, %v3442_v24, %v1692_v60  ;;  %v1577_v60 = vsel %vm4008_vm2, %v3396_v2, %v1566_v43  ;;  %vm4020_vm2 = vmmov %vm4000_vm0 }
 0x9a0   :  { %v1559_v8 = vsel %vm4002_vm5, %v1554_v27, %v3426_v18  ;;  %1477 = vrot.lane.b32.xlu2 %v1467_v33, %s1960_s27  ;;  %v1706_v27 = vsel %vm2521_vm6, 0.0, %v1702_v19  ;;  %v1581_v25 = vmul.f32 %v1577_v60, %v3893_v44  ;;  %vm4011_vm6 = vmmov %vm4001_vm3  ;;  %v1673_v44 = vmul.f32 %v1665_v63, %v2502_v50 }
 0x9a1   :  { %1593 = vrot.lane.b32.xlu0 %v1559_v8, %s1961_s28  ;;  %v1710_v52 = vmul.f32 %v1706_v27, %v2376_v11  ;;  %vm4012_vm3 = vmmov %vm4005_vm4  ;;  %v1717_v50 = vadd.f32 %v3396_v2, %v3968_v47 }
 0x9a2   :  { %vm4016_vm15 = vmmov %vm4012_vm3 }
 0x9a6   :  { %v1474_v21 = vpop.permute.xlu1 %1473  ;;  %v1556_v47 = vpop.permute.xlu0 %1555 }
 0x9a7   :  { %v1485_v20 = vsel %vm4000_vm0, %v3417_v37, %v1474_v21  ;;  %v1701_v21 = vsel %vm4012_vm3, %v3430_v41, %v1690_v40 }
 0x9a8   :  { %v1489_v53 = vsel %vm2202_vm7, 0.0, %v1485_v20  ;;  %vm4009_vm7 = vmmov %vm4005_vm4 }
 0x9a9   :  { %v1493_v14 = vmul.f32 %v1489_v53, %v2206_v57  ;;  %v1601_v30 = vsel %vm4009_vm7, %v3396_v2, %v1590_v34  ;;  %v1682_v57 = vmul.f32 %v3442_v24, %v2564_v1  ;;  %v1560_v2 = vsel %vm4002_vm5, %v1556_v47, %v3394_v29  ;;  %vm4015_vm4 = vmmov %vm4000_vm0 }
 0x9aa   :  { %v1605_v5 = vmul.f32 %v1601_v30, %v2438_v15  ;;  %v1709_v15 = vmul.f32 %v1701_v21, %v2376_v11  ;;  %v1503_v21 = vmul.f32 %v3454_v51, %v3953_v62  ;;  %vm4021_vm7 = vmmov %vm4012_vm3 }
 0x9ab   :  { %v1505_v16 = vadd.f32 %v1501_v39, %v1493_v14  ;;  %v1686_v23 = vadd.f32 %v1682_v57, %v1678_v0  ;;  %vm4024_vm5 = vmmov %vm4012_vm3 }
 0x9ad   :  { %v1533_v37 = vadd.f32 %v1529_v38, %v1505_v16  ;;  %v1714_v24 = vadd.f32 %v1710_v52, %v1686_v23 }
 0x9ae   :  { %v1464_v43 = vpop.permute.xlu1 %1463 }
 0x9af   :  { %v1585_v17 = vadd.f32 %v1581_v25, %v1533_v37  ;;  %v1468_v34 = vsel %vm4011_vm6, %v1464_v43, %v3460_v36  ;;  %v1722_v19 = vmul.f32 %v1714_v24, %v2707_v9  ;;  %vm4023_vm6 = vmmov %vm4000_vm0 }
 0x9b0   :  { %1479 = vrot.lane.b32.xlu2 %v1468_v34, %s1960_s27 }
 0x9b1   :  { %v1609_v7 = vadd.f32 %v1605_v5, %v1585_v17  ;;  %v3622_v53 = vsub.f32 %v1718_v13, %v1722_v19 }
 0x9b3   :  { %v1677_v61 = vadd.f32 %v1673_v44, %v1609_v7  ;;  %v1742_v1 = vsel %vm602_vm14, %v3622_v53, -inf }
 0x9b5   :  { %v1685_v20 = vadd.f32 %v1681_v12, %v1677_v61 }
 0x9b7   :  { %v1713_v48 = vadd.f32 %v1709_v15, %v1685_v20 }
 0x9b8   :  { %1513 = vrot.lane.b32.xlu2 %v1467_v33, %s1961_s28  ;;  %v1644_v33 = vpop.permute.xlu1 %1643 }
 0x9b9   :  { %v1721_v40 = vmul.f32 %v1713_v48, %v2707_v9  ;;  %v1730_v9 = vsel %vm602_vm14, %v3622_v53, inf  ;;  %v1648_v39 = vsel %vm4013_vm8, %v1644_v33, %v3490_v31 }
 0x9bb   :  { %v3624_v26 = vsub.f32 %v1717_v50, %v1721_v40 }
 0x9bd   :  { %v1741_v11 = vsel %vm602_vm14, %v3624_v26, -inf  ;;  %v1729_v58 = vsel %vm602_vm14, %v3624_v26, inf }
 0x9be   :  { %v1743_v41 = vmax.f32 %v1741_v11, %v1742_v1  ;;  %v1731_v46 = vmin.f32 %v1729_v58, %v1730_v9 }
 0x9c0   :  { %1744 = vmax.xlane.f32.xlu1 %v1743_v41  ;;  %1515 = vrot.lane.b32.xlu2 %v1468_v34, %s1961_s28 }
 0x9c8   :  { %1569 = vrot.lane.b32.xlu2 %v1559_v8, %s1960_s27  ;;  %v1642_v8 = vpop.permute.xlu2 %1641 }
 0x9c9   :  { %v1647_v14 = vsel %vm4014_vm1, %v1642_v8, %v3496_v28 }
 0x9cb   :  { %1732 = vmin.xlane.f32.xlu0 %v1731_v46  ;;  %v1504_v46 = vmul.f32 %v3460_v36, %v3953_v62 }
 0x9d0   :  { %1571 = vrot.lane.b32.xlu2 %v1560_v2, %s1960_s27 }
 0x9d8   :  { %1659 = vrot.lane.b32.xlu2 %v1648_v39, %s1960_s27 }
 0x9d9   :  { %1595 = vrot.lane.b32.xlu1 %v1560_v2, %s1961_s28 }
 0x9df   :  { %1695 = vrot.lane.b32.xlu0 %v1648_v39, %s1961_s28 }
 0x9e0   :  { %1657 = vrot.lane.b32.xlu2 %v1647_v14, %s1960_s27 }
 0x9e8   :  { %1693 = vrot.lane.b32.xlu2 %v1647_v14, %s1961_s28 }
 0x9fa   :  { %v1478_v60 = vpop.permute.xlu2 %1477 }
 0x9fb   :  { %v1487_v52 = vsel %vm4015_vm4, %v3454_v51, %v1478_v60 }
 0x9fc   :  { %v1491_v23 = vsel %vm2424_vm11, 0.0, %v1487_v52  ;;  %vm4018_vm11 = vmmov %vm4000_vm0 }
 0x9fd   :  { %v1495_v44 = vmul.f32 %v1491_v23, %v3900_v6 }
 0x9ff   :  { %v1507_v20 = vadd.f32 %v1503_v21, %v1495_v44 }
 0xa0a   :  { %v1480_v27 = vpop.permute.xlu2 %1479 }
 0xa0b   :  { %v1488_v3 = vsel %vm4018_vm11, %v3460_v36, %v1480_v27 }
 0xa0c   :  { %v1496_v41 = vmul.f32 %v1488_v3, %v3900_v6 }
 0xa0e   :  { %v1508_v27 = vadd.f32 %v1504_v46, %v1496_v41 }
 0xa12   :  { %v1514_v0 = vpop.permute.xlu2 %1513 }
 0xa13   :  { %v1594_v37 = vpop.permute.xlu0 %1593  ;;  %v1523_v43 = vsel %vm4016_vm15, %v3454_v51, %v1514_v0 }
 0xa14   :  { %v1527_v34 = vsel %vm2508_vm12, 0.0, %v1523_v43  ;;  %vm4019_vm12 = vmmov %vm4012_vm3 }
 0xa15   :  { %v1531_v61 = vmul.f32 %v1527_v34, %v2352_v42  ;;  %v1603_v11 = vsel %vm4019_vm12, %v3426_v18, %v1594_v37 }
 0xa16   :  { %v1607_v2 = vmul.f32 %v1603_v11, %v3912_v45 }
 0xa17   :  { %v1535_v50 = vadd.f32 %v1531_v61, %v1507_v20 }
 0xa1a   :  { %v1516_v38 = vpop.permute.xlu2 %1515 }
 0xa1b   :  { %v1524_v58 = vsel %vm4021_vm7, %v3460_v36, %v1516_v38 }
 0xa1c   :  { %v1532_v6 = vmul.f32 %v1524_v58, %v2352_v42 }
 0xa1e   :  { %v1536_v52 = vadd.f32 %v1532_v6, %v1508_v27 }
 0xa22   :  { %v1570_v16 = vpop.permute.xlu2 %1569 }
 0xa23   :  { %v1579_v7 = vsel %vm4000_vm0, %v3426_v18, %v1570_v16 }
 0xa24   :  { %v1583_v48 = vmul.f32 %v1579_v7, %v3908_v59 }
 0xa26   :  { %v1587_v9 = vadd.f32 %v1583_v48, %v1535_v50 }
 0xa28   :  { %v1611_v0 = vadd.f32 %v1607_v2, %v1587_v9 }
 0xa2a   :  { %v1572_v30 = vpop.permute.xlu2 %1571 }
 0xa2b   :  { %v1580_v33 = vsel %vm4022_vm9, %v3394_v29, %v1572_v30 }
 0xa2c   :  { %v1584_v38 = vmul.f32 %v1580_v33, %v3908_v59  ;;  %v1683_v59 = vmul.f32 %v3496_v28, %v2434_v56 }
 0xa2e   :  { %v1588_v43 = vadd.f32 %v1584_v38, %v1536_v52 }
 0xa32   :  { %v1660_v25 = vpop.permute.xlu2 %1659 }
 0xa33   :  { %v1745_v57 = vpop.xlane.xlu1 %1744  ;;  %v1668_v62 = vsel %vm4023_vm6, %v3490_v31, %v1660_v25 }
 0xa34   :  { %v1746_v63 = vrot.slane %v1745_v57, 4  ;;  %v1672_v42 = vsel %vm2360_vm10, 0.0, %v1668_v62  ;;  %vm4025_vm10 = vmmov %vm4012_vm3 }
 0xa36   :  { %v1747_v17 = vmax.f32 %v1745_v57, %v1746_v63 }
 0xa38   :  { %v1748_v12 = vrot.slane %v1747_v17, 2 }
 0xa3a   :  { %v1658_v24 = vpop.permute.xlu2 %1657  ;;  %v1749_v40 = vmax.f32 %v1747_v17, %v1748_v12  ;;  %v1676_v17 = vmul.f32 %v1672_v42, %v2372_v35 }
 0xa3b   :  { %v1667_v51 = vsel %vm4020_vm2, %v3496_v28, %v1658_v24  ;;  %v1684_v24 = vmul.f32 %v3490_v31, %v2434_v56 }
 0xa3c   :  { %v1675_v39 = vmul.f32 %v1667_v51, %v2372_v35  ;;  %v1750_v14 = vrot.slane %v1749_v40, 1  ;;  %v1719_v35 = vadd.f32 %v3426_v18, %v3972_v22 }
 0xa3e   :  { %v1733_v15 = vpop.xlane.xlu0 %1732  ;;  %v1679_v30 = vadd.f32 %v1675_v39, %v1611_v0  ;;  %v1751_v57 = vmax.f32 %v1749_v40, %v1750_v14 }
 0xa3f   :  { %v1734_v19 = vrot.slane %v1733_v15, 4 }
 0xa40   :  { %v1687_v23 = vadd.f32 %v1683_v59, %v1679_v30 }
 0xa41   :  { %v1735_v13 = vmin.f32 %v1733_v15, %v1734_v19 }
 0xa42   :  { %v1694_v8 = vpop.permute.xlu2 %1693 }
 0xa43   :  { %v1736_v1 = vrot.slane %v1735_v13, 2  ;;  %v1703_v36 = vsel %vm4012_vm3, %v3496_v28, %v1694_v8 }
 0xa44   :  { %v1711_v63 = vmul.f32 %v1703_v36, %v2442_v49 }
 0xa45   :  { %v1737_v47 = vmin.f32 %v1735_v13, %v1736_v1 }
 0xa46   :  { %v1715_v44 = vadd.f32 %v1711_v63, %v1687_v23 }
 0xa47   :  { %v1738_v60 = vrot.slane %v1737_v47, 1 }
 0xa49   :  { %v1739_v16 = vmin.f32 %v1737_v47, %v1738_v60 }
 0xa4b   :  { %1898 = vpush %v1739_v16  ;;  %v1596_v37 = vpop.permute.xlu1 %1595 }
 0xa4c   :  { %1900 = vpush %v1751_v57  ;;  %v1604_v25 = vsel %vm4024_vm5, %v3394_v29, %v1596_v37 }
 0xa4d   :  { %v1608_v5 = vmul.f32 %v1604_v25, %v3912_v45  ;;  %v1723_v45 = vmul.f32 %v1715_v44, %v3967_v4 }
 0xa4f   :  { %v1612_v34 = vadd.f32 %v1608_v5, %v1588_v43  ;;  %v3715_v19 = vsub.f32 %v1719_v35, %v1723_v45 }
 0xa51   :  { %v1680_v55 = vadd.f32 %v1676_v17, %v1612_v34  ;;  %v1696_v28 = vpop.permute.xlu0 %1695  ;;  %v1790_v32 = vsel %vm602_vm14, %v3715_v19, -inf }
 0xa52   :  { %v1704_v7 = vsel %vm4025_vm10, %v3490_v31, %v1696_v28 }
 0xa53   :  { %v1688_v21 = vadd.f32 %v1684_v24, %v1680_v55  ;;  %v1708_v61 = vsel %vm2658_vm13, 0.0, %v1704_v7 }
 0xa54   :  { %v1712_v12 = vmul.f32 %v1708_v61, %v2442_v49  ;;  %v1778_v49 = vsel %vm602_vm14, %v3715_v19, inf }
 0xa56   :  { %v1716_v15 = vadd.f32 %v1712_v12, %v1688_v21 }
 0xa58   :  { %v1724_v56 = vmul.f32 %v1716_v15, %v3967_v4 }
 0xa5a   :  { %v3720_v31 = vsub.f32 %v1720_v54, %v1724_v56 }
 0xa5c   :  { %v1791_v20 = vsel %vm602_vm14, %v3720_v31, -inf  ;;  %v1779_v22 = vsel %vm602_vm14, %v3720_v31, inf }
 0xa5d   :  { %v1792_v18 = vmax.f32 %v1790_v32, %v1791_v20  ;;  %v1780_v48 = vmin.f32 %v1778_v49, %v1779_v22 }
 0xa5f   :  { %1793 = vmax.xlane.f32.xlu0 %v1792_v18  ;;  %1781 = vmin.xlane.f32.xlu1 %v1780_v48 }
 0xa7c   :  { %s1899_s2 = spop %1898 }
 0xa7d   :  { %s1901_s24 = spop %1900  ;;  %v1772_v58 = vstv %s1899_s2 }
 0xa7e   :  { %s1753_s27 = ssub.f32 %s1901_s24, %s1899_s2  ;;  %v1773_v9 = vsub.f32 %v3624_v26, %v1772_v58  ;;  %v1774_v46 = vsub.f32 %v3622_v53, %v1772_v58 }
 0xa80   :  { %p1754_p0 = scmp.eq.f32.partialorder %s1753_s27, 0.0 }
 0xa82   :  { %s4027_s27 = smov (%p1754_p0, %s1753_s27), 1.0 }
 0xa83   :  { %v1756_v10 = vstv %s4027_s27 }
 0xa84   :  { %1921 = vrcp.f32 %v1756_v10  ;;  %v1768_v13 = vand.u32 2147483648, %v1756_v10  ;;  %v1766_v40 = vand.u32 2147483647, %v1756_v10  ;;  %vm1762_vm8 = vweird.f32 %v1756_v10 }
 0xa86   :  { %v1769_v51 = vor.u32 1.1754944e-38, %v1768_v13  ;;  %vm1767_vm4 = vcmp.eq.f32.partialorder %v1766_v40, 8.507059e+37 }
 0xa8a   :  { %v1922_v4 = vpop.eup %1921 }
 0xa8b   :  { %v1758_v29 = vmul.f32 %v1922_v4, %v1756_v10  ;;  %vm1763_vm13 = vweird.f32 %v1922_v4 }
 0xa8c   :  { %vm1764_vm1 = vmor %vm1762_vm8, %vm1763_vm13 }
 0xa8d   :  { %v1759_v3 = vsub.f32 1.0, %v1758_v29 }
 0xa8f   :  { %v1760_v50 = vmul.f32 %v1922_v4, %v1759_v3 }
 0xa91   :  { %v1761_v11 = vadd.f32 %v1922_v4, %v1760_v50 }
 0xa93   :  { %v1765_v1 = vsel %vm1764_vm1, %v1922_v4, %v1761_v11 }
 0xa94   :  { %v1770_v41 = vsel %vm1767_vm4, %v1769_v51, %v1765_v1 }
 0xa95   :  { %1902 = vpush %v1770_v41 }
 0xac6   :  { %s1903_s28 = spop %1902 }
 0xac7   :  { %v1775_v47 = vstv %s1903_s28 }
 0xac8   :  { %v1776_v2 = vmul.f32 %v1775_v47, %v1773_v9  ;;  %v1777_v33 = vmul.f32 %v1775_v47, %v1774_v46 }
 0xaca   :  { %1827 = vst.msk [vmem:[%s3753_s3] sm:$0xff] %vm602_vm14, %v1776_v2 }
 0xacb   :  { %1828 = vst.msk [vmem:[%s3753_s3 + $0x8] sm:$0xff] %vm602_vm14, %v1777_v33 }
 0xad2   :  { %v1794_v39 = vpop.xlane.xlu0 %1793  ;;  %v1782_v8 = vpop.xlane.xlu1 %1781 }
 0xad3   :  { %v1795_v14 = vrot.slane %v1794_v39, 4  ;;  %v1783_v26 = vrot.slane %v1782_v8, 4 }
 0xad5   :  { %v1796_v6 = vmax.f32 %v1794_v39, %v1795_v14  ;;  %v1784_v53 = vmin.f32 %v1782_v8, %v1783_v26 }
 0xad7   :  { %v1797_v60 = vrot.slane %v1796_v6, 2  ;;  %v1785_v27 = vrot.slane %v1784_v53, 2 }
 0xad9   :  { %v1798_v0 = vmax.f32 %v1796_v6, %v1797_v60  ;;  %v1786_v38 = vmin.f32 %v1784_v53, %v1785_v27 }
 0xadb   :  { %v1787_v62 = vrot.slane %v1786_v38, 1  ;;  %v1799_v36 = vrot.slane %v1798_v0, 1 }
 0xadd   :  { %v1788_v16 = vmin.f32 %v1786_v38, %v1787_v62  ;;  %v1800_v30 = vmax.f32 %v1798_v0, %v1799_v36 }
 0xadf   :  { %1904 = vpush %v1788_v16 }
 0xae0   :  { %1906 = vpush %v1800_v30 }
 0xb10   :  { %s1905_s29 = spop %1904 }
 0xb11   :  { %s1907_s30 = spop %1906  ;;  %v1821_v34 = vstv %s1905_s29 }
 0xb12   :  { %s1802_s4 = ssub.f32 %s1907_s30, %s1905_s29  ;;  %v1822_v44 = vsub.f32 %v3715_v19, %v1821_v34  ;;  %v1823_v55 = vsub.f32 %v3720_v31, %v1821_v34 }
 0xb14   :  { %p1803_p1 = scmp.eq.f32.partialorder %s1802_s4, 0.0 }
 0xb16   :  { %s4029_s4 = smov (%p1803_p1, %s1802_s4), 1.0 }
 0xb17   :  { %v1805_v57 = vstv %s4029_s4 }
 0xb18   :  { %1923 = vrcp.f32 %v1805_v57  ;;  %v1817_v59 = vand.u32 2147483648, %v1805_v57  ;;  %v1815_v25 = vand.u32 2147483647, %v1805_v57  ;;  %vm1811_vm0 = vweird.f32 %v1805_v57 }
 0xb1a   :  { %v1818_v5 = vor.u32 1.1754944e-38, %v1817_v59  ;;  %vm1816_vm12 = vcmp.eq.f32.partialorder %v1815_v25, 8.507059e+37 }
 0xb1e   :  { %v1924_v52 = vpop.eup %1923 }
 0xb1f   :  { %v1807_v37 = vmul.f32 %v1924_v52, %v1805_v57  ;;  %vm1812_vm15 = vweird.f32 %v1924_v52 }
 0xb20   :  { %vm1813_vm11 = vmor %vm1811_vm0, %vm1812_vm15 }
 0xb21   :  { %v1808_v42 = vsub.f32 1.0, %v1807_v37 }
 0xb23   :  { %v1809_v63 = vmul.f32 %v1924_v52, %v1808_v42 }
 0xb25   :  { %v1810_v43 = vadd.f32 %v1924_v52, %v1809_v63 }
 0xb27   :  { %v1814_v23 = vsel %vm1813_vm11, %v1924_v52, %v1810_v43 }
 0xb28   :  { %v1819_v17 = vsel %vm1816_vm12, %v1818_v5, %v1814_v23 }
 0xb29   :  { %1908 = vpush %v1819_v17 }
 0xb5a   :  { %s1909_s5 = spop %1908 }
 0xb5b   :  { %v1824_v24 = vstv %s1909_s5 }
 0xb5c   :  { %v1825_v28 = vmul.f32 %v1824_v24, %v1822_v44  ;;  %v1826_v7 = vmul.f32 %v1824_v24, %v1823_v55 }
 0xb5e   :  { %1829 = vst.msk [vmem:[%s3753_s3 + $0x10] sm:$0xff] %vm602_vm14, %v1825_v28 }
 0xb5f   :  { %1830 = vst.msk [vmem:[%s3753_s3 + $0x18] sm:$0xff] %vm602_vm14, %v1826_v7 }
 0xb60   :  { %1835 = vsyncpa [#allocation3], 1 }
 0xb61   :  { %1836 = vsyncpa [#allocation5], 1 }

</bundles_post_ra>
